<compile_context>
chip_gen: v5e
topology: v5e:2x2
jax: 0.10.0
libtpu: 0.0.40
codegen_flags: <defaults>
</compile_context>

<pallas_src>
import functools
import numpy as np
import jax
import jax.numpy as jnp
from jax.experimental import pallas as pl
from jax.experimental.pallas import tpu as pltpu

EPS = 1e-5  # LayerNorm eps (PyTorch default)


def _layer_norm(x, w, b):
    mu = jnp.mean(x, axis=-1, keepdims=True)
    var = jnp.mean(jnp.square(x - mu), axis=-1, keepdims=True)
    return (x - mu) * jax.lax.rsqrt(var + EPS) * w + b


# --------------------------------------------------------------------------- #
# Stage A: input LayerNorm + fused left/right projection & gate
#   inputs : pair rows (TM, D) f32, mask (TM, 1) f32,
#            fused weight (D, 4C) bf16, fused bias (1, 4C) f32
#   output : lr (TM, 2C) bf16 -- masked + gated left||right projection
# --------------------------------------------------------------------------- #
def _stage_a_kernel(pair_ref, mask_ref, ln_w_ref, ln_b_ref, wa_ref, ba_ref,
                    lr_ref, *, c2):
    ia = _layer_norm(pair_ref[...], ln_w_ref[...], ln_b_ref[...])   # (TM, D) f32

    # one fused MXU matmul: columns [0:2C)=lr projection, [2C:4C)=lr gate
    proj = jnp.dot(ia.astype(jnp.bfloat16), wa_ref[...],
                   preferred_element_type=jnp.float32) + ba_ref[...]

    lr = proj[:, :c2] * mask_ref[...] * jax.nn.sigmoid(proj[:, c2:])
    lr_ref[...] = lr.astype(lr_ref.dtype)


# --------------------------------------------------------------------------- #
# Stage B: outgoing triangle einsum 'ikc,jkc->ijc' on the MXU, tiled (i, j, k)
#   left  (C, TI, TK) bf16, right (C, TJ, TK) bf16  ->  act (C, TI, TJ) bf16
#   f32 VMEM accumulator across the k grid axis.
# --------------------------------------------------------------------------- #
def _stage_b_kernel(left_ref, right_ref, act_ref, acc_ref):
    @pl.when(pl.program_id(3) == 0)
    def _init():
        acc_ref[...] = jnp.zeros_like(acc_ref)

    acc_ref[...] += jax.lax.dot_general(
        left_ref[...], right_ref[...],
        dimension_numbers=(((2,), (2,)), ((0,), (0,))),   # batch=c, contract=k
        preferred_element_type=jnp.float32)

    @pl.when(pl.program_id(3) == pl.num_programs(3) - 1)
    def _finalize():
        act_ref[...] = acc_ref[...].astype(act_ref.dtype)


# --------------------------------------------------------------------------- #
# Stage C: center LayerNorm + output projection + recomputed gate + residual
#   (gate = sigmoid(gating_linear(LN(pair))) is recomputed here from the pair
#    block that is already loaded for the residual -> no gate HBM round-trip)
# --------------------------------------------------------------------------- #
def _stage_c_kernel(act_ref, pair_ref, ln_w_ref, ln_b_ref, wg_ref, bg_ref,
                    cln_w_ref, cln_b_ref, wout_ref, out_bias_ref, out_ref):
    x = pair_ref[...]                                              # (TM, D) f32
    ia = _layer_norm(x, ln_w_ref[...], ln_b_ref[...])              # layer_norm_input
    gate = jax.nn.sigmoid(
        jnp.dot(ia.astype(jnp.bfloat16), wg_ref[...],
                preferred_element_type=jnp.float32) + bg_ref[...])  # gating_linear

    a = _layer_norm(act_ref[...].astype(jnp.float32),
                    cln_w_ref[...], cln_b_ref[...])                 # center_layer_norm
    proj = jnp.dot(a.astype(jnp.bfloat16), wout_ref[...],
                   preferred_element_type=jnp.float32)              # output_projection

    # bias_ele_dropout_residual (inference): residual + gate * (act + out_bias)
    out_ref[...] = x + gate * (proj + out_bias_ref[...])


# --------------------------------------------------------------------------- #
# helpers
# --------------------------------------------------------------------------- #
def _pow2_divisor(dim, cap):
    """Largest power-of-two divisor of `dim` that is <= cap (falls back to dim)."""
    t = 1
    while t * 2 <= min(cap, dim) and dim % (t * 2) == 0:
        t *= 2
    if t % 8 != 0 and t != dim:
        return dim
    return t


# --------------------------------------------------------------------------- #
# wrapper
# --------------------------------------------------------------------------- #
def triangle_multiplication_ffb(pair_act, pair_mask, params, *,
                                row_tile=None, b_ti=None, b_tj=None, b_tk=None):
    B, N, N2, D = pair_act.shape
    assert N == N2 and N % 8 == 0
    C2 = params["lrp_w"].shape[-1]          # 2 * num_intermediate_channel
    C = C2 // 2
    M = N * N
    F = 2 * C2                              # fused projection width = 4C

    # --- tile sizes ---------------------------------------------------------
    if row_tile is None:                    # Stage A / C row tile over M
        row_tile = _pow2_divisor(M, 1024)
    assert M % row_tile == 0
    if b_ti is None:                        # Stage B i tile (second-minor)
        b_ti = _pow2_divisor(N, 128)
    if b_tj is None:                        # Stage B j tile (lane dim of output)
        b_tj = 128 if N % 128 == 0 else N
    if b_tk is None:                        # Stage B k tile (lane dim of inputs)
        b_tk = 128 if N % 128 == 0 else N
    assert N % b_ti == 0 and N % b_tj == 0 and N % b_tk == 0

    # --- flat channels-last views + fused weights (cheap XLA glue) ----------
    def rowvec(v, w):
        return jnp.asarray(v, jnp.float32).reshape(1, w)

    pair2 = pair_act.reshape(B, M, D).astype(jnp.float32)
    mask2 = pair_mask.reshape(B, M, 1).astype(jnp.float32)
    wa = jnp.concatenate([params["lrp_w"], params["lrg_w"]],
                         axis=-1).reshape(D, F).astype(jnp.bfloat16)   # (D, 4C)
    ba = jnp.concatenate([rowvec(params["lrp_b"], C2),
                          rowvec(params["lrg_b"], C2)], axis=-1)       # (1, 4C)
    wg = jnp.asarray(params["gate_w"], jnp.bfloat16).reshape(D, D)
    wout = jnp.asarray(params["outp_w"], jnp.bfloat16).reshape(C, D)

    n_rows = M // row_tile

    def rowspec(width):
        return pl.BlockSpec((None, row_tile, width), lambda b, r: (b, r, 0))

    def fullspec(shape):
        return pl.BlockSpec(shape, lambda b, r: (0,) * len(shape))

    # ---------------- Stage A ------------------------------------------------
    lr = pl.pallas_call(
        functools.partial(_stage_a_kernel, c2=C2),
        out_shape=jax.ShapeDtypeStruct((B, M, C2), jnp.bfloat16),
        grid_spec=pltpu.PrefetchScalarGridSpec(
            num_scalar_prefetch=0, grid=(B, n_rows),
            in_specs=[rowspec(D), rowspec(1),
                      fullspec((1, D)), fullspec((1, D)),
                      fullspec((D, F)), fullspec((1, F))],
            out_specs=rowspec(C2)),
        compiler_params=pltpu.CompilerParams(
            dimension_semantics=("parallel", "parallel")),
    )(pair2, mask2,
      rowvec(params["ln_w"], D), rowvec(params["ln_b"], D), wa, ba)

    # channel-major bf16 layout for the triangle contraction (one bf16 transpose)
    lr_cm = lr.reshape(B, N, N, C2).transpose(0, 3, 1, 2)      # (B, 2C, i, k)

    # ---------------- Stage B ------------------------------------------------
    n_i, n_j, n_k = N // b_ti, N // b_tj, N // b_tk
    act_cm = pl.pallas_call(
        _stage_b_kernel,
        out_shape=jax.ShapeDtypeStruct((B, C, N, N), jnp.bfloat16),
        grid_spec=pltpu.PrefetchScalarGridSpec(
            num_scalar_prefetch=0, grid=(B, n_i, n_j, n_k),
            in_specs=[
                # left  = channels [0:C)  of lr_cm, indexed (c, i, k)
                pl.BlockSpec((None, C, b_ti, b_tk),
                             lambda b, i, j, k: (b, 0, i, k)),
                # right = channels [C:2C) of lr_cm, indexed (c, j, k)
                pl.BlockSpec((None, C, b_tj, b_tk),
                             lambda b, i, j, k: (b, 1, j, k)),
            ],
            out_specs=pl.BlockSpec((None, C, b_ti, b_tj),
                                   lambda b, i, j, k: (b, 0, i, j)),
            scratch_shapes=[pltpu.VMEM((C, b_ti, b_tj), jnp.float32)]),
        compiler_params=pltpu.CompilerParams(
            dimension_semantics=("parallel", "parallel", "parallel", "arbitrary"),
            vmem_limit_bytes=64 * 1024 * 1024),
        cost_estimate=pl.CostEstimate(
            flops=2 * B * C * N * N * N,
            transcendentals=0,
            bytes_accessed=2 * B * C2 * N * N * max(n_i, n_j) + 2 * B * C * N * N),
    )(lr_cm, lr_cm)

    # back to channels-last for center-LN / output projection (one bf16 transpose)
    act = act_cm.transpose(0, 2, 3, 1).reshape(B, M, C)

    # ---------------- Stage C ------------------------------------------------
    out2 = pl.pallas_call(
        _stage_c_kernel,
        out_shape=jax.ShapeDtypeStruct((B, M, D), jnp.float32),
        grid_spec=pltpu.PrefetchScalarGridSpec(
            num_scalar_prefetch=0, grid=(B, n_rows),
            in_specs=[rowspec(C), rowspec(D),
                      fullspec((1, D)), fullspec((1, D)),      # input LN params
                      fullspec((D, D)), fullspec((1, D)),      # gating_linear
                      fullspec((1, C)), fullspec((1, C)),      # center LN params
                      fullspec((C, D)), fullspec((1, D))],     # out proj / out_bias
            out_specs=rowspec(D)),
        compiler_params=pltpu.CompilerParams(
            dimension_semantics=("parallel", "parallel")),
    )(act, pair2,
      rowvec(params["ln_w"], D), rowvec(params["ln_b"], D),
      wg, rowvec(params["gate_b"], D),
      rowvec(params["cln_w"], C), rowvec(params["cln_b"], C),
      wout, rowvec(params["out_bias"], D))

    return out2.reshape(B, N, N, D)


# ---------------- pure-JAX f32 reference (mirrors the PyTorch forward) ---------
def reference_forward(pair_act, pair_mask, p):
    x = pair_act.astype(jnp.float32)
    mask = pair_mask[..., None].astype(jnp.float32)

    def ln(v, w, b):
        mu = v.mean(-1, keepdims=True)
        var = ((v - mu) ** 2).mean(-1, keepdims=True)
        return (v - mu) * jax.lax.rsqrt(var + EPS) * w + b

    ia = ln(x, p["ln_w"][0], p["ln_b"][0])
    proj = ia @ p["lrp_w"] + p["lrp_b"][0]
    proj = proj * mask
    proj = proj * jax.nn.sigmoid(ia @ p["lrg_w"] + p["lrg_b"][0])
    C = proj.shape[-1] // 2
    left, right = proj[..., :C], proj[..., C:]
    act = jnp.einsum("bikc,bjkc->bijc", left, right)           # 'ikc,jkc->ijc'
    act = ln(act, p["cln_w"][0], p["cln_b"][0])
    act = act @ p["outp_w"]
    gate = jax.nn.sigmoid(ia @ p["gate_w"] + p["gate_b"][0])
    return x + gate * (act + p["out_bias"][0])


if __name__ == "__main__":
    B, N, D, C = 2, 16, 16, 32   # batch, N_res, pair_dim, num_intermediate_channel
    key = jax.random.PRNGKey(0)
    keys = jax.random.split(key, 16)

    pair_act = jax.random.normal(keys[0], (B, N, N, D), jnp.float32)
    pair_mask = (jax.random.uniform(keys[1], (B, N, N)) > 0.2).astype(jnp.float32)

    def w(k, shape, scale=0.1):
        return scale * jax.random.normal(k, shape, jnp.float32)

    params = {
        "ln_w": 1.0 + w(keys[2], (1, D)),        # layer_norm_input scale
        "ln_b": w(keys[3], (1, D)),              # layer_norm_input offset
        "lrp_w": w(keys[4], (D, 2 * C)),         # left_right_projection
        "lrp_b": w(keys[5], (1, 2 * C)),
        "lrg_w": w(keys[6], (D, 2 * C)),         # left_right_gate
        "lrg_b": w(keys[7], (1, 2 * C)),
        "cln_w": 1.0 + w(keys[8], (1, C)),       # center_layer_norm scale
        "cln_b": w(keys[9], (1, C)),             # center_layer_norm offset
        "gate_w": w(keys[10], (D, D)),           # gating_linear
        "gate_b": w(keys[11], (1, D)),
        "outp_w": w(keys[12], (C, D)),           # output_projection (no bias)
        "out_bias": w(keys[13], (1, D)),         # out_bias parameter
    }

    # small tiles passed explicitly so the demo exercises multi-step grids
    fwd = jax.jit(functools.partial(triangle_multiplication_ffb,
                                    row_tile=128, b_ti=8))
    out = jax.block_until_ready(fwd(pair_act, pair_mask, params))
    ref = jax.block_until_ready(reference_forward(pair_act, pair_mask, params))
    # bf16 MXU operands / bf16 intermediates (intentional, standard AF2 precision)
    np.testing.assert_allclose(np.asarray(out), np.asarray(ref),
                               rtol=3e-2, atol=3e-2)
    print("KERNEL_OK")
</pallas_src>

<mosaic_0001>
module attributes {stable_mosaic.version = 11 : i64} {
  func.func @_stage_a_kernel(%arg0: i32, %arg1: i32, %arg2: memref<1x128x16xf32, #tpu.memory_space<vmem>>, %arg3: memref<1x128x1xf32, #tpu.memory_space<vmem>>, %arg4: memref<1x16xf32, #tpu.memory_space<vmem>>, %arg5: memref<1x16xf32, #tpu.memory_space<vmem>>, %arg6: memref<16x128xbf16, #tpu.memory_space<vmem>>, %arg7: memref<1x128xf32, #tpu.memory_space<vmem>>, %arg8: memref<1x128x64xbf16, #tpu.memory_space<vmem>>) attributes {dimension_semantics = [#tpu.dimension_semantics<parallel>, #tpu.dimension_semantics<parallel>], iteration_bounds = array<i64: 2, 2>, scalar_prefetch = 0 : i64, scratch_operands = 0 : i64, tpu.core_type = #tpu.core_type<tc>, window_params = [{transform_indices = @transform_0, window_bounds = array<i64: 1, 128, 16>}, {transform_indices = @transform_1, window_bounds = array<i64: 1, 128, 1>}, {pipeline_mode = #tpu.pipeline_mode<synchronous>, transform_indices = @transform_2, window_bounds = array<i64: 1, 16>}, {pipeline_mode = #tpu.pipeline_mode<synchronous>, transform_indices = @transform_3, window_bounds = array<i64: 1, 16>}, {pipeline_mode = #tpu.pipeline_mode<synchronous>, transform_indices = @transform_4, window_bounds = array<i64: 16, 128>}, {pipeline_mode = #tpu.pipeline_mode<synchronous>, transform_indices = @transform_5, window_bounds = array<i64: 1, 128>}, {transform_indices = @transform_6, window_bounds = array<i64: 1, 128, 64>}]} {
    %c0 = arith.constant 0 : index
    %c0_0 = arith.constant 0 : index
    %c0_1 = arith.constant 0 : index
    %0 = vector.load %arg2[%c0, %c0_0, %c0_1] : memref<1x128x16xf32, #tpu.memory_space<vmem>>, vector<1x128x16xf32>
    %1 = vector.shape_cast %0 : vector<1x128x16xf32> to vector<128x16xf32>
    %c0_2 = arith.constant 0 : index
    %c0_3 = arith.constant 0 : index
    %2 = vector.load %arg4[%c0_2, %c0_3] : memref<1x16xf32, #tpu.memory_space<vmem>>, vector<1x16xf32>
    %c0_4 = arith.constant 0 : index
    %c0_5 = arith.constant 0 : index
    %3 = vector.load %arg5[%c0_4, %c0_5] : memref<1x16xf32, #tpu.memory_space<vmem>>, vector<1x16xf32>
    %cst = arith.constant dense<0.000000e+00> : vector<128xf32>
    %4 = vector.multi_reduction <add>, %1, %cst [1] : vector<128x16xf32> to vector<128xf32>
    %5 = vector.shape_cast %4 : vector<128xf32> to vector<128x1xf32>
    %cst_6 = arith.constant 1.600000e+01 : f32
    %6 = vector.broadcast %cst_6 : f32 to vector<128x1xf32>
    %7 = arith.divf %5, %6 : vector<128x1xf32>
    %8 = vector.broadcast %7 : vector<128x1xf32> to vector<128x16xf32>
    %9 = arith.subf %1, %8 : vector<128x16xf32>
    %10 = arith.mulf %9, %9 : vector<128x16xf32>
    %cst_7 = arith.constant dense<0.000000e+00> : vector<128xf32>
    %11 = vector.multi_reduction <add>, %10, %cst_7 [1] : vector<128x16xf32> to vector<128xf32>
    %12 = vector.shape_cast %11 : vector<128xf32> to vector<128x1xf32>
    %cst_8 = arith.constant 1.600000e+01 : f32
    %13 = vector.broadcast %cst_8 : f32 to vector<128x1xf32>
    %14 = arith.divf %12, %13 : vector<128x1xf32>
    %15 = vector.broadcast %7 : vector<128x1xf32> to vector<128x16xf32>
    %16 = arith.subf %1, %15 : vector<128x16xf32>
    %cst_9 = arith.constant 9.99999974E-6 : f32
    %17 = vector.broadcast %cst_9 : f32 to vector<128x1xf32>
    %18 = arith.addf %14, %17 : vector<128x1xf32>
    %19 = math.rsqrt %18 : vector<128x1xf32>
    %20 = vector.broadcast %19 : vector<128x1xf32> to vector<128x16xf32>
    %21 = arith.mulf %16, %20 : vector<128x16xf32>
    %22 = vector.broadcast %2 : vector<1x16xf32> to vector<128x16xf32>
    %23 = arith.mulf %21, %22 : vector<128x16xf32>
    %24 = vector.broadcast %3 : vector<1x16xf32> to vector<128x16xf32>
    %25 = arith.addf %23, %24 : vector<128x16xf32>
    %26 = arith.truncf %25 : vector<128x16xf32> to vector<128x16xbf16>
    %c0_10 = arith.constant 0 : index
    %c0_11 = arith.constant 0 : index
    %27 = vector.load %arg6[%c0_10, %c0_11] : memref<16x128xbf16, #tpu.memory_space<vmem>>, vector<16x128xbf16>
    %cst_12 = arith.constant dense<0.000000e+00> : vector<128x128xf32>
    %28 = tpu.matmul %26, %27, %cst_12 {dimension_numbers = #tpu.dot_dimension_numbers<[1], [0], [0], [1], [0, 0, 1, 1], [], []>} : vector<128x16xbf16>, vector<16x128xbf16>, vector<128x128xf32> -> vector<128x128xf32>
    %c0_13 = arith.constant 0 : index
    %c0_14 = arith.constant 0 : index
    %29 = vector.load %arg7[%c0_13, %c0_14] : memref<1x128xf32, #tpu.memory_space<vmem>>, vector<1x128xf32>
    %30 = vector.broadcast %29 : vector<1x128xf32> to vector<128x128xf32>
    %31 = arith.addf %28, %30 : vector<128x128xf32>
    %32 = vector.extract_strided_slice %31 {offsets = [0, 0], sizes = [128, 64], strides = [1, 1]} : vector<128x128xf32> to vector<128x64xf32>
    %c0_15 = arith.constant 0 : index
    %c0_16 = arith.constant 0 : index
    %c0_17 = arith.constant 0 : index
    %33 = vector.load %arg3[%c0_15, %c0_16, %c0_17] : memref<1x128x1xf32, #tpu.memory_space<vmem>>, vector<1x128x1xf32>
    %34 = vector.shape_cast %33 : vector<1x128x1xf32> to vector<128x1xf32>
    %35 = vector.broadcast %34 : vector<128x1xf32> to vector<128x64xf32>
    %36 = arith.mulf %32, %35 : vector<128x64xf32>
    %37 = vector.extract_strided_slice %31 {offsets = [0, 64], sizes = [128, 64], strides = [1, 1]} : vector<128x128xf32> to vector<128x64xf32>
    %38 = arith.negf %37 : vector<128x64xf32>
    %39 = math.exp %38 : vector<128x64xf32>
    %cst_18 = arith.constant 1.000000e+00 : f32
    %40 = vector.broadcast %cst_18 : f32 to vector<128x64xf32>
    %41 = arith.addf %40, %39 : vector<128x64xf32>
    %42 = arith.divf %40, %41 : vector<128x64xf32>
    %43 = arith.mulf %36, %42 : vector<128x64xf32>
    %44 = arith.truncf %43 : vector<128x64xf32> to vector<128x64xbf16>
    %c0_19 = arith.constant 0 : index
    %c0_20 = arith.constant 0 : index
    %c0_21 = arith.constant 0 : index
    %45 = vector.load %arg8[%c0_19, %c0_20, %c0_21] : memref<1x128x64xbf16, #tpu.memory_space<vmem>>, vector<1x128x64xbf16>
    %46 = vector.shape_cast %45 : vector<1x128x64xbf16> to vector<128x64xbf16>
    %47 = vector.shape_cast %44 : vector<128x64xbf16> to vector<1x128x64xbf16>
    tpu.vector_store %arg8[%c0_19, %c0_20, %c0_21], %47 {strides = array<i32>} : memref<1x128x64xbf16, #tpu.memory_space<vmem>>, vector<1x128x64xbf16>,
    return
  }
  func.func @transform_0(%arg0: i32, %arg1: i32) -> (i32, i32, i32) {
    %c0_i32 = arith.constant 0 : i32
    %c0_i32_0 = arith.constant 0 : i32
    return %arg0, %arg1, %c0_i32 : i32, i32, i32
  }
  func.func @transform_1(%arg0: i32, %arg1: i32) -> (i32, i32, i32) {
    %c0_i32 = arith.constant 0 : i32
    %c0_i32_0 = arith.constant 0 : i32
    return %arg0, %arg1, %c0_i32 : i32, i32, i32
  }
  func.func @transform_2(%arg0: i32, %arg1: i32) -> (i32, i32) {
    %c0_i32 = arith.constant 0 : i32
    %c0_i32_0 = arith.constant 0 : i32
    %c0_i32_1 = arith.constant 0 : i32
    return %c0_i32, %c0_i32_0 : i32, i32
  }
  func.func @transform_3(%arg0: i32, %arg1: i32) -> (i32, i32) {
    %c0_i32 = arith.constant 0 : i32
    %c0_i32_0 = arith.constant 0 : i32
    %c0_i32_1 = arith.constant 0 : i32
    return %c0_i32, %c0_i32_0 : i32, i32
  }
  func.func @transform_4(%arg0: i32, %arg1: i32) -> (i32, i32) {
    %c0_i32 = arith.constant 0 : i32
    %c0_i32_0 = arith.constant 0 : i32
    %c0_i32_1 = arith.constant 0 : i32
    return %c0_i32, %c0_i32_0 : i32, i32
  }
  func.func @transform_5(%arg0: i32, %arg1: i32) -> (i32, i32) {
    %c0_i32 = arith.constant 0 : i32
    %c0_i32_0 = arith.constant 0 : i32
    %c0_i32_1 = arith.constant 0 : i32
    return %c0_i32, %c0_i32_0 : i32, i32
  }
  func.func @transform_6(%arg0: i32, %arg1: i32) -> (i32, i32, i32) {
    %c0_i32 = arith.constant 0 : i32
    %c0_i32_0 = arith.constant 0 : i32
    return %arg0, %arg1, %c0_i32 : i32, i32, i32
  }
}

module attributes {stable_mosaic.version = 11 : i64} {
  func.func @_stage_b_kernel(%arg0: i32, %arg1: i32, %arg2: i32, %arg3: i32, %arg4: memref<1x32x8x16xbf16, #tpu.memory_space<vmem>>, %arg5: memref<1x32x16x16xbf16, #tpu.memory_space<vmem>>, %arg6: memref<1x32x8x16xbf16, #tpu.memory_space<vmem>>, %arg7: memref<32x8x16xf32, #tpu.memory_space<vmem>>) attributes {dimension_semantics = [#tpu.dimension_semantics<parallel>, #tpu.dimension_semantics<parallel>, #tpu.dimension_semantics<parallel>, #tpu.dimension_semantics<arbitrary>], iteration_bounds = array<i64: 2, 2, 1, 1>, scalar_prefetch = 0 : i64, scratch_operands = 1 : i64, tpu.core_type = #tpu.core_type<tc>, window_params = [{transform_indices = @transform_0, window_bounds = array<i64: 1, 32, 8, 16>}, {transform_indices = @transform_1, window_bounds = array<i64: 1, 32, 16, 16>}, {transform_indices = @transform_2, window_bounds = array<i64: 1, 32, 8, 16>}]} {
    %c0_i32 = arith.constant 0 : i32
    %0 = arith.cmpi eq, %arg3, %c0_i32 : i32
    %1 = arith.extui %0 : i1 to i32
    %c0_i32_0 = arith.constant 0 : i32
    %2 = arith.cmpi ne, %1, %c0_i32_0 : i32
    scf.if %2 {
      %cst_16 = arith.constant 0.000000e+00 : f32
      %14 = vector.broadcast %cst_16 : f32 to vector<32x8x16xf32>
      %c0_17 = arith.constant 0 : index
      %c0_18 = arith.constant 0 : index
      %c0_19 = arith.constant 0 : index
      %15 = vector.load %arg7[%c0_17, %c0_18, %c0_19] : memref<32x8x16xf32, #tpu.memory_space<vmem>>, vector<32x8x16xf32>
      tpu.vector_store %arg7[%c0_17, %c0_18, %c0_19], %14 {strides = array<i32>} : memref<32x8x16xf32, #tpu.memory_space<vmem>>, vector<32x8x16xf32>,
    } else {
    }
    %c0 = arith.constant 0 : index
    %c0_1 = arith.constant 0 : index
    %c0_2 = arith.constant 0 : index
    %3 = vector.load %arg7[%c0, %c0_1, %c0_2] : memref<32x8x16xf32, #tpu.memory_space<vmem>>, vector<32x8x16xf32>
    %c0_3 = arith.constant 0 : index
    %c0_4 = arith.constant 0 : index
    %c0_5 = arith.constant 0 : index
    %c0_6 = arith.constant 0 : index
    %4 = vector.load %arg4[%c0_3, %c0_4, %c0_5, %c0_6] : memref<1x32x8x16xbf16, #tpu.memory_space<vmem>>, vector<1x32x8x16xbf16>
    %5 = vector.shape_cast %4 : vector<1x32x8x16xbf16> to vector<32x8x16xbf16>
    %c0_7 = arith.constant 0 : index
    %c0_8 = arith.constant 0 : index
    %c0_9 = arith.constant 0 : index
    %c0_10 = arith.constant 0 : index
    %6 = vector.load %arg5[%c0_7, %c0_8, %c0_9, %c0_10] : memref<1x32x16x16xbf16, #tpu.memory_space<vmem>>, vector<1x32x16x16xbf16>
    %7 = vector.shape_cast %6 : vector<1x32x16x16xbf16> to vector<32x16x16xbf16>
    %cst = arith.constant dense<0.000000e+00> : vector<32x8x16xf32>
    %8 = tpu.matmul %5, %7, %cst {dimension_numbers = #tpu.dot_dimension_numbers<[2], [2], [1], [1], [0, 0, 0, 1, 1, 1], [0], [0]>} : vector<32x8x16xbf16>, vector<32x16x16xbf16>, vector<32x8x16xf32> -> vector<32x8x16xf32>
    %9 = arith.addf %3, %8 : vector<32x8x16xf32>
    %c0_11 = arith.constant 0 : index
    %c0_12 = arith.constant 0 : index
    %c0_13 = arith.constant 0 : index
    %10 = vector.load %arg7[%c0_11, %c0_12, %c0_13] : memref<32x8x16xf32, #tpu.memory_space<vmem>>, vector<32x8x16xf32>
    tpu.vector_store %arg7[%c0_11, %c0_12, %c0_13], %9 {strides = array<i32>} : memref<32x8x16xf32, #tpu.memory_space<vmem>>, vector<32x8x16xf32>,
    %c0_i32_14 = arith.constant 0 : i32
    %11 = arith.cmpi eq, %arg3, %c0_i32_14 : i32
    %12 = arith.extui %11 : i1 to i32
    %c0_i32_15 = arith.constant 0 : i32
    %13 = arith.cmpi ne, %12, %c0_i32_15 : i32
    scf.if %13 {
      %c0_16 = arith.constant 0 : index
      %c0_17 = arith.constant 0 : index
      %c0_18 = arith.constant 0 : index
      %14 = vector.load %arg7[%c0_16, %c0_17, %c0_18] : memref<32x8x16xf32, #tpu.memory_space<vmem>>, vector<32x8x16xf32>
      %15 = arith.truncf %14 : vector<32x8x16xf32> to vector<32x8x16xbf16>
      %c0_19 = arith.constant 0 : index
      %c0_20 = arith.constant 0 : index
      %c0_21 = arith.constant 0 : index
      %c0_22 = arith.constant 0 : index
      %16 = vector.load %arg6[%c0_19, %c0_20, %c0_21, %c0_22] : memref<1x32x8x16xbf16, #tpu.memory_space<vmem>>, vector<1x32x8x16xbf16>
      %17 = vector.shape_cast %16 : vector<1x32x8x16xbf16> to vector<32x8x16xbf16>
      %18 = vector.shape_cast %15 : vector<32x8x16xbf16> to vector<1x32x8x16xbf16>
      tpu.vector_store %arg6[%c0_19, %c0_20, %c0_21, %c0_22], %18 {strides = array<i32>} : memref<1x32x8x16xbf16, #tpu.memory_space<vmem>>, vector<1x32x8x16xbf16>,
    } else {
    }
    return
  }
  func.func @transform_0(%arg0: i32, %arg1: i32, %arg2: i32, %arg3: i32) -> (i32, i32, i32, i32) {
    %c0_i32 = arith.constant 0 : i32
    %c0_i32_0 = arith.constant 0 : i32
    return %arg0, %c0_i32, %arg1, %arg3 : i32, i32, i32, i32
  }
  func.func @transform_1(%arg0: i32, %arg1: i32, %arg2: i32, %arg3: i32) -> (i32, i32, i32, i32) {
    %c1_i32 = arith.constant 1 : i32
    %c0_i32 = arith.constant 0 : i32
    return %arg0, %c1_i32, %arg2, %arg3 : i32, i32, i32, i32
  }
  func.func @transform_2(%arg0: i32, %arg1: i32, %arg2: i32, %arg3: i32) -> (i32, i32, i32, i32) {
    %c0_i32 = arith.constant 0 : i32
    %c0_i32_0 = arith.constant 0 : i32
    return %arg0, %c0_i32, %arg1, %arg2 : i32, i32, i32, i32
  }
}

module attributes {stable_mosaic.version = 11 : i64} {
  func.func @_stage_c_kernel(%arg0: i32, %arg1: i32, %arg2: memref<1x128x32xbf16, #tpu.memory_space<vmem>>, %arg3: memref<1x128x16xf32, #tpu.memory_space<vmem>>, %arg4: memref<1x16xf32, #tpu.memory_space<vmem>>, %arg5: memref<1x16xf32, #tpu.memory_space<vmem>>, %arg6: memref<16x16xbf16, #tpu.memory_space<vmem>>, %arg7: memref<1x16xf32, #tpu.memory_space<vmem>>, %arg8: memref<1x32xf32, #tpu.memory_space<vmem>>, %arg9: memref<1x32xf32, #tpu.memory_space<vmem>>, %arg10: memref<32x16xbf16, #tpu.memory_space<vmem>>, %arg11: memref<1x16xf32, #tpu.memory_space<vmem>>, %arg12: memref<1x128x16xf32, #tpu.memory_space<vmem>>) attributes {dimension_semantics = [#tpu.dimension_semantics<parallel>, #tpu.dimension_semantics<parallel>], iteration_bounds = array<i64: 2, 2>, scalar_prefetch = 0 : i64, scratch_operands = 0 : i64, tpu.core_type = #tpu.core_type<tc>, window_params = [{transform_indices = @transform_0, window_bounds = array<i64: 1, 128, 32>}, {transform_indices = @transform_1, window_bounds = array<i64: 1, 128, 16>}, {pipeline_mode = #tpu.pipeline_mode<synchronous>, transform_indices = @transform_2, window_bounds = array<i64: 1, 16>}, {pipeline_mode = #tpu.pipeline_mode<synchronous>, transform_indices = @transform_3, window_bounds = array<i64: 1, 16>}, {pipeline_mode = #tpu.pipeline_mode<synchronous>, transform_indices = @transform_4, window_bounds = array<i64: 16, 16>}, {pipeline_mode = #tpu.pipeline_mode<synchronous>, transform_indices = @transform_5, window_bounds = array<i64: 1, 16>}, {pipeline_mode = #tpu.pipeline_mode<synchronous>, transform_indices = @transform_6, window_bounds = array<i64: 1, 32>}, {pipeline_mode = #tpu.pipeline_mode<synchronous>, transform_indices = @transform_7, window_bounds = array<i64: 1, 32>}, {pipeline_mode = #tpu.pipeline_mode<synchronous>, transform_indices = @transform_8, window_bounds = array<i64: 32, 16>}, {pipeline_mode = #tpu.pipeline_mode<synchronous>, transform_indices = @transform_9, window_bounds = array<i64: 1, 16>}, {transform_indices = @transform_10, window_bounds = array<i64: 1, 128, 16>}]} {
    %c0 = arith.constant 0 : index
    %c0_0 = arith.constant 0 : index
    %c0_1 = arith.constant 0 : index
    %0 = vector.load %arg3[%c0, %c0_0, %c0_1] : memref<1x128x16xf32, #tpu.memory_space<vmem>>, vector<1x128x16xf32>
    %1 = vector.shape_cast %0 : vector<1x128x16xf32> to vector<128x16xf32>
    %c0_2 = arith.constant 0 : index
    %c0_3 = arith.constant 0 : index
    %2 = vector.load %arg4[%c0_2, %c0_3] : memref<1x16xf32, #tpu.memory_space<vmem>>, vector<1x16xf32>
    %c0_4 = arith.constant 0 : index
    %c0_5 = arith.constant 0 : index
    %3 = vector.load %arg5[%c0_4, %c0_5] : memref<1x16xf32, #tpu.memory_space<vmem>>, vector<1x16xf32>
    %cst = arith.constant dense<0.000000e+00> : vector<128xf32>
    %4 = vector.multi_reduction <add>, %1, %cst [1] : vector<128x16xf32> to vector<128xf32>
    %5 = vector.shape_cast %4 : vector<128xf32> to vector<128x1xf32>
    %cst_6 = arith.constant 1.600000e+01 : f32
    %6 = vector.broadcast %cst_6 : f32 to vector<128x1xf32>
    %7 = arith.divf %5, %6 : vector<128x1xf32>
    %8 = vector.broadcast %7 : vector<128x1xf32> to vector<128x16xf32>
    %9 = arith.subf %1, %8 : vector<128x16xf32>
    %10 = arith.mulf %9, %9 : vector<128x16xf32>
    %cst_7 = arith.constant dense<0.000000e+00> : vector<128xf32>
    %11 = vector.multi_reduction <add>, %10, %cst_7 [1] : vector<128x16xf32> to vector<128xf32>
    %12 = vector.shape_cast %11 : vector<128xf32> to vector<128x1xf32>
    %cst_8 = arith.constant 1.600000e+01 : f32
    %13 = vector.broadcast %cst_8 : f32 to vector<128x1xf32>
    %14 = arith.divf %12, %13 : vector<128x1xf32>
    %15 = vector.broadcast %7 : vector<128x1xf32> to vector<128x16xf32>
    %16 = arith.subf %1, %15 : vector<128x16xf32>
    %cst_9 = arith.constant 9.99999974E-6 : f32
    %17 = vector.broadcast %cst_9 : f32 to vector<128x1xf32>
    %18 = arith.addf %14, %17 : vector<128x1xf32>
    %19 = math.rsqrt %18 : vector<128x1xf32>
    %20 = vector.broadcast %19 : vector<128x1xf32> to vector<128x16xf32>
    %21 = arith.mulf %16, %20 : vector<128x16xf32>
    %22 = vector.broadcast %2 : vector<1x16xf32> to vector<128x16xf32>
    %23 = arith.mulf %21, %22 : vector<128x16xf32>
    %24 = vector.broadcast %3 : vector<1x16xf32> to vector<128x16xf32>
    %25 = arith.addf %23, %24 : vector<128x16xf32>
    %26 = arith.truncf %25 : vector<128x16xf32> to vector<128x16xbf16>
    %c0_10 = arith.constant 0 : index
    %c0_11 = arith.constant 0 : index
    %27 = vector.load %arg6[%c0_10, %c0_11] : memref<16x16xbf16, #tpu.memory_space<vmem>>, vector<16x16xbf16>
    %cst_12 = arith.constant dense<0.000000e+00> : vector<128x16xf32>
    %28 = tpu.matmul %26, %27, %cst_12 {dimension_numbers = #tpu.dot_dimension_numbers<[1], [0], [0], [1], [0, 0, 1, 1], [], []>} : vector<128x16xbf16>, vector<16x16xbf16>, vector<128x16xf32> -> vector<128x16xf32>
    %c0_13 = arith.constant 0 : index
    %c0_14 = arith.constant 0 : index
    %29 = vector.load %arg7[%c0_13, %c0_14] : memref<1x16xf32, #tpu.memory_space<vmem>>, vector<1x16xf32>
    %30 = vector.broadcast %29 : vector<1x16xf32> to vector<128x16xf32>
    %31 = arith.addf %28, %30 : vector<128x16xf32>
    %32 = arith.negf %31 : vector<128x16xf32>
    %33 = math.exp %32 : vector<128x16xf32>
    %cst_15 = arith.constant 1.000000e+00 : f32
    %34 = vector.broadcast %cst_15 : f32 to vector<128x16xf32>
    %35 = arith.addf %34, %33 : vector<128x16xf32>
    %36 = arith.divf %34, %35 : vector<128x16xf32>
    %c0_16 = arith.constant 0 : index
    %c0_17 = arith.constant 0 : index
    %c0_18 = arith.constant 0 : index
    %37 = vector.load %arg2[%c0_16, %c0_17, %c0_18] : memref<1x128x32xbf16, #tpu.memory_space<vmem>>, vector<1x128x32xbf16>
    %38 = vector.shape_cast %37 : vector<1x128x32xbf16> to vector<128x32xbf16>
    %39 = arith.extf %38 : vector<128x32xbf16> to vector<128x32xf32>
    %c0_19 = arith.constant 0 : index
    %c0_20 = arith.constant 0 : index
    %40 = vector.load %arg8[%c0_19, %c0_20] : memref<1x32xf32, #tpu.memory_space<vmem>>, vector<1x32xf32>
    %c0_21 = arith.constant 0 : index
    %c0_22 = arith.constant 0 : index
    %41 = vector.load %arg9[%c0_21, %c0_22] : memref<1x32xf32, #tpu.memory_space<vmem>>, vector<1x32xf32>
    %cst_23 = arith.constant dense<0.000000e+00> : vector<128xf32>
    %42 = vector.multi_reduction <add>, %39, %cst_23 [1] : vector<128x32xf32> to vector<128xf32>
    %43 = vector.shape_cast %42 : vector<128xf32> to vector<128x1xf32>
    %cst_24 = arith.constant 3.200000e+01 : f32
    %44 = vector.broadcast %cst_24 : f32 to vector<128x1xf32>
    %45 = arith.divf %43, %44 : vector<128x1xf32>
    %46 = vector.broadcast %45 : vector<128x1xf32> to vector<128x32xf32>
    %47 = arith.subf %39, %46 : vector<128x32xf32>
    %48 = arith.mulf %47, %47 : vector<128x32xf32>
    %cst_25 = arith.constant dense<0.000000e+00> : vector<128xf32>
    %49 = vector.multi_reduction <add>, %48, %cst_25 [1] : vector<128x32xf32> to vector<128xf32>
    %50 = vector.shape_cast %49 : vector<128xf32> to vector<128x1xf32>
    %cst_26 = arith.constant 3.200000e+01 : f32
    %51 = vector.broadcast %cst_26 : f32 to vector<128x1xf32>
    %52 = arith.divf %50, %51 : vector<128x1xf32>
    %53 = vector.broadcast %45 : vector<128x1xf32> to vector<128x32xf32>
    %54 = arith.subf %39, %53 : vector<128x32xf32>
    %cst_27 = arith.constant 9.99999974E-6 : f32
    %55 = vector.broadcast %cst_27 : f32 to vector<128x1xf32>
    %56 = arith.addf %52, %55 : vector<128x1xf32>
    %57 = math.rsqrt %56 : vector<128x1xf32>
    %58 = vector.broadcast %57 : vector<128x1xf32> to vector<128x32xf32>
    %59 = arith.mulf %54, %58 : vector<128x32xf32>
    %60 = vector.broadcast %40 : vector<1x32xf32> to vector<128x32xf32>
    %61 = arith.mulf %59, %60 : vector<128x32xf32>
    %62 = vector.broadcast %41 : vector<1x32xf32> to vector<128x32xf32>
    %63 = arith.addf %61, %62 : vector<128x32xf32>
    %64 = arith.truncf %63 : vector<128x32xf32> to vector<128x32xbf16>
    %c0_28 = arith.constant 0 : index
    %c0_29 = arith.constant 0 : index
    %65 = vector.load %arg10[%c0_28, %c0_29] : memref<32x16xbf16, #tpu.memory_space<vmem>>, vector<32x16xbf16>
    %cst_30 = arith.constant dense<0.000000e+00> : vector<128x16xf32>
    %66 = tpu.matmul %64, %65, %cst_30 {dimension_numbers = #tpu.dot_dimension_numbers<[1], [0], [0], [1], [0, 0, 1, 1], [], []>} : vector<128x32xbf16>, vector<32x16xbf16>, vector<128x16xf32> -> vector<128x16xf32>
    %c0_31 = arith.constant 0 : index
    %c0_32 = arith.constant 0 : index
    %67 = vector.load %arg11[%c0_31, %c0_32] : memref<1x16xf32, #tpu.memory_space<vmem>>, vector<1x16xf32>
    %68 = vector.broadcast %67 : vector<1x16xf32> to vector<128x16xf32>
    %69 = arith.addf %66, %68 : vector<128x16xf32>
    %70 = arith.mulf %36, %69 : vector<128x16xf32>
    %71 = arith.addf %1, %70 : vector<128x16xf32>
    %c0_33 = arith.constant 0 : index
    %c0_34 = arith.constant 0 : index
    %c0_35 = arith.constant 0 : index
    %72 = vector.load %arg12[%c0_33, %c0_34, %c0_35] : memref<1x128x16xf32, #tpu.memory_space<vmem>>, vector<1x128x16xf32>
    %73 = vector.shape_cast %72 : vector<1x128x16xf32> to vector<128x16xf32>
    %74 = vector.shape_cast %71 : vector<128x16xf32> to vector<1x128x16xf32>
    tpu.vector_store %arg12[%c0_33, %c0_34, %c0_35], %74 {strides = array<i32>} : memref<1x128x16xf32, #tpu.memory_space<vmem>>, vector<1x128x16xf32>,
    return
  }
  func.func @transform_0(%arg0: i32, %arg1: i32) -> (i32, i32, i32) {
    %c0_i32 = arith.constant 0 : i32
    %c0_i32_0 = arith.constant 0 : i32
    return %arg0, %arg1, %c0_i32 : i32, i32, i32
  }
  func.func @transform_1(%arg0: i32, %arg1: i32) -> (i32, i32, i32) {
    %c0_i32 = arith.constant 0 : i32
    %c0_i32_0 = arith.constant 0 : i32
    return %arg0, %arg1, %c0_i32 : i32, i32, i32
  }
  func.func @transform_2(%arg0: i32, %arg1: i32) -> (i32, i32) {
    %c0_i32 = arith.constant 0 : i32
    %c0_i32_0 = arith.constant 0 : i32
    %c0_i32_1 = arith.constant 0 : i32
    return %c0_i32, %c0_i32_0 : i32, i32
  }
  func.func @transform_3(%arg0: i32, %arg1: i32) -> (i32, i32) {
    %c0_i32 = arith.constant 0 : i32
    %c0_i32_0 = arith.constant 0 : i32
    %c0_i32_1 = arith.constant 0 : i32
    return %c0_i32, %c0_i32_0 : i32, i32
  }
  func.func @transform_4(%arg0: i32, %arg1: i32) -> (i32, i32) {
    %c0_i32 = arith.constant 0 : i32
    %c0_i32_0 = arith.constant 0 : i32
    %c0_i32_1 = arith.constant 0 : i32
    return %c0_i32, %c0_i32_0 : i32, i32
  }
  func.func @transform_5(%arg0: i32, %arg1: i32) -> (i32, i32) {
    %c0_i32 = arith.constant 0 : i32
    %c0_i32_0 = arith.constant 0 : i32
    %c0_i32_1 = arith.constant 0 : i32
    return %c0_i32, %c0_i32_0 : i32, i32
  }
  func.func @transform_6(%arg0: i32, %arg1: i32) -> (i32, i32) {
    %c0_i32 = arith.constant 0 : i32
    %c0_i32_0 = arith.constant 0 : i32
    %c0_i32_1 = arith.constant 0 : i32
    return %c0_i32, %c0_i32_0 : i32, i32
  }
  func.func @transform_7(%arg0: i32, %arg1: i32) -> (i32, i32) {
    %c0_i32 = arith.constant 0 : i32
    %c0_i32_0 = arith.constant 0 : i32
    %c0_i32_1 = arith.constant 0 : i32
    return %c0_i32, %c0_i32_0 : i32, i32
  }
  func.func @transform_8(%arg0: i32, %arg1: i32) -> (i32, i32) {
    %c0_i32 = arith.constant 0 : i32
    %c0_i32_0 = arith.constant 0 : i32
    %c0_i32_1 = arith.constant 0 : i32
    return %c0_i32, %c0_i32_0 : i32, i32
  }
  func.func @transform_9(%arg0: i32, %arg1: i32) -> (i32, i32) {
    %c0_i32 = arith.constant 0 : i32
    %c0_i32_0 = arith.constant 0 : i32
    %c0_i32_1 = arith.constant 0 : i32
    return %c0_i32, %c0_i32_0 : i32, i32
  }
  func.func @transform_10(%arg0: i32, %arg1: i32) -> (i32, i32, i32) {
    %c0_i32 = arith.constant 0 : i32
    %c0_i32_0 = arith.constant 0 : i32
    return %arg0, %arg1, %c0_i32 : i32, i32, i32
  }
}

</mosaic_0001>

<bundles_post_ra>
// kernel: triangle_multiplication_ffb.3
= control target key start
LH: loop header
LB: loop body
LE: loop exit
PB: predicated region body
PF: predicated region fallthrough
CT: control target
= control target key end

     0   :  { %s1747_s21 = smov 0   ;;  %s1749_s22 = smov 0   ;;  %s2840_s0 = inlined_call_operand.vmem [shape: f32[2,256,16], index: 0, kind: input, shape index: {}]   ;;  %s2841_s1 = inlined_call_operand.vmem [shape: f32[2,256,1], index: 1, kind: input, shape index: {}]   ;;  %s2842_s2 = inlined_call_operand.vmem [shape: f32[1,16], index: 2, kind: input, shape index: {}]   ;;  %s2843_s3 = inlined_call_operand.vmem [shape: f32[1,16], index: 3, kind: input, shape index: {}]   ;;  %s2844_s4 = inlined_call_operand.vmem [shape: bf16[16,128], index: 4, kind: input, shape index: {}]   ;;  %s2845_s5 = inlined_call_operand.vmem [shape: f32[1,128], index: 5, kind: input, shape index: {}]   ;;  %s2846_s6 = inlined_call_operand.vmem [shape: bf16[2,256,64], index: 6, kind: output, shape index: {}]  }
   0x1   :  { %s1751_s23 = smov 0   ;;  %s1753_s24 = smov 0  }
   0x2   :  { %s1755_s25 = smov 0  }
   0x3 LB: > { %s25_s26 = sadd.s32 1, %s1699_s23  ;;  %s28_s27 = sadd.s32 1, %s1703_s24  ;;  %s1707_s25 = sphi %s1755_s25, %s16_s25   ;;  %s1703_s24 = sphi %s1753_s24, %s2892_s24   ;;  %s1699_s23 = sphi %s1751_s23, %s2891_s23   ;;  %s1695_s22 = sphi %s1749_s22, %s2890_s22   ;;  %s1691_s21 = sphi %s1747_s21, %s2889_s21  }
   0x4   : > { %p26_p0 = scmp.ge.s32.totalorder %s25_s26, 2  ;;  %p1478_p1 = scmp.ge.s32.totalorder %s1707_s25, 1 }
   0x5   : > { %p250_p2 = scmp.lt.s32.totalorder %s1707_s25, 5 }
   0x6   : > { %s2894_s26 = smov (%p26_p0, %s25_s26), 0  ;;  %s2896_s27 = smov (!%p26_p0, %s28_s27), %s1703_s24 }
   0x7   : > { %p251_p3 = pnand %p1478_p1, %p250_p2  ;;  %p30_p4 = scmp.ge.s32.totalorder %s2896_s27, 2 }
   0x8   : > { %s1479_s28 = sshll.u32 (!%p251_p3), %s1691_s21, 4  ;;  %p298_p5 = scmp.lt.s32.totalorder (!%p251_p3), %s1695_s22, 1 }
   0x9   : > { %s2898_s27 = smov (%p30_p4, %s2896_s27), 0  ;;  %254 = sbr.rel (%p251_p3) target bundleno = 637 (0x27d), region = 44 }
   0xa   : > { %p300_p6 = scmp.lt.s32.totalorder (!%p251_p3), %s1479_s28, 31 }
   0xe   : > { %s2900_s22 = smov (!%p298_p5, %s1695_s22), 1  ;;  %s2902_s28 = smov (!%p300_p6, %s1479_s28), 31  ;;  %vm346_vm0 = vcmask 130048   ;;  %v1709_v32 = vmov 16.0  }
   0xf   : > { %s1480_s29 = sshll.u32 %s2900_s22, 5  ;;  %1571 = vrcp.f32 %v1709_v32  ;;  %s1711_s22 = smov 64  }
  0x10   : > { %s1777_s30 = sadd.s32 %s1480_s29, %s2902_s28 }
  0x11   : > { %s1481_s7 = sshll.u32 %s1777_s30, 3  ;;  %s1487_s28 = sshll.u32 %s1777_s30, 2 }
  0x12   : > { %s1785_s10 = scalar_lea.vmem %s2840_s0, %s1481_s7  ;;  %s1980_s13 = scalar_lea.vmem %s2841_s1, %s1481_s7 }
  0x13   : > { %v340_v0 = vld [vmem:[%s1785_s10 + $0x60] sm:$0xff]  ;;  %v1797_v6 = vld [vmem:[%s1785_s10 + $0x68] sm:$0xff]  ;;  %v1818_v14 = vld [vmem:[%s1785_s10 + $0x50] sm:$0xff]  ;;  %s2768_s8 = scalar_lea.vmem %s2846_s6, %s1487_s28 }
  0x14   : > { %v336_v1 = vld [vmem:[%s1785_s10 + $0x40] sm:$0xff]  ;;  %v383_v3 = vsel %vm346_vm0, %v340_v0, 0.0  ;;  %v1800_v7 = vld [vmem:[%s1785_s10 + $0x48] sm:$0xff]  ;;  %v386_v9 = vsel %vm346_vm0, %v1797_v6, 0.0  ;;  %v377_v17 = vsel %vm346_vm0, %v1818_v14, 0.0  ;;  %v1827_v18 = vld [vmem:[%s1785_s10 + $0x58] sm:$0xff] }
  0x15   : > { %v1790_v2 = vld [vmem:[%s1785_s10] sm:$0xff]  ;;  %v371_v4 = vsel %vm346_vm0, %v336_v1, 0.0  ;;  %384 = vadd.xlane.f32.xlu1 %v383_v3  ;;  %v1803_v8 = vld [vmem:[%s1785_s10 + $0x8] sm:$0xff]  ;;  %v374_v10 = vsel %vm346_vm0, %v1800_v7, 0.0  ;;  %v1830_v19 = vld [vmem:[%s1785_s10 + $0x70] sm:$0xff]  ;;  %v380_v21 = vsel %vm346_vm0, %v1827_v18, 0.0  ;;  %v1572_v33 = vpop.eup %1571 }
  0x16   : > { %v347_v5 = vsel %vm346_vm0, %v1790_v2, 0.0  ;;  %372 = vadd.xlane.f32.xlu0 %v371_v4  ;;  %v350_v11 = vsel %vm346_vm0, %v1803_v8, 0.0  ;;  %v1812_v12 = vld [vmem:[%s1785_s10 + $0x20] sm:$0xff]  ;;  %v1815_v13 = vld [vmem:[%s1785_s10 + $0x28] sm:$0xff]  ;;  %v1833_v20 = vld [vmem:[%s1785_s10 + $0x78] sm:$0xff]  ;;  %v389_v22 = vsel %vm346_vm0, %v1830_v19, 0.0  ;;  %vm400_vm1 = vweird.f32 %v1572_v33 }
  0x17   : > { %348 = vadd.xlane.f32.xlu2 %v347_v5  ;;  %v359_v15 = vsel %vm346_vm0, %v1812_v12, 0.0  ;;  %v362_v16 = vsel %vm346_vm0, %v1815_v13, 0.0  ;;  %v392_v23 = vsel %vm346_vm0, %v1833_v20, 0.0  ;;  %v1842_v24 = vld [vmem:[%s1785_s10 + $0x10] sm:$0xff]  ;;  %v1845_v25 = vld [vmem:[%s1785_s10 + $0x18] sm:$0xff]  ;;  %v396_v34 = vmul.f32 16.0, %v1572_v33 }
  0x18   : > { %v1848_v26 = vld [vmem:[%s1785_s10 + $0x30] sm:$0xff]  ;;  %v353_v27 = vsel %vm346_vm0, %v1842_v24, 0.0  ;;  %v356_v28 = vsel %vm346_vm0, %v1845_v25, 0.0  ;;  %v1857_v30 = vld [vmem:[%s1785_s10 + $0x38] sm:$0xff] }
  0x19   : > { %v365_v29 = vsel %vm346_vm0, %v1848_v26, 0.0  ;;  %v368_v31 = vsel %vm346_vm0, %v1857_v30, 0.0  ;;  %v397_v35 = vsub.f32 1.0, %v396_v34 }
  0x1b   : > { %v398_v36 = vmul.f32 %v1572_v33, %v397_v35 }
  0x1d   : > { %387 = vadd.xlane.f32.xlu1 %v386_v9  ;;  %v399_v37 = vadd.f32 %v1572_v33, %v398_v36 }
  0x1e   : > { %375 = vadd.xlane.f32.xlu0 %v374_v10 }
  0x1f   : > { %351 = vadd.xlane.f32.xlu2 %v350_v11  ;;  %v1861_v38 = vsel %vm400_vm1, %v1572_v33, %v399_v37 }
  0x25   : > { %363 = vadd.xlane.f32.xlu1 %v362_v16 }
  0x26   : > { %360 = vadd.xlane.f32.xlu0 %v359_v15 }
  0x27   : > { %378 = vadd.xlane.f32.xlu2 %v377_v17 }
  0x2d   : > { %390 = vadd.xlane.f32.xlu1 %v389_v22 }
  0x2e   : > { %381 = vadd.xlane.f32.xlu0 %v380_v21 }
  0x2f   : > { %393 = vadd.xlane.f32.xlu2 %v392_v23 }
  0x35   : > { %357 = vadd.xlane.f32.xlu1 %v356_v28 }
  0x36   : > { %354 = vadd.xlane.f32.xlu0 %v353_v27 }
  0x37   : > { %366 = vadd.xlane.f32.xlu2 %v365_v29 }
  0x3e   : > { %369 = vadd.xlane.f32.xlu0 %v368_v31 }
  0x88   : > { %v385_v39 = vpop.xlane.xlu1 %384 }
  0x89   : > { %v373_v40 = vpop.xlane.xlu0 %372  ;;  %v414_v41 = vmul.f32 %v1861_v38, %v385_v39 }
  0x8a   : > { %v410_v42 = vmul.f32 %v1861_v38, %v373_v40  ;;  %v349_v43 = vpop.xlane.xlu2 %348 }
  0x8b   : > { %v1865_v44 = vsub.f32 %v340_v0, %v414_v41  ;;  %v402_v56 = vmul.f32 %v1861_v38, %v349_v43 }
  0x8c   : > { %v1867_v45 = vsub.f32 %v336_v1, %v410_v42 }
  0x8d   : > { %v446_v47 = vmul.f32 %v1865_v44, %v1865_v44  ;;  %v1895_v63 = vsub.f32 %v1790_v2, %v402_v56 }
  0x8e   : > { %v442_v46 = vmul.f32 %v1867_v45, %v1867_v45 }
  0x8f   : > { %v486_v49 = vsel %vm346_vm0, %v446_v47, 0.0  ;;  %v434_v10 = vmul.f32 %v1895_v63, %v1895_v63 }
  0x90   : > { %v474_v48 = vsel %vm346_vm0, %v442_v46, 0.0  ;;  %v388_v50 = vpop.xlane.xlu1 %387  ;;  %487 = vadd.xlane.f32.xlu0 %v486_v49 }
  0x91   : > { %v376_v51 = vpop.xlane.xlu0 %375  ;;  %475 = vadd.xlane.f32.xlu1 %v474_v48  ;;  %v415_v52 = vmul.f32 %v1861_v38, %v388_v50 }
  0x92   : > { %v411_v53 = vmul.f32 %v1861_v38, %v376_v51  ;;  %v352_v54 = vpop.xlane.xlu2 %351 }
  0x93   : > { %v403_v55 = vmul.f32 %v1861_v38, %v352_v54  ;;  %v1880_v57 = vsub.f32 %v1797_v6, %v415_v52 }
  0x94   : > { %v1883_v58 = vsub.f32 %v1800_v7, %v411_v53 }
  0x95   : > { %v1886_v59 = vsub.f32 %v1803_v8, %v403_v55  ;;  %v447_v60 = vmul.f32 %v1880_v57, %v1880_v57 }
  0x96   : > { %v443_v61 = vmul.f32 %v1883_v58, %v1883_v58 }
  0x97   : > { %v435_v62 = vmul.f32 %v1886_v59, %v1886_v59  ;;  %v489_v0 = vsel %vm346_vm0, %v447_v60, 0.0 }
  0x98   : > { %v477_v1 = vsel %vm346_vm0, %v443_v61, 0.0  ;;  %v364_v5 = vpop.xlane.xlu1 %363 }
  0x99   : > { %v361_v3 = vpop.xlane.xlu0 %360  ;;  %490 = vadd.xlane.f32.xlu1 %v489_v0  ;;  %478 = vadd.xlane.f32.xlu2 %v477_v1  ;;  %v453_v4 = vsel %vm346_vm0, %v435_v62, 0.0  ;;  %v407_v8 = vmul.f32 %v1861_v38, %v364_v5 }
  0x9a   : > { %v406_v6 = vmul.f32 %v1861_v38, %v361_v3  ;;  %454 = vadd.xlane.f32.xlu0 %v453_v4  ;;  %v379_v7 = vpop.xlane.xlu2 %378 }
  0x9b   : > { %v412_v9 = vmul.f32 %v1861_v38, %v379_v7  ;;  %v1912_v15 = vsub.f32 %v1815_v13, %v407_v8 }
  0x9c   : > { %v1904_v2 = vsub.f32 %v1812_v12, %v406_v6  ;;  %v450_v12 = vsel %vm346_vm0, %v434_v10, 0.0  ;;  %v1710_v10 = vmov 0  }
  0x9d   : > { %v1909_v11 = vsub.f32 %v1818_v14, %v412_v9  ;;  %v439_v29 = vmul.f32 %v1912_v15, %v1912_v15  ;;  %1567 = vset.pattern.permute.xlu1 %v1710_v10  ;;  %1565 = vset.pattern.permute.xlu2 %v1710_v10 }
  0x9e   : > { %v438_v16 = vmul.f32 %v1904_v2, %v1904_v2  ;;  %1566 = vset.pattern.permute.xlu0 %v1710_v10 }
  0x9f   : > { %v444_v17 = vmul.f32 %v1909_v11, %v1909_v11  ;;  %v465_v36 = vsel %vm346_vm0, %v439_v29, 0.0 }
  0xa0   : > { %v462_v21 = vsel %vm346_vm0, %v438_v16, 0.0  ;;  %v391_v14 = vpop.xlane.xlu1 %390  ;;  %v839_v16 = vld [vmem:[%s1980_s13 + $0x10] sm:$0xff] }
  0xa1   : > { %v382_v22 = vpop.xlane.xlu0 %381  ;;  %463 = vadd.xlane.f32.xlu1 %v462_v21  ;;  %451 = vadd.xlane.f32.xlu2 %v450_v12  ;;  %v480_v23 = vsel %vm346_vm0, %v444_v17, 0.0  ;;  %v416_v28 = vmul.f32 %v1861_v38, %v391_v14  ;;  %v1518_v21 = vld [vmem:[%s2844_s4] sm:$0xff] }
  0xa2   : > { %v413_v27 = vmul.f32 %v1861_v38, %v382_v22  ;;  %481 = vadd.xlane.f32.xlu0 %v480_v23  ;;  %v394_v13 = vpop.xlane.xlu2 %393  ;;  %1520 = vmatpush.bf16.msra.mxu2 %v1518_v21 }
  0xa3   : > { %v417_v31 = vmul.f32 %v1861_v38, %v394_v13  ;;  %v1933_v34 = vsub.f32 %v1830_v19, %v416_v28  ;;  %1521 = vmatpush.bf16.msra.mxu3 %v1518_v21  ;;  %795 = vmatpush.bf16.msra.mxu0 %v1518_v21 }
  0xa4   : > { %v1927_v32 = vsub.f32 %v1827_v18, %v413_v27  ;;  %1519 = vmatpush.bf16.msra.mxu1 %v1518_v21 }
  0xa5   : > { %v1930_v33 = vsub.f32 %v1833_v20, %v417_v31  ;;  %v448_v43 = vmul.f32 %v1933_v34, %v1933_v34 }
  0xa6   : > { %v445_v35 = vmul.f32 %v1927_v32, %v1927_v32 }
  0xa7   : > { %v449_v37 = vmul.f32 %v1930_v33, %v1930_v33  ;;  %v492_v51 = vsel %vm346_vm0, %v448_v43, 0.0 }
  0xa8   : > { %v483_v39 = vsel %vm346_vm0, %v445_v35, 0.0  ;;  %v358_v20 = vpop.xlane.xlu1 %357 }
  0xa9   : > { %484 = vadd.xlane.f32.xlu1 %v483_v39  ;;  %v355_v40 = vpop.xlane.xlu0 %354  ;;  %466 = vadd.xlane.f32.xlu2 %v465_v36  ;;  %v495_v18 = vsel %vm346_vm0, %v449_v37, 0.0  ;;  %v405_v42 = vmul.f32 %v1861_v38, %v358_v20 }
  0xaa   : > { %v404_v41 = vmul.f32 %v1861_v38, %v355_v40  ;;  %496 = vadd.xlane.f32.xlu0 %v495_v18  ;;  %v367_v19 = vpop.xlane.xlu2 %366 }
  0xab   : > { %v408_v46 = vmul.f32 %v1861_v38, %v367_v19  ;;  %v1954_v49 = vsub.f32 %v1845_v25, %v405_v42 }
  0xac   : > { %v1948_v47 = vsub.f32 %v1842_v24, %v404_v41 }
  0xad   : > { %v1951_v48 = vsub.f32 %v1848_v26, %v408_v46  ;;  %v437_v25 = vmul.f32 %v1954_v49, %v1954_v49 }
  0xae   : > { %v436_v50 = vmul.f32 %v1948_v47, %v1948_v47 }
  0xaf   : > { %v440_v52 = vmul.f32 %v1951_v48, %v1951_v48  ;;  %v459_v60 = vsel %vm346_vm0, %v437_v25, 0.0 }
  0xb0   : > { %v456_v53 = vsel %vm346_vm0, %v436_v50, 0.0 }
  0xb1   : > { %457 = vadd.xlane.f32.xlu1 %v456_v53  ;;  %v370_v54 = vpop.xlane.xlu0 %369  ;;  %493 = vadd.xlane.f32.xlu2 %v492_v51  ;;  %v468_v24 = vsel %vm346_vm0, %v440_v52, 0.0 }
  0xb2   : > { %v409_v26 = vmul.f32 %v1861_v38, %v370_v54  ;;  %469 = vadd.xlane.f32.xlu0 %v468_v24 }
  0xb4   : > { %v1967_v55 = vsub.f32 %v1857_v30, %v409_v26 }
  0xb6   : > { %v441_v56 = vmul.f32 %v1967_v55, %v1967_v55 }
  0xb8   : > { %v471_v61 = vsel %vm346_vm0, %v441_v56, 0.0 }
  0xb9   : > { %472 = vadd.xlane.f32.xlu1 %v471_v61  ;;  %460 = vadd.xlane.f32.xlu2 %v459_v60 }
  0xd2   : > { %865 = vperm.xlu1 %1567, %v839_v16  }
 0x103   : > { %v488_v0 = vpop.xlane.xlu0 %487 }
 0x104   : > { %v476_v62 = vpop.xlane.xlu1 %475  ;;  %v510_v3 = vmul.f32 %v488_v0, %v1861_v38 }
 0x105   : > { %v506_v1 = vmul.f32 %v476_v62, %v1861_v38 }
 0x106   : > { %v526_v5 = vadd.f32 1e-05, %v510_v3 }
 0x107   : > { %v522_v4 = vadd.f32 1e-05, %v506_v1 }
 0x108   : > { %vm656_vm6 = vweird.f32 %v526_v5 }
 0x109   : > { %1573 = vrsqrt.f32 %v522_v4  ;;  %vm616_vm4 = vweird.f32 %v522_v4 }
 0x10a   : > { %1575 = vrsqrt.f32 %v526_v5 }
 0x10c   : > { %v491_v30 = vpop.xlane.xlu1 %490  ;;  %v479_v6 = vpop.xlane.xlu2 %478 }
 0x10d   : > { %v511_v7 = vmul.f32 %v491_v30, %v1861_v38  ;;  %v455_v8 = vpop.xlane.xlu0 %454  ;;  %v507_v9 = vmul.f32 %v479_v6, %v1861_v38 }
 0x10e   : > { %v499_v17 = vmul.f32 %v455_v8, %v1861_v38 }
 0x10f   : > { %v1989_v12 = vpop.eup %1573  ;;  %v1991_v22 = vadd.f32 1e-05, %v511_v7  ;;  %v1993_v23 = vadd.f32 1e-05, %v507_v9 }
 0x110   : > { %v1995_v14 = vpop.eup %1575  ;;  %v611_v27 = vmul.f32 %v1989_v12, %v522_v4  ;;  %v1998_v13 = vadd.f32 1e-05, %v499_v17  ;;  %vm617_vm2 = vweird.f32 %v1989_v12 }
 0x111   : > { %v651_v28 = vmul.f32 %v1995_v14, %v526_v5  ;;  %1577 = vrsqrt.f32 %v1991_v22  ;;  %vm657_vm3 = vweird.f32 %v1995_v14  ;;  %vm2032_vm5 = vmor %vm616_vm4, %vm617_vm2  ;;  %vm666_vm8 = vweird.f32 %v1991_v22 }
 0x112   : > { %v612_v29 = vmul.f32 %v1989_v12, %v611_v27  ;;  %1579 = vrsqrt.f32 %v1998_v13  ;;  %vm2039_vm7 = vmor %vm656_vm6, %vm657_vm3  ;;  %v842_v27 = vld [vmem:[%s1980_s13 + $0x28] sm:$0xff]  ;;  %vm546_vm9 = vweird.f32 %v1998_v13  ;;  %vm626_vm11 = vweird.f32 %v1993_v23 }
 0x113   : > { %v652_v31 = vmul.f32 %v1995_v14, %v651_v28  ;;  %1581 = vrsqrt.f32 %v1993_v23  ;;  %v837_v28 = vld [vmem:[%s1980_s13] sm:$0xff]  ;;  %880 = vperm.xlu1 %1567, %v842_v27  }
 0x114   : > { %v613_v35 = vmul.f32 0.5, %v612_v29  ;;  %v464_v36 = vpop.xlane.xlu1 %463  ;;  %v452_v37 = vpop.xlane.xlu2 %451  ;;  %855 = vperm.xlu2 %1565, %v837_v28  }
 0x115   : > { %v653_v39 = vmul.f32 0.5, %v652_v31  ;;  %v502_v40 = vmul.f32 %v464_v36, %v1861_v38  ;;  %v482_v18 = vpop.xlane.xlu0 %481  ;;  %v498_v20 = vmul.f32 %v452_v37, %v1861_v38  ;;  %v2070_v37 = vld [vmem:[%s2842_s2] ss:$0 sm:$0xff] }
 0x116   : > { %v614_v41 = vsub.f32 1.5, %v613_v35  ;;  %v508_v19 = vmul.f32 %v482_v18, %v1861_v38 }
 0x117   : > { %v2009_v42 = vpop.eup %1577  ;;  %v654_v43 = vsub.f32 1.5, %v653_v39  ;;  %v2012_v46 = vadd.f32 1e-05, %v502_v40  ;;  %v2021_v53 = vadd.f32 1e-05, %v498_v20 }
 0x118   : > { %v2014_v50 = vpop.eup %1579  ;;  %v661_v51 = vmul.f32 %v2009_v42, %v1991_v22  ;;  %v2019_v52 = vadd.f32 1e-05, %v508_v19  ;;  %v615_v24 = vmul.f32 %v1989_v12, %v614_v41  ;;  %vm667_vm12 = vweird.f32 %v2009_v42 }
 0x119   : > { %v1582_v54 = vpop.eup %1581  ;;  %v655_v26 = vmul.f32 %v1995_v14, %v654_v43  ;;  %v541_v25 = vmul.f32 %v2014_v50, %v1998_v13  ;;  %1583 = vrsqrt.f32 %v2012_v46  ;;  %vm547_vm14 = vweird.f32 %v2014_v50  ;;  %vm2104_vm2 = vmor %vm666_vm8, %vm667_vm12 }
 0x11a   : > { %v662_v56 = vmul.f32 %v2009_v42, %v661_v51  ;;  %v621_v60 = vmul.f32 %v1582_v54, %v1993_v23  ;;  %1585 = vrsqrt.f32 %v2019_v52  ;;  %v619_v5 = vsel %vm2032_vm5, %v1989_v12, %v615_v24  ;;  %vm2126_vm5 = vmor %vm546_vm9, %vm547_vm14 }
 0x11b   : > { %v542_v62 = vmul.f32 %v2014_v50, %v541_v25  ;;  %v659_v6 = vsel %vm2039_vm7, %v1995_v14, %v655_v26  ;;  %1587 = vrsqrt.f32 %v2021_v53  ;;  %vm627_vm10 = vweird.f32 %v1582_v54 }
 0x11c   : > { %v663_v1 = vmul.f32 0.5, %v662_v56  ;;  %v622_v3 = vmul.f32 %v1582_v54, %v621_v60  ;;  %v485_v4 = vpop.xlane.xlu1 %484  ;;  %v467_v30 = vpop.xlane.xlu2 %466  ;;  %v698_v31 = vmul.f32 %v619_v5, %v1867_v45  ;;  %v702_v35 = vmul.f32 %v659_v6, %v1865_v44  ;;  %vm628_vm13 = vmor %vm626_vm11, %vm627_vm10 }
 0x11d   : > { %v497_v7 = vpop.xlane.xlu0 %496  ;;  %v543_v8 = vmul.f32 0.5, %v542_v62  ;;  %v509_v10 = vmul.f32 %v485_v4, %v1861_v38  ;;  %v503_v12 = vmul.f32 %v467_v30, %v1861_v38  ;;  %vm576_vm15 = vweird.f32 %v2012_v46 }
 0x11e   : > { %v623_v9 = vmul.f32 0.5, %v622_v3  ;;  %v513_v16 = vmul.f32 %v497_v7, %v1861_v38  ;;  %v664_v21 = vsub.f32 1.5, %v663_v1  ;;  %vm636_vm1 = vweird.f32 %v2019_v52 }
 0x11f   : > { %v2053_v17 = vpop.eup %1583  ;;  %v2065_v36 = vadd.f32 1e-05, %v509_v10  ;;  %v544_v40 = vsub.f32 1.5, %v543_v8  ;;  %v2084_v19 = vadd.f32 1e-05, %v503_v12  ;;  %v717_v61 = vmul.f32 %v2070_v37, %v698_v31  ;;  %v840_v31 = vld [vmem:[%s1980_s13 + $0x18] sm:$0xff] }
 0x120   : > { %v624_v14 = vsub.f32 1.5, %v623_v9  ;;  %v571_v29 = vmul.f32 %v2053_v17, %v2012_v46  ;;  %v2072_v39 = vpop.eup %1585  ;;  %v2075_v41 = vadd.f32 1e-05, %v513_v16  ;;  %v665_v44 = vmul.f32 %v2009_v42, %v664_v21  ;;  %870 = vperm.xlu2 %1565, %v840_v31  }
 0x121   : > { %v2077_v45 = vpop.eup %1587  ;;  %v631_v23 = vmul.f32 %v2072_v39, %v2019_v52  ;;  %1589 = vrsqrt.f32 %v2065_v36  ;;  %v2109_v62 = vmul.f32 %v2014_v50, %v544_v40  ;;  %vm536_vm3 = vweird.f32 %v2021_v53 }
 0x122   : > { %v625_v18 = vmul.f32 %v1582_v54, %v624_v14  ;;  %v572_v20 = vmul.f32 %v2053_v17, %v571_v29  ;;  %v531_v24 = vmul.f32 %v2077_v45, %v2021_v53  ;;  %1591 = vrsqrt.f32 %v2075_v41 }
 0x123   : > { %v632_v25 = vmul.f32 %v2072_v39, %v631_v23  ;;  %v721_v3 = vmul.f32 %v2070_v37, %v702_v35  ;;  %v669_v22 = vsel %vm2104_vm2, %v2009_v42, %v665_v44  ;;  %1593 = vrsqrt.f32 %v2084_v19  ;;  %v838_v35 = vld [vmem:[%s1980_s13 + $0x8] sm:$0xff] }
 0x124   : > { %v629_v43 = vsel %vm628_vm13, %v1582_v54, %v625_v18  ;;  %v573_v51 = vmul.f32 0.5, %v572_v20  ;;  %v458_v56 = vpop.xlane.xlu1 %457  ;;  %v2098_v54 = vld [vmem:[%s2843_s3] ss:$0 sm:$0xff]  ;;  %v532_v0 = vmul.f32 %v2077_v45, %v531_v24  ;;  %v494_v1 = vpop.xlane.xlu2 %493  ;;  %vm577_vm4 = vweird.f32 %v2053_v17  ;;  %860 = vperm.xlu0 %1566, %v838_v35  }
 0x125   : > { %v699_v26 = vmul.f32 %v629_v43, %v1883_v58  ;;  %v470_v60 = vpop.xlane.xlu0 %469  ;;  %v633_v30 = vmul.f32 0.5, %v632_v25  ;;  %v500_v6 = vmul.f32 %v458_v56, %v1861_v38  ;;  %v512_v9 = vmul.f32 %v494_v1, %v1861_v38  ;;  %vm2173_vm9 = vmor %vm576_vm15, %vm577_vm4 }
 0x126   : > { %v574_v4 = vsub.f32 1.5, %v573_v51  ;;  %v533_v5 = vmul.f32 0.5, %v532_v0  ;;  %v504_v7 = vmul.f32 %v470_v60, %v1861_v38  ;;  %v736_v16 = vadd.f32 %v2098_v54, %v717_v61 }
 0x127   : > { %v634_v42 = vsub.f32 1.5, %v633_v30  ;;  %v718_v10 = vmul.f32 %v2070_v37, %v699_v26  ;;  %v703_v21 = vmul.f32 %v669_v22, %v1880_v57  ;;  %v549_v13 = vsel %vm2126_vm5, %v2014_v50, %v2109_v62  ;;  %v2140_v28 = vpop.eup %1589  ;;  %v844_v57 = vld [vmem:[%s1980_s13 + $0x38] sm:$0xff] }
 0x128   : > { %v534_v12 = vsub.f32 1.5, %v533_v5  ;;  %v2138_v27 = vadd.f32 1e-05, %v500_v6  ;;  %v2143_v14 = vmul.f32 %v2053_v17, %v574_v4  ;;  %vm637_vm6 = vweird.f32 %v2072_v39  ;;  %v2152_v40 = vpop.eup %1591  ;;  %890 = vperm.xlu1 %1567, %v844_v57  }
 0x129   : > { %vm537_vm7 = vweird.f32 %v2077_v45  ;;  %v2147_v29 = vadd.f32 1e-05, %v504_v7  ;;  %v641_v20 = vmul.f32 %v2140_v28, %v2065_v36  ;;  %v2158_v44 = vadd.f32 1e-05, %v512_v9  ;;  %v2160_v23 = vpop.eup %1593  ;;  %vm2202_vm14 = vmor %vm636_vm1, %vm637_vm6  ;;  %v847_v7 = vld [vmem:[%s1980_s13 + $0x50] sm:$0xff] }
 0x12a   : > { %v535_v18 = vmul.f32 %v2077_v45, %v534_v12  ;;  %1595 = vrsqrt.f32 %v2138_v27  ;;  %v2163_v43 = vmul.f32 %v2072_v39, %v634_v42  ;;  %vm646_vm8 = vweird.f32 %v2065_v36  ;;  %vm2191_vm12 = vmor %vm536_vm3, %vm537_vm7  ;;  %v841_v42 = vld [vmem:[%s1980_s13 + $0x20] sm:$0xff] }
 0x12b   : > { %v681_v51 = vmul.f32 %v2152_v40, %v2075_v41  ;;  %v737_v24 = vadd.f32 %v2098_v54, %v718_v10  ;;  %v642_v25 = vmul.f32 %v2140_v28, %v641_v20  ;;  %vm686_vm10 = vweird.f32 %v2075_v41  ;;  %875 = vperm.xlu2 %1565, %v841_v42   ;;  %v848_v41 = vld [vmem:[%s1980_s13 + $0x58] sm:$0xff] }
 0x12c   : > { %v581_v56 = vmul.f32 %v2160_v23, %v2084_v19  ;;  %vm586_vm11 = vweird.f32 %v2084_v19  ;;  %v722_v60 = vmul.f32 %v2070_v37, %v703_v21  ;;  %v579_v46 = vsel %vm2173_vm9, %v2053_v17, %v2143_v14  ;;  %v473_v0 = vpop.xlane.xlu1 %472  ;;  %v461_v4 = vpop.xlane.xlu2 %460  ;;  %v845_v14 = vld [vmem:[%s1980_s13 + $0x40] sm:$0xff] }
 0x12d   : > { %vm647_vm13 = vweird.f32 %v2140_v28  ;;  %v682_v58 = vmul.f32 %v2152_v40, %v681_v51  ;;  %1597 = vrsqrt.f32 %v2147_v29  ;;  %v539_v53 = vsel %vm2191_vm12, %v2077_v45, %v535_v18  ;;  %895 = vperm.xlu0 %1566, %v845_v14  }
 0x12e   : > { %v643_v1 = vmul.f32 0.5, %v642_v25  ;;  %v582_v22 = vmul.f32 %v2160_v23, %v581_v56  ;;  %1599 = vrsqrt.f32 %v2158_v44  ;;  %v639_v52 = vsel %vm2202_vm14, %v2072_v39, %v2163_v43  ;;  %vm2236_vm1 = vmor %vm646_vm8, %vm647_vm13 }
 0x12f   : > { %v683_v30 = vmul.f32 0.5, %v682_v58  ;;  %v748_v5 = vpack.c.bf16 %v737_v24, %v736_v16  ;;  %v740_v6 = vadd.f32 %v2098_v54, %v721_v3  ;;  %v741_v21 = vadd.f32 %v2098_v54, %v722_v60 }
 0x130   : > { %v2218_v9 = vpop.eup %1595  ;;  %v644_v45 = vsub.f32 1.5, %v643_v1  ;;  %v583_v10 = vmul.f32 0.5, %v582_v22  ;;  %v505_v12 = vmul.f32 %v473_v0, %v1861_v38  ;;  %v690_v57 = vmul.f32 %v539_v53, %v1895_v63  ;;  %905 = vperm.xlu1 %1567, %v847_v7  }
 0x131   : > { %v684_v31 = vsub.f32 1.5, %v683_v30  ;;  %v551_v39 = vmul.f32 %v2218_v9, %v2138_v27  ;;  %1496 = vmatmul.msk.bf16.vlgmr.msra.gmra.mxu2 %vm346_vm0, %v748_v5  ;;  %v501_v3 = vmul.f32 %v461_v4, %v1861_v38  ;;  %vm587_vm15 = vweird.f32 %v2160_v23 }
 0x132   : > { %v645_v16 = vmul.f32 %v2140_v28, %v644_v45  ;;  %v584_v35 = vsub.f32 1.5, %v583_v10  ;;  %v750_v18 = vpack.c.bf16 %v741_v21, %v740_v6  ;;  %vm687_vm2 = vweird.f32 %v2152_v40  ;;  %vm588_vm3 = vmor %vm586_vm11, %vm587_vm15 }
 0x133   : > { %v2230_v20 = vpop.eup %1597  ;;  %v685_v38 = vmul.f32 %v2152_v40, %v684_v31  ;;  %v552_v43 = vmul.f32 %v2218_v9, %v551_v39  ;;  %v2243_v51 = vadd.f32 1e-05, %v505_v12  ;;  %v2254_v56 = vadd.f32 1e-05, %v501_v3  ;;  %vm2278_vm4 = vmor %vm686_vm10, %vm687_vm2 }
 0x134   : > { %v2245_v24 = vpop.eup %1599  ;;  %v649_v26 = vsel %vm2236_vm1, %v2140_v28, %v645_v16  ;;  %v585_v36 = vmul.f32 %v2160_v23, %v584_v35  ;;  %v591_v25 = vmul.f32 %v2230_v20, %v2147_v29  ;;  %1498 = vmatmul.msk.bf16.vlgmr.msra.gmra.mxu3 %vm346_vm0, %v750_v18  ;;  %v691_v60 = vmul.f32 %v549_v13, %v1886_v59  ;;  %v846_v18 = vld [vmem:[%s1980_s13 + $0x48] sm:$0xff] }
 0x135   : > { %v694_v28 = vmul.f32 %v579_v46, %v1904_v2  ;;  %v671_v61 = vmul.f32 %v2245_v24, %v2158_v44  ;;  %v709_v58 = vmul.f32 %v2070_v37, %v690_v57  ;;  %v700_v8 = vmul.f32 %v639_v52, %v1909_v11  ;;  %v850_v11 = vld [vmem:[%s1980_s13 + $0x68] sm:$0xff]  ;;  %910 = vperm.xlu0 %1566, %v848_v41  }
 0x136   : > { %v701_v0 = vmul.f32 %v649_v26, %v1927_v32  ;;  %v589_v50 = vsel %vm588_vm3, %v2160_v23, %v585_v36  ;;  %v592_v59 = vmul.f32 %v2230_v20, %v591_v25  ;;  %v553_v62 = vmul.f32 0.5, %v552_v43  ;;  %v843_v32 = vld [vmem:[%s1980_s13 + $0x30] sm:$0xff] }
 0x137   : > { %v695_v19 = vmul.f32 %v589_v50, %v1912_v15  ;;  %v672_v13 = vmul.f32 %v2245_v24, %v671_v61  ;;  %1601 = vrsqrt.f32 %v2243_v51  ;;  %v689_v23 = vsel %vm2278_vm4, %v2152_v40, %v685_v38  ;;  %885 = vperm.xlu2 %1565, %v843_v32   ;;  %v851_v36 = vld [vmem:[%s1980_s13 + $0x70] sm:$0xff] }
 0x138   : > { %v593_v46 = vmul.f32 0.5, %v592_v59  ;;  %vm596_vm5 = vweird.f32 %v2147_v29  ;;  %1603 = vrsqrt.f32 %v2254_v56  ;;  %vm677_vm6 = vweird.f32 %v2245_v24  ;;  %920 = vperm.xlu1 %1567, %v850_v11  }
 0x139   : > { %v673_v17 = vmul.f32 0.5, %v672_v13  ;;  %v710_v15 = vmul.f32 %v2070_v37, %v691_v60  ;;  %v728_v53 = vadd.f32 %v2098_v54, %v709_v58  ;;  %v713_v22 = vmul.f32 %v2070_v37, %v694_v28 }
 0x13a   : > { %v594_v1 = vsub.f32 1.5, %v593_v46  ;;  %v714_v4 = vmul.f32 %v2070_v37, %v695_v19  ;;  %v719_v40 = vmul.f32 %v2070_v37, %v700_v8  ;;  %v554_v52 = vsub.f32 1.5, %v553_v62  ;;  %v849_v19 = vld [vmem:[%s1980_s13 + $0x60] sm:$0xff] }
 0x13b   : > { %v674_v30 = vsub.f32 1.5, %v673_v17  ;;  %v729_v5 = vadd.f32 %v2098_v54, %v710_v15  ;;  %v720_v6 = vmul.f32 %v2070_v37, %v701_v0  ;;  %v705_v7 = vmul.f32 %v689_v23, %v1930_v33  ;;  %v852_v15 = vld [vmem:[%s1980_s13 + $0x78] sm:$0xff] }
 0x13c   : > { %vm676_vm7 = vweird.f32 %v2158_v44  ;;  %v732_v42 = vadd.f32 %v2098_v54, %v713_v22  ;;  %v733_v45 = vadd.f32 %v2098_v54, %v714_v4  ;;  %vm597_vm8 = vweird.f32 %v2230_v20 }
 0x13d   : > { %v1602_v10 = vpop.eup %1601  ;;  %v675_v21 = vmul.f32 %v2245_v24, %v674_v30  ;;  %v744_v12 = vpack.c.bf16 %v729_v5, %v728_v53  ;;  %v739_v14 = vadd.f32 %v2098_v54, %v720_v6  ;;  %v595_v31 = vmul.f32 %v2230_v20, %v594_v1  ;;  %vm678_vm9 = vmor %vm676_vm7, %vm677_vm6  ;;  %925 = vperm.xlu0 %1566, %v851_v36  }
 0x13e   : > { %v1604_v57 = vpop.eup %1603  ;;  %v601_v33 = vmul.f32 %v1602_v10, %v2243_v51  ;;  %v746_v44 = vpack.c.bf16 %v733_v45, %v732_v42  ;;  %v738_v39 = vadd.f32 %v2098_v54, %v719_v40  ;;  %v555_v3 = vmul.f32 %v2218_v9, %v554_v52  ;;  %vm598_vm12 = vmor %vm596_vm5, %vm597_vm8 }
 0x13f   : > { %vm557_vm10 = vweird.f32 %v2218_v9  ;;  %v679_v16 = vsel %vm678_vm9, %v2245_v24, %v675_v21  ;;  %v561_v35 = vmul.f32 %v1604_v57, %v2254_v56  ;;  %1492 = vmatmul.msk.bf16.vlgmr.msra.gmra.mxu0 %vm346_vm0, %v744_v12  ;;  %v724_v26 = vmul.f32 %v2070_v37, %v705_v7  ;;  %900 = vperm.xlu2 %1565, %v846_v18  }
 0x140   : > { %v704_v63 = vmul.f32 %v679_v16, %v1933_v34  ;;  %v602_v38 = vmul.f32 %v1602_v10, %v601_v33  ;;  %1494 = vmatmul.msk.bf16.vlgmr.msra.gmra.mxu1 %vm346_vm0, %v746_v44  ;;  %v749_v43 = vpack.c.bf16 %v739_v14, %v738_v39  ;;  %vm556_vm11 = vweird.f32 %v2138_v27 }
 0x141   : > { %v562_v24 = vmul.f32 %v1604_v57, %v561_v35  ;;  %vm2328_vm13 = vmor %vm556_vm11, %vm557_vm10  ;;  %v599_v34 = vsel %vm598_vm12, %v2230_v20, %v595_v31  ;;  %vm607_vm14 = vweird.f32 %v1602_v10  ;;  %v743_v8 = vadd.f32 %v2098_v54, %v724_v26 }
 0x142   : > { %v603_v60 = vmul.f32 0.5, %v602_v38  ;;  %1497 = vmatmul.msk.bf16.gmra.mxu2 %vm346_vm0, %v749_v43  ;;  %v723_v28 = vmul.f32 %v2070_v37, %v704_v63  ;;  %v559_v27 = vsel %vm2328_vm13, %v2218_v9, %v555_v3  ;;  %v696_v20 = vmul.f32 %v599_v34, %v1951_v48 }
 0x143   : > { %v563_v61 = vmul.f32 0.5, %v562_v24  ;;  %vm567_vm15 = vweird.f32 %v1604_v57  ;;  %v692_v50 = vmul.f32 %v559_v27, %v1948_v47  ;;  %vm606_vm1 = vweird.f32 %v2243_v51 }
 0x144   : > { %v604_v29 = vsub.f32 1.5, %v603_v60  ;;  %v742_v58 = vadd.f32 %v2098_v54, %v723_v28  ;;  %vm608_vm2 = vmor %vm606_vm1, %vm607_vm14  ;;  %vm566_vm3 = vweird.f32 %v2254_v56  ;;  %v715_v11 = vmul.f32 %v2070_v37, %v696_v20 }
 0x145   : > { %v564_v0 = vsub.f32 1.5, %v563_v61  ;;  %vm568_vm4 = vmor %vm566_vm3, %vm567_vm15  ;;  %v711_v51 = vmul.f32 %v2070_v37, %v692_v50 }
 0x146   : > { %v605_v59 = vmul.f32 %v1602_v10, %v604_v29  ;;  %v751_v2 = vpack.c.bf16 %v743_v8, %v742_v58  ;;  %v734_v23 = vadd.f32 %v2098_v54, %v715_v11 }
 0x147   : > { %v565_v9 = vmul.f32 %v1604_v57, %v564_v0  ;;  %915 = vperm.xlu2 %1565, %v849_v19   ;;  %v730_v41 = vadd.f32 %v2098_v54, %v711_v51 }
 0x148   : > { %v609_v62 = vsel %vm608_vm2, %v1602_v10, %v605_v59  ;;  %1499 = vmatmul.msk.bf16.gmra.mxu3 %vm346_vm0, %v751_v2 }
 0x149   : > { %v697_v48 = vmul.f32 %v609_v62, %v1967_v55  ;;  %v569_v13 = vsel %vm568_vm4, %v1604_v57, %v565_v9 }
 0x14a   : > { %v693_v47 = vmul.f32 %v569_v13, %v1954_v49  ;;  %v2362_v49 = vld [vmem:[%s2845_s5] ss:$0 sm:$0xff] }
 0x14b   : > { %v716_v32 = vmul.f32 %v2070_v37, %v697_v48 }
 0x14c   : > { %v712_v56 = vmul.f32 %v2070_v37, %v693_v47 }
 0x14d   : > { %v735_v46 = vadd.f32 %v2098_v54, %v716_v32 }
 0x14e   : > { %v731_v55 = vadd.f32 %v2098_v54, %v712_v56 }
 0x14f   : > { %v747_v17 = vpack.c.bf16 %v735_v46, %v734_v23  ;;  %930 = vperm.xlu2 %1565, %v852_v15  }
 0x150   : > { %v745_v53 = vpack.c.bf16 %v731_v55, %v730_v41 }
 0x151   : > { %1495 = vmatmul.msk.bf16.gmra.mxu1 %vm346_vm0, %v747_v17 }
 0x152   : > { %1493 = vmatmul.msk.bf16.gmra.mxu0 %vm346_vm0, %v745_v53 }
 0x1b4   : > { %v817_v37 = vpop.f32.mrf.mxu2 }
 0x1b5   : > { %v2365_v1 = vadd.f32 %v2362_v49, %v817_v37 }
 0x1b7   : > { %v1508_v22 = vmul.f32 -1.442695, %v2365_v1  ;;  %v827_v54 = vpop.f32.mrf.mxu3 }
 0x1b8   : > { %v2369_v4 = vadd.f32 %v2362_v49, %v827_v54 }
 0x1b9   : > { %1605 = vpow2.f32 %v1508_v22 }
 0x1ba   : > { %v1512_v40 = vmul.f32 -1.442695, %v2369_v4 }
 0x1bc   : > { %1607 = vpow2.f32 %v1512_v40  ;;  %v797_v52 = vpop.f32.mrf.mxu0  ;;  %v819_v30 = vpop.f32.mrf.mxu2 }
 0x1bd   : > { %v2373_v5 = vadd.f32 %v2362_v49, %v797_v52  ;;  %v2376_v6 = vadd.f32 %v2362_v49, %v819_v30  ;;  %v807_v7 = vpop.f32.mrf.mxu1 }
 0x1be   : > { %v2379_v42 = vadd.f32 %v2362_v49, %v807_v7 }
 0x1bf   : > { %v1606_v45 = vpop.eup %1605  ;;  %v1500_v10 = vmul.f32 -1.442695, %v2373_v5  ;;  %v1509_v21 = vmul.f32 -1.442695, %v2376_v6  ;;  %v829_v12 = vpop.f32.mrf.mxu3 }
 0x1c0   : > { %v2383_v14 = vadd.f32 1.0, %v1606_v45  ;;  %v2386_v57 = vadd.f32 %v2362_v49, %v829_v12  ;;  %v1504_v44 = vmul.f32 -1.442695, %v2379_v42 }
 0x1c1   : > { %1609 = vpow2.f32 %v1500_v10 }
 0x1c2   : > { %v1608_v31 = vpop.eup %1607  ;;  %1611 = vrcp.f32 %v2383_v14  ;;  %v1513_v33 = vmul.f32 -1.442695, %v2386_v57  ;;  %v1142_v63 = vand.u32 2147483647, %v2383_v14  ;;  %v1144_v26 = vand.u32 2147483648, %v2383_v14 }
 0x1c3   : > { %v2391_v39 = vadd.f32 1.0, %v1608_v31  ;;  %1613 = vpow2.f32 %v1509_v21  ;;  %vm1138_vm0 = vweird.f32 %v2383_v14 }
 0x1c4   : > { %1615 = vpow2.f32 %v1513_v33  ;;  %v799_v3 = vpop.f32.mrf.mxu0  ;;  %vm2413_vm5 = vcmp.eq.f32.partialorder %v1142_v63, 8.507059e+37  ;;  %v1145_v8 = vor.u32 1.1754944e-38, %v1144_v26 }
 0x1c5   : > { %1617 = vrcp.f32 %v2391_v39  ;;  %v2395_v16 = vadd.f32 %v2362_v49, %v799_v3  ;;  %v822_v35 = vpop.f32.mrf.mxu2  ;;  %v809_v18 = vpop.f32.mrf.mxu1  ;;  %v1202_v59 = vand.u32 2147483647, %v2391_v39  ;;  %v1204_v2 = vand.u32 2147483648, %v2391_v39 }
 0x1c6   : > { %1619 = vpow2.f32 %v1504_v44  ;;  %v2399_v38 = vadd.f32 %v2362_v49, %v822_v35  ;;  %v2402_v43 = vadd.f32 %v2362_v49, %v809_v18  ;;  %vm1198_vm9 = vweird.f32 %v2391_v39 }
 0x1c7   : > { %v1610_v36 = vpop.eup %1609  ;;  %v1501_v24 = vmul.f32 -1.442695, %v2395_v16  ;;  %vm2499_vm14 = vcmp.eq.f32.partialorder %v1202_v59, 8.507059e+37 }
 0x1c8   : > { %v1612_v25 = vpop.eup %1611  ;;  %v2406_v34 = vadd.f32 1.0, %v1610_v36  ;;  %v1510_v60 = vmul.f32 -1.442695, %v2399_v38  ;;  %v1505_v29 = vmul.f32 -1.442695, %v2402_v43 }
 0x1c9   : > { %v1614_v28 = vpop.eup %1613  ;;  %1621 = vpow2.f32 %v1501_v24  ;;  %v1134_v27 = vmul.f32 %v1612_v25, %v2383_v14  ;;  %vm1139_vm6 = vweird.f32 %v1612_v25 }
 0x1ca   : > { %v1616_v61 = vpop.eup %1615  ;;  %1623 = vrcp.f32 %v2406_v34  ;;  %v2421_v19 = vadd.f32 1.0, %v1614_v28  ;;  %v1022_v32 = vand.u32 2147483647, %v2406_v34  ;;  %v1024_v41 = vand.u32 2147483648, %v2406_v34  ;;  %vm1140_vm7 = vmor %vm1138_vm0, %vm1139_vm6 }
 0x1cb   : > { %v2417_v20 = vpop.eup %1617  ;;  %v832_v0 = vpop.f32.mrf.mxu3  ;;  %v1135_v50 = vsub.f32 1.0, %v1134_v27  ;;  %1625 = vpow2.f32 %v1510_v60  ;;  %v2428_v13 = vadd.f32 1.0, %v1616_v61  ;;  %vm1018_vm8 = vweird.f32 %v2406_v34 }
 0x1cc   : > { %v1620_v9 = vpop.eup %1619  ;;  %v2424_v62 = vadd.f32 %v2362_v49, %v832_v0  ;;  %v1194_v48 = vmul.f32 %v2417_v20, %v2391_v39  ;;  %1627 = vpow2.f32 %v1505_v29  ;;  %vm2461_vm10 = vcmp.eq.f32.partialorder %v1022_v32, 8.507059e+37 }
 0x1cd   : > { %v2430_v11 = vadd.f32 1.0, %v1620_v9  ;;  %v824_v47 = vpop.f32.mrf.mxu2  ;;  %v1136_v51 = vmul.f32 %v1612_v25, %v1135_v50  ;;  %v1025_v18 = vor.u32 1.1754944e-38, %v1024_v41  ;;  %vm1199_vm12 = vweird.f32 %v2417_v20 }
 0x1ce   : > { %v2434_v56 = vadd.f32 %v2362_v49, %v824_v47  ;;  %v1514_v23 = vmul.f32 -1.442695, %v2424_v62  ;;  %v812_v46 = vpop.f32.mrf.mxu1  ;;  %v1195_v37 = vsub.f32 1.0, %v1194_v48  ;;  %vm2519_vm1 = vmor %vm1198_vm9, %vm1199_vm12 }
 0x1cf   : > { %v1622_v55 = vpop.eup %1621  ;;  %1629 = vrcp.f32 %v2430_v11  ;;  %v802_v17 = vpop.f32.mrf.mxu0  ;;  %v2440_v15 = vadd.f32 %v2362_v49, %v812_v46  ;;  %v1137_v53 = vadd.f32 %v1612_v25, %v1136_v51  ;;  %vm1078_vm15 = vweird.f32 %v2430_v11 }
 0x1d0   : > { %v1624_v22 = vpop.eup %1623  ;;  %v2442_v54 = vadd.f32 1.0, %v1622_v55  ;;  %v1511_v40 = vmul.f32 -1.442695, %v2434_v56  ;;  %1631 = vpow2.f32 %v1514_v23  ;;  %v2446_v52 = vadd.f32 %v2362_v49, %v802_v17 }
 0x1d1   : > { %1633 = vrcp.f32 %v2421_v19  ;;  %v1141_v30 = vsel %vm1140_vm7, %v1612_v25, %v1137_v53  ;;  %v1014_v7 = vmul.f32 %v1624_v22, %v2406_v34  ;;  %v1626_v45 = vpop.eup %1625  ;;  %v1506_v21 = vmul.f32 -1.442695, %v2440_v15 }
 0x1d2   : > { %1635 = vrcp.f32 %v2428_v13  ;;  %v1502_v10 = vmul.f32 -1.442695, %v2446_v52  ;;  %v1146_v12 = vsel %vm2413_vm5, %v1145_v8, %v1141_v30  ;;  %v1196_v44 = vmul.f32 %v2417_v20, %v1195_v37  ;;  %v1628_v3 = vpop.eup %1627 }
 0x1d3   : > { %1637 = vpow2.f32 %v1511_v40  ;;  %1285 = vrot.lane.b32.xlu2 %v1146_v12, %s1711_s22  ;;  %v834_v14 = vpop.f32.mrf.mxu3  ;;  %v1015_v31 = vsub.f32 1.0, %v1014_v7  ;;  %vm1019_vm11 = vweird.f32 %v1624_v22  ;;  %v2472_v26 = vadd.f32 1.0, %v1626_v45 }
 0x1d4   : > { %1639 = vrcp.f32 %v2442_v54  ;;  %v2468_v35 = vadd.f32 %v2362_v49, %v834_v14  ;;  %v2474_v36 = vadd.f32 1.0, %v1628_v3  ;;  %v1197_v0 = vadd.f32 %v2417_v20, %v1196_v44  ;;  %vm1020_vm13 = vmor %vm1018_vm8, %vm1019_vm11 }
 0x1d5   : > { %v2470_v63 = vpop.eup %1629  ;;  %1641 = vpow2.f32 %v1502_v10  ;;  %v1016_v24 = vmul.f32 %v1624_v22, %v1015_v31  ;;  %v1082_v37 = vand.u32 2147483647, %v2430_v11  ;;  %vm1153_vm5 = vweird.f32 %v2421_v19 }
 0x1d6   : > { %v1632_v25 = vpop.eup %1631  ;;  %1643 = vpow2.f32 %v1506_v21  ;;  %v1515_v60 = vmul.f32 -1.442695, %v2468_v35  ;;  %v814_v28 = vpop.f32.mrf.mxu1  ;;  %v1074_v27 = vmul.f32 %v2470_v63, %v2430_v11  ;;  %vm1079_vm2 = vweird.f32 %v2470_v63 }
 0x1d7   : > { %v2480_v61 = vpop.eup %1633  ;;  %1645 = vrcp.f32 %v2474_v36  ;;  %v1017_v29 = vadd.f32 %v1624_v22, %v1016_v24  ;;  %v804_v58 = vpop.f32.mrf.mxu0  ;;  %v2484_v8 = vadd.f32 %v2362_v49, %v814_v28  ;;  %v2489_v9 = vadd.f32 1.0, %v1632_v25  ;;  %vm1080_vm3 = vmor %vm1078_vm15, %vm1079_vm2 }
 0x1d8   : > { %v2487_v50 = vpop.eup %1635  ;;  %1647 = vpow2.f32 %v1515_v60  ;;  %v2495_v48 = vadd.f32 %v2362_v49, %v804_v58  ;;  %v1075_v51 = vsub.f32 1.0, %v1074_v27  ;;  %v1201_v30 = vsel %vm2519_vm1, %v2417_v20, %v1197_v0 }
 0x1d9   : > { %v1638_v32 = vpop.eup %1637  ;;  %1649 = vrcp.f32 %v2472_v26  ;;  %v1021_v23 = vsel %vm1020_vm13, %v1624_v22, %v1017_v29  ;;  %v1507_v46 = vmul.f32 -1.442695, %v2484_v8  ;;  %v1084_v22 = vand.u32 2147483648, %v2430_v11 }
 0x1da   : > { %v2506_v34 = vpop.eup %1639  ;;  %v2508_v41 = vadd.f32 1.0, %v1638_v32  ;;  %v1026_v49 = vsel %vm2461_vm10, %v1025_v18, %v1021_v23  ;;  %v1503_v59 = vmul.f32 -1.442695, %v2495_v48  ;;  %v1076_v55 = vmul.f32 %v2470_v63, %v1075_v51 }
 0x1db   : > { %v1642_v17 = vpop.eup %1641  ;;  %1269 = vrot.lane.b32.xlu1 %v1026_v49, %s1711_s22  ;;  %1651 = vpow2.f32 %v1507_v46  ;;  %v1149_v45 = vmul.f32 %v2480_v61, %v2421_v19  ;;  %v1085_v14 = vor.u32 1.1754944e-38, %v1084_v22  ;;  %vm1083_vm4 = vcmp.eq.f32.partialorder %v1082_v37, 8.507059e+37 }
 0x1dc   : > { %v1644_v40 = vpop.eup %1643  ;;  %1653 = vrcp.f32 %v2489_v9  ;;  %v1077_v7 = vadd.f32 %v2470_v63, %v1076_v55  ;;  %v2535_v21 = vadd.f32 1.0, %v1642_v17  ;;  %v1205_v18 = vor.u32 1.1754944e-38, %v1204_v2 }
 0x1dd   : > { %v2533_v10 = vpop.eup %1645  ;;  %v2537_v12 = vadd.f32 1.0, %v1644_v40  ;;  %1655 = vpow2.f32 %v1503_v59  ;;  %v1150_v33 = vsub.f32 1.0, %v1149_v45  ;;  %v1157_v25 = vand.u32 2147483647, %v2421_v19 }
 0x1de   : > { %v1648_v31 = vpop.eup %1647  ;;  %1657 = vrcp.f32 %v2508_v41  ;;  %v1081_v20 = vsel %vm1080_vm3, %v2470_v63, %v1077_v7  ;;  %v1159_v63 = vand.u32 2147483648, %v2421_v19  ;;  %v1089_v60 = vmul.f32 %v2533_v10, %v2474_v36 }
 0x1df   : > { %v2543_v44 = vpop.eup %1649  ;;  %1659 = vrcp.f32 %v2537_v12  ;;  %v2546_v3 = vadd.f32 1.0, %v1648_v31  ;;  %v1086_v24 = vsel %vm1083_vm4, %v1085_v14, %v1081_v20  ;;  %v1151_v11 = vmul.f32 %v2480_v61, %v1150_v33 }
 0x1e0   : > { %1277 = vrot.lane.b32.xlu0 %v1086_v24, %s1711_s22  ;;  %1661 = vrcp.f32 %v2535_v21  ;;  %v1206_v27 = vsel %vm2499_vm14, %v1205_v18, %v1201_v30  ;;  %vm1154_vm0 = vweird.f32 %v2480_v61  ;;  %v1097_v39 = vand.u32 2147483647, %v2474_v36 }
 0x1e1   : > { %v1652_v28 = vpop.eup %1651  ;;  %1663 = vrcp.f32 %v2546_v3  ;;  %v1152_v58 = vadd.f32 %v2480_v61, %v1151_v11  ;;  %v1090_v51 = vsub.f32 1.0, %v1089_v60  ;;  %vm1093_vm6 = vweird.f32 %v2474_v36  ;;  %vm2579_vm8 = vmor %vm1153_vm5, %vm1154_vm0 }
 0x1e2   : > { %v2561_v2 = vpop.eup %1653  ;;  %v2564_v29 = vadd.f32 1.0, %v1652_v28  ;;  %vm1094_vm7 = vweird.f32 %v2533_v10  ;;  %v1029_v47 = vmul.f32 %v2506_v34, %v2442_v54  ;;  %vm2583_vm9 = vcmp.eq.f32.partialorder %v1157_v25, 8.507059e+37 }
 0x1e3   : > { %v1656_v0 = vpop.eup %1655  ;;  %1293 = vrot.lane.b32.xlu1 %v1206_v27, %s1711_s22  ;;  %v1160_v49 = vor.u32 1.1754944e-38, %v1159_v63  ;;  %v1099_v59 = vand.u32 2147483648, %v2474_v36  ;;  %v1156_v17 = vsel %vm2579_vm8, %v2480_v61, %v1152_v58  ;;  %v1091_v53 = vmul.f32 %v2533_v10, %v1090_v51  ;;  %vm1095_vm13 = vmor %vm1093_vm6, %vm1094_vm7 }
 0x1e4   : > { %v2573_v32 = vpop.eup %1657  ;;  %v2575_v23 = vadd.f32 1.0, %v1656_v0  ;;  %vm2592_vm10 = vcmp.eq.f32.partialorder %v1097_v39, 8.507059e+37  ;;  %v1030_v22 = vsub.f32 1.0, %v1029_v47  ;;  %1665 = vrcp.f32 %v2564_v29 }
 0x1e5   : > { %v1660_v55 = vpop.eup %1659  ;;  %vm1033_vm11 = vweird.f32 %v2442_v54  ;;  %vm1034_vm12 = vweird.f32 %v2506_v34  ;;  %v1039_v40 = vand.u32 2147483648, %v2442_v54  ;;  %v1092_v7 = vadd.f32 %v2533_v10, %v1091_v53 }
 0x1e6   : > { %v2600_v30 = vpop.eup %1661  ;;  %v1031_v61 = vmul.f32 %v2506_v34, %v1030_v22  ;;  %v1037_v45 = vand.u32 2147483647, %v2442_v54  ;;  %v1104_v14 = vmul.f32 %v1660_v55, %v2537_v12  ;;  %1667 = vrcp.f32 %v2575_v23  ;;  %vm1035_vm15 = vmor %vm1033_vm11, %vm1034_vm12 }
 0x1e7   : > { %v2606_v31 = vpop.eup %1663  ;;  %v1161_v20 = vsel %vm2583_vm9, %v1160_v49, %v1156_v17  ;;  %v1100_v33 = vor.u32 1.1754944e-38, %v1099_v59  ;;  %v1112_v18 = vand.u32 2147483647, %v2537_v12  ;;  %v1096_v24 = vsel %vm1095_vm13, %v2533_v10, %v1092_v7  ;;  %v2628_v10 = vpop.permute.xlu2 %855 }
 0x1e8   : > { %v1032_v11 = vadd.f32 %v2506_v34, %v1031_v61  ;;  %v1105_v25 = vsub.f32 1.0, %v1104_v14  ;;  %vm1108_vm14 = vweird.f32 %v2537_v12  ;;  %v1040_v36 = vor.u32 1.1754944e-38, %v1039_v40 }
 0x1e9   : > { %v1101_v63 = vsel %vm2592_vm10, %v1100_v33, %v1096_v24  ;;  %v1114_v60 = vand.u32 2147483648, %v2537_v12  ;;  %v1164_v28 = vmul.f32 %v2543_v44, %v2472_v26  ;;  %vm1038_vm1 = vcmp.eq.f32.partialorder %v1037_v45, 8.507059e+37 }
 0x1ea   : > { %1279 = vrot.lane.b32.xlu2 %v1101_v63, %s1711_s22  ;;  %v1036_v27 = vsel %vm1035_vm15, %v2506_v34, %v1032_v11  ;;  %v1106_v39 = vmul.f32 %v1660_v55, %v1105_v25  ;;  %vm1109_vm2 = vweird.f32 %v1660_v55  ;;  %v2633_v58 = vpop.eup %1665  ;;  %vm2635_vm3 = vcmp.eq.f32.partialorder %v1112_v18, 8.507059e+37 }
 0x1eb   : > { %1287 = vrot.lane.b32.xlu1 %v1161_v20, %s1711_s22  ;;  %v1041_v54 = vsel %vm1038_vm1, %v1040_v36, %v1036_v27  ;;  %v1165_v51 = vsub.f32 1.0, %v1164_v28  ;;  %vm1168_vm4 = vweird.f32 %v2472_v26  ;;  %v1172_v46 = vand.u32 2147483647, %v2472_v26  ;;  %vm1110_vm0 = vmor %vm1108_vm14, %vm1109_vm2 }
 0x1ec   : > { %1271 = vrot.lane.b32.xlu0 %v1041_v54, %s1711_s22  ;;  %v1107_v47 = vadd.f32 %v1660_v55, %v1106_v39  ;;  %v1174_v34 = vand.u32 2147483648, %v2472_v26  ;;  %v1044_v19 = vmul.f32 %v2600_v30, %v2535_v21  ;;  %v2645_v49 = vpop.eup %1667  ;;  %v1115_v59 = vor.u32 1.1754944e-38, %v1114_v60 }
 0x1ed   : > { %v1166_v17 = vmul.f32 %v2543_v44, %v1165_v51  ;;  %vm1169_vm5 = vweird.f32 %v2543_v44  ;;  %v1052_v53 = vand.u32 2147483647, %v2535_v21  ;;  %vm1048_vm6 = vweird.f32 %v2535_v21 }
 0x1ee   : > { %v1111_v37 = vsel %vm1110_vm0, %v1660_v55, %v1107_v47  ;;  %v1045_v22 = vsub.f32 1.0, %v1044_v19  ;;  %v1119_v40 = vmul.f32 %v2633_v58, %v2564_v29  ;;  %vm1049_vm7 = vweird.f32 %v2600_v30  ;;  %vm1170_vm8 = vmor %vm1168_vm4, %vm1169_vm5 }
 0x1ef   : > { %v1116_v7 = vsel %vm2635_vm3, %v1115_v59, %v1111_v37  ;;  %v1167_v12 = vadd.f32 %v2543_v44, %v1166_v17  ;;  %v1054_v61 = vand.u32 2147483648, %v2535_v21  ;;  %vm1173_vm9 = vcmp.eq.f32.partialorder %v1172_v46, 8.507059e+37  ;;  %vm1050_vm13 = vmor %vm1048_vm6, %vm1049_vm7  ;;  %v2681_v60 = vpop.permute.xlu2 %870 }
 0x1f0   : > { %v1175_v55 = vor.u32 1.1754944e-38, %v1174_v34  ;;  %v1046_v45 = vmul.f32 %v2600_v30, %v1045_v22  ;;  %v1120_v14 = vsub.f32 1.0, %v1119_v40  ;;  %vm2664_vm10 = vcmp.eq.f32.partialorder %v1052_v53, 8.507059e+37 }
 0x1f1   : > { %v1171_v20 = vsel %vm1170_vm8, %v2543_v44, %v1167_v12  ;;  %vm1123_vm11 = vweird.f32 %v2564_v29  ;;  %v1059_v18 = vmul.f32 %v2645_v49, %v2575_v23  ;;  %vm1124_vm12 = vweird.f32 %v2633_v58 }
 0x1f2   : > { %v1047_v26 = vadd.f32 %v2600_v30, %v1046_v45  ;;  %v1121_v24 = vmul.f32 %v2633_v58, %v1120_v14  ;;  %v1127_v11 = vand.u32 2147483647, %v2564_v29  ;;  %v1176_v44 = vsel %vm1173_vm9, %v1175_v55, %v1171_v20  ;;  %vm2692_vm14 = vmor %vm1123_vm11, %vm1124_vm12 }
 0x1f3   : > { %1281 = vrot.lane.b32.xlu1 %v1116_v7, %s1711_s22  ;;  %v1055_v25 = vor.u32 1.1754944e-38, %v1054_v61  ;;  %v1129_v63 = vand.u32 2147483648, %v2564_v29  ;;  %v1060_v36 = vsub.f32 1.0, %v1059_v18  ;;  %v1067_v39 = vand.u32 2147483647, %v2575_v23 }
 0x1f4   : > { %1289 = vrot.lane.b32.xlu0 %v1176_v44, %s1711_s22  ;;  %v1051_v28 = vsel %vm1050_vm13, %v2600_v30, %v1047_v26  ;;  %v1122_v27 = vadd.f32 %v2633_v58, %v1121_v24  ;;  %v1069_v54 = vand.u32 2147483648, %v2575_v23  ;;  %vm1064_vm15 = vweird.f32 %v2645_v49 }
 0x1f5   : > { %v1056_v21 = vsel %vm2664_vm10, %v1055_v25, %v1051_v28  ;;  %v1061_v51 = vmul.f32 %v2645_v49, %v1060_v36  ;;  %v1179_v30 = vmul.f32 %v2573_v32, %v2508_v41  ;;  %vm1128_vm1 = vcmp.eq.f32.partialorder %v1127_v11, 8.507059e+37 }
 0x1f6   : > { %1273 = vrot.lane.b32.xlu2 %v1056_v21, %s1711_s22  ;;  %v1126_v47 = vsel %vm2692_vm14, %v2633_v58, %v1122_v27  ;;  %vm1063_vm2 = vweird.f32 %v2575_v23  ;;  %v1130_v29 = vor.u32 1.1754944e-38, %v1129_v63  ;;  %vm1068_vm3 = vcmp.eq.f32.partialorder %v1067_v39, 8.507059e+37 }
 0x1f7   : > { %v1062_v46 = vadd.f32 %v2645_v49, %v1061_v51  ;;  %v1180_v34 = vsub.f32 1.0, %v1179_v30  ;;  %vm1065_vm4 = vmor %vm1063_vm2, %vm1064_vm15  ;;  %v1070_v19 = vor.u32 1.1754944e-38, %v1069_v54  ;;  %v1187_v59 = vand.u32 2147483647, %v2508_v41  ;;  %v2727_v33 = vpop.permute.xlu2 %875 }
 0x1f8   : > { %v1189_v17 = vand.u32 2147483648, %v2508_v41  ;;  %v1209_v53 = vmul.f32 %v2487_v50, %v2428_v13  ;;  %v1131_v37 = vsel %vm1128_vm1, %v1130_v29, %v1126_v47  ;;  %vm1184_vm0 = vweird.f32 %v2573_v32 }
 0x1f9   : > { %v1066_v58 = vsel %vm1065_vm4, %v2645_v49, %v1062_v46  ;;  %v1181_v22 = vmul.f32 %v2573_v32, %v1180_v34  ;;  %vm1183_vm5 = vweird.f32 %v2508_v41  ;;  %vm1213_vm6 = vweird.f32 %v2428_v13  ;;  %v866_v46 = vpop.permute.xlu1 %865 }
 0x1fa   : > { %v1071_v23 = vsel %vm1068_vm3, %v1070_v19, %v1066_v58  ;;  %v1210_v40 = vsub.f32 1.0, %v1209_v53  ;;  %vm1214_vm7 = vweird.f32 %v2487_v50  ;;  %v1239_v12 = vmul.f32 %v2606_v31, %v2546_v3  ;;  %vm1185_vm8 = vmor %vm1183_vm5, %vm1184_vm0 }
 0x1fb   : > { %1275 = vrot.lane.b32.xlu1 %v1071_v23, %s1711_s22  ;;  %v1182_v7 = vadd.f32 %v2573_v32, %v1181_v22  ;;  %vm1188_vm9 = vcmp.eq.f32.partialorder %v1187_v59, 8.507059e+37  ;;  %v1190_v49 = vor.u32 1.1754944e-38, %v1189_v17  ;;  %v1219_v41 = vand.u32 2147483648, %v2428_v13  ;;  %vm2737_vm10 = vmor %vm1213_vm6, %vm1214_vm7 }
 0x1fc   : > { %1283 = vrot.lane.b32.xlu0 %v1131_v37, %s1711_s22  ;;  %v1211_v61 = vmul.f32 %v2487_v50, %v1210_v40  ;;  %v1217_v45 = vand.u32 2147483647, %v2428_v13  ;;  %v1240_v14 = vsub.f32 1.0, %v1239_v12  ;;  %v1224_v20 = vmul.f32 %v2561_v2, %v2489_v9 }
 0x1fd   : > { %v1186_v55 = vsel %vm1185_vm8, %v2573_v32, %v1182_v7  ;;  %v1247_v24 = vand.u32 2147483647, %v2546_v3  ;;  %v1249_v11 = vand.u32 2147483648, %v2546_v3  ;;  %vm1244_vm11 = vweird.f32 %v2606_v31 }
 0x1fe   : > { %v1191_v18 = vsel %vm1188_vm9, %v1190_v49, %v1186_v55  ;;  %v1212_v26 = vadd.f32 %v2487_v50, %v1211_v61  ;;  %v1241_v44 = vmul.f32 %v2606_v31, %v1240_v14  ;;  %v1225_v25 = vsub.f32 1.0, %v1224_v20 }
 0x1ff   : > { %1291 = vrot.lane.b32.xlu2 %v1191_v18, %s1711_s22  ;;  %v1220_v36 = vor.u32 1.1754944e-38, %v1219_v41  ;;  %vm1243_vm12 = vweird.f32 %v2546_v3  ;;  %v1234_v28 = vand.u32 2147483648, %v2489_v9  ;;  %vm1229_vm13 = vweird.f32 %v2561_v2  ;;  %v2759_v29 = vpop.permute.xlu2 %885 }
 0x200   : > { %v1216_v63 = vsel %vm2737_vm10, %v2487_v50, %v1212_v26  ;;  %v1242_v13 = vadd.f32 %v2606_v31, %v1241_v44  ;;  %v1226_v27 = vmul.f32 %v2561_v2, %v1225_v25  ;;  %v1232_v39 = vand.u32 2147483647, %v2489_v9  ;;  %vm1245_vm15 = vmor %vm1243_vm12, %vm1244_vm11 }
 0x201   : > { %vm1218_vm14 = vcmp.eq.f32.partialorder %v1217_v45, 8.507059e+37  ;;  %vm1248_vm1 = vcmp.eq.f32.partialorder %v1247_v24, 8.507059e+37  ;;  %v1250_v54 = vor.u32 1.1754944e-38, %v1249_v11  ;;  %vm1228_vm2 = vweird.f32 %v2489_v9  ;;  %v861_v9 = vpop.permute.xlu0 %860  ;;  %v881_v59 = vpop.permute.xlu1 %880 }
 0x202   : > { %v1221_v21 = vsel %vm1218_vm14, %v1220_v36, %v1216_v63  ;;  %v1246_v50 = vsel %vm1245_vm15, %v2606_v31, %v1242_v13  ;;  %v1227_v0 = vadd.f32 %v2561_v2, %v1226_v27  ;;  %vm1230_vm3 = vmor %vm1228_vm2, %vm1229_vm13  ;;  %v1235_v51 = vor.u32 1.1754944e-38, %v1234_v28 }
 0x203   : > { %v1251_v3 = vsel %vm1248_vm1, %v1250_v54, %v1246_v50  ;;  %vm1233_vm4 = vcmp.eq.f32.partialorder %v1232_v39, 8.507059e+37  ;;  %vm1349_vm0 = vcmask 519168   ;;  %v938_v7 = vmul.f32 %v881_v59, %v2402_v43 }
 0x204   : > { %1295 = vrot.lane.b32.xlu0 %v1221_v21, %s1711_s22  ;;  %1299 = vrot.lane.b32.xlu1 %v1251_v3, %s1711_s22  ;;  %v1231_v30 = vsel %vm1230_vm3, %v2561_v2, %v1227_v0  ;;  %v933_v55 = vmul.f32 %v2628_v10, %v2373_v5  ;;  %v935_v18 = vmul.f32 %v866_v46, %v2446_v52 }
 0x205   : > { %v1236_v47 = vsel %vm1233_vm4, %v1235_v51, %v1231_v30  ;;  %v937_v26 = vmul.f32 %v2727_v33, %v2379_v42  ;;  %v934_v39 = vmul.f32 %v861_v9, %v2395_v16  ;;  %v939_v16 = vmul.f32 %v2759_v29, %v2440_v15 }
 0x206   : > { %v936_v15 = vmul.f32 %v2681_v60, %v2495_v48 }
 0x207   : > { %1297 = vrot.lane.b32.xlu2 %v1236_v47, %s1711_s22  ;;  %v901_v31 = vpop.permute.xlu2 %900 }
 0x209   : > { %v896_v17 = vpop.permute.xlu0 %895  ;;  %v891_v22 = vpop.permute.xlu1 %890 }
 0x20a   : > { %v941_v53 = vmul.f32 %v896_v17, %v2365_v1  ;;  %v940_v29 = vmul.f32 %v891_v22, %v2484_v8 }
 0x20f   : > { %v916_v34 = vpop.permute.xlu2 %915 }
 0x210   : > { %v945_v44 = vmul.f32 %v916_v34, %v2369_v4  ;;  %v942_v4 = vmul.f32 %v901_v31, %v2376_v6 }
 0x211   : > { %v906_v23 = vpop.permute.xlu1 %905  ;;  %v911_v40 = vpop.permute.xlu0 %910 }
 0x212   : > { %v944_v42 = vmul.f32 %v911_v40, %v2434_v56  ;;  %v943_v31 = vmul.f32 %v906_v23, %v2399_v38 }
 0x217   : > { %v2761_v19 = vpop.permute.xlu2 %930 }
 0x218   : > { %v948_v48 = vmul.f32 %v2761_v19, %v2468_v35 }
 0x219   : > { %v2773_v1 = vpop.permute.xlu1 %920  ;;  %v926_v41 = vpop.permute.xlu0 %925 }
 0x21a   : > { %v947_v56 = vmul.f32 %v926_v41, %v2424_v62 }
 0x22d   : > { %v1286_v37 = vpop.permute.xlu2 %1285 }
 0x22e   : > { %v1325_v58 = vmul.f32 %v1286_v37, %v941_v53 }
 0x230   : > { %v1341_v2 = vpack.c.bf16 %v1325_v58, %v1325_v58 }
 0x232   : > { %1358 = vst.msk [vmem:[%s2768_s8 + $0x20] sm:$0xf] %vm1349_vm0, %v1341_v2  ;;  %v946_v2 = vmul.f32 %v2773_v1, %v2386_v57 }
 0x244   : > { %v1280_v12 = vpop.permute.xlu2 %1279 }
 0x245   : > { %v1322_v49 = vmul.f32 %v1280_v12, %v938_v7 }
 0x247   : > { %v1338_v61 = vpack.c.bf16 %v1322_v49, %v1322_v49 }
 0x249   : > { %1355 = vst.msk [vmem:[%s2768_s8 + $0x14] sm:$0xf] %vm1349_vm0, %v1338_v61 }
 0x24d   : > { %v1270_v45 = vpop.permute.xlu1 %1269 }
 0x24e   : > { %v1317_v14 = vmul.f32 %v1270_v45, %v933_v55 }
 0x250   : > { %v1333_v20 = vpack.c.bf16 %v1317_v14, %v1317_v14  ;;  %v1274_v43 = vpop.permute.xlu2 %1273 }
 0x251   : > { %v1319_v24 = vmul.f32 %v1274_v43, %v935_v18 }
 0x252   : > { %1350 = vst.msk [vmem:[%s2768_s8] sm:$0xf] %vm1349_vm0, %v1333_v20  ;;  %v1278_v11 = vpop.permute.xlu0 %1277 }
 0x253   : > { %v1321_v32 = vmul.f32 %v1278_v11, %v937_v26  ;;  %v1335_v25 = vpack.c.bf16 %v1319_v24, %v1319_v24 }
 0x255   : > { %v1294_v5 = vpop.permute.xlu1 %1293  ;;  %v1337_v10 = vpack.c.bf16 %v1321_v32, %v1321_v32  ;;  %1352 = vst.msk [vmem:[%s2768_s8 + $0x8] sm:$0xf] %vm1349_vm0, %v1335_v25 }
 0x256   : > { %v1329_v63 = vmul.f32 %v1294_v5, %v945_v44 }
 0x257   : > { %1354 = vst.msk [vmem:[%s2768_s8 + $0x10] sm:$0xf] %vm1349_vm0, %v1337_v10 }
 0x258   : > { %v1345_v52 = vpack.c.bf16 %v1329_v63, %v1329_v63 }
 0x259   : > { %v1292_v33 = vpop.permute.xlu2 %1291 }
 0x25a   : > { %1362 = vst.msk [vmem:[%s2768_s8 + $0x30] sm:$0xf] %vm1349_vm0, %v1345_v52  ;;  %v1328_v36 = vmul.f32 %v1292_v33, %v944_v42 }
 0x25c   : > { %v1344_v28 = vpack.c.bf16 %v1328_v36, %v1328_v36 }
 0x25d   : > { %v1288_v13 = vpop.permute.xlu1 %1287 }
 0x25e   : > { %v1326_v27 = vmul.f32 %v1288_v13, %v942_v4  ;;  %1361 = vst.msk [vmem:[%s2768_s8 + $0x2c] sm:$0xf] %vm1349_vm0, %v1344_v28  ;;  %v1272_v54 = vpop.permute.xlu0 %1271 }
 0x25f   : > { %v1318_v50 = vmul.f32 %v1272_v54, %v934_v39 }
 0x260   : > { %v1342_v21 = vpack.c.bf16 %v1326_v27, %v1326_v27 }
 0x261   : > { %v1334_v0 = vpack.c.bf16 %v1318_v50, %v1318_v50  ;;  %v1298_v3 = vpop.permute.xlu2 %1297 }
 0x262   : > { %1359 = vst.msk [vmem:[%s2768_s8 + $0x24] sm:$0xf] %vm1349_vm0, %v1342_v21  ;;  %v1331_v6 = vmul.f32 %v1298_v3, %v947_v56 }
 0x263   : > { %1351 = vst.msk [vmem:[%s2768_s8 + $0x4] sm:$0xf] %vm1349_vm0, %v1334_v0 }
 0x264   : > { %v1347_v51 = vpack.c.bf16 %v1331_v6, %v1331_v6 }
 0x265   : > { %v1282_v30 = vpop.permute.xlu1 %1281 }
 0x266   : > { %v1323_v47 = vmul.f32 %v1282_v30, %v939_v16  ;;  %1364 = vst.msk [vmem:[%s2768_s8 + $0x38] sm:$0xf] %vm1349_vm0, %v1347_v51  ;;  %v1290_v62 = vpop.permute.xlu0 %1289 }
 0x267   : > { %v1327_v34 = vmul.f32 %v1290_v62, %v943_v31 }
 0x268   : > { %v1339_v46 = vpack.c.bf16 %v1323_v47, %v1323_v47 }
 0x269   : > { %v1343_v9 = vpack.c.bf16 %v1327_v34, %v1327_v34 }
 0x26a   : > { %1356 = vst.msk [vmem:[%s2768_s8 + $0x18] sm:$0xf] %vm1349_vm0, %v1339_v46 }
 0x26b   : > { %1360 = vst.msk [vmem:[%s2768_s8 + $0x28] sm:$0xf] %vm1349_vm0, %v1343_v9 }
 0x26d   : > { %v1276_v59 = vpop.permute.xlu1 %1275 }
 0x26e   : > { %v1284_v38 = vpop.permute.xlu0 %1283  ;;  %v1320_v17 = vmul.f32 %v1276_v59, %v936_v15 }
 0x26f   : > { %v1324_v53 = vmul.f32 %v1284_v38, %v940_v29 }
 0x270   : > { %v1336_v37 = vpack.c.bf16 %v1320_v17, %v1320_v17 }
 0x271   : > { %v1340_v58 = vpack.c.bf16 %v1324_v53, %v1324_v53 }
 0x272   : > { %1353 = vst.msk [vmem:[%s2768_s8 + $0xc] sm:$0xf] %vm1349_vm0, %v1336_v37 }
 0x273   : > { %1357 = vst.msk [vmem:[%s2768_s8 + $0x1c] sm:$0xf] %vm1349_vm0, %v1340_v58 }
 0x276   : > { %v1296_v60 = vpop.permute.xlu0 %1295  ;;  %v1300_v22 = vpop.permute.xlu1 %1299 }
 0x277   : > { %v1330_v8 = vmul.f32 %v1296_v60, %v946_v2  ;;  %v1332_v23 = vmul.f32 %v1300_v22, %v948_v48 }
 0x279   : > { %v1346_v40 = vpack.c.bf16 %v1330_v8, %v1330_v8  ;;  %v1348_v7 = vpack.c.bf16 %v1332_v23, %v1332_v23 }
 0x27b   : > { %1363 = vst.msk [vmem:[%s2768_s8 + $0x34] sm:$0xf] %vm1349_vm0, %v1346_v40 }
 0x27c   : > { %1365 = vst.msk [vmem:[%s2768_s8 + $0x3c] sm:$0xf] %vm1349_vm0, %v1348_v7 }
 0x27d PF: > { %s16_s25 = sadd.s32 1, %s1707_s25   ;;  %s2889_s21 = smov %s1699_s23 }
 0x27e   : > { %p13_p7 = scmp.ge.s32.totalorder %s16_s25, 6   ;;  %s2890_s22 = smov %s1703_s24 }
 0x27f   : > { %s2891_s23 = smov %s2894_s26  ;;  %s2892_s24 = smov %s2898_s27 }
 0x280   :  { %15 = sbr.rel (!%p13_p7) target bundleno = 3 (0x3), region = 77 }

// kernel: triangle_multiplication_ffb.4
= control target key start
LH: loop header
LB: loop body
LE: loop exit
PB: predicated region body
PF: predicated region fallthrough
CT: control target
= control target key end

     0   :  { %s2175_s9 = smov 0   ;;  %s2177_s10 = smov 0   ;;  %s2676_s0 = inlined_call_operand.vmem [shape: bf16[2,64,16,16], index: 0, kind: input, shape index: {}, may-alias: {0,1}]   ;;  %s2677_s1 = inlined_call_operand.vmem [shape: bf16[2,64,16,16], index: 1, kind: input, shape index: {}, may-alias: {0,1}]   ;;  %s2678_s2 = inlined_call_operand.vmem [shape: bf16[2,32,16,16], index: 2, kind: output, shape index: {}]  }
   0x1   :  { %s2179_s11 = smov 0   ;;  %s2181_s12 = smov 0  }
   0x2   :  { %s2183_s13 = smov 0   ;;  %s2185_s14 = smov 0  }
   0x3   :  { %s2187_s15 = smov 0  }
   0x4 LB: > { %s34_s16 = sadd.s32 1, %s2149_s13  ;;  %s38_s17 = sadd.s32 1, %s2153_s14  ;;  %s2157_s15 = sphi %s2187_s15, %s12_s15   ;;  %s2153_s14 = sphi %s2185_s14, %s2685_s14   ;;  %s2149_s13 = sphi %s2183_s13, %s2684_s13   ;;  %s2145_s12 = sphi %s2181_s12, %s2683_s12   ;;  %s2141_s11 = sphi %s2179_s11, %s2682_s11   ;;  %s2137_s10 = sphi %s2177_s10, %s2681_s10   ;;  %s2133_s9 = sphi %s2175_s9, %s2680_s9  }
   0x5   : > { %p36_p0 = scmp.ge.s32.totalorder %s34_s16, 2  ;;  %s1772_s18 = sadd.s32 4294967295, %s2157_s15  }
   0x6   : > { %p56_p1 = scmp.ne.s32.totalorder %s2137_s10, %s2133_s9  ;;  %p57_p2 = scmp.eq.s32.totalorder %s2157_s15, 0 }
   0x7   : > { %s2687_s16 = smov (%p36_p0, %s34_s16), 0  ;;  %s2689_s17 = smov (!%p36_p0, %s38_s17), %s2153_s14 }
   0x8   : > { %p40_p3 = scmp.ge.s32.totalorder %s2689_s17, 2  ;;  %p120_p4 = scmp.eq.s32.totalorder %s1772_s18, 3 }
   0x9   : > { %s43_s19 = ssub.s32 %s2149_s13, %s2687_s16  ;;  %p58_p5 = por %p57_p2, %p56_p1 }
   0xa   : > { %s2691_s17 = smov (%p40_p3, %s2689_s17), 0  ;;  %p2223_p6 = por %p120_p4, %p56_p1 }
   0xb   : > { %s42_s21 = ssub.s32 %s2153_s14, %s2691_s17  ;;  %s49_s23 = sadd.s32 1, %s2137_s10 }
   0xc   : > { %s44_s22 = sor.u32 %s43_s19, %s42_s21  ;;  %p1775_p8 = scmp.ge.s32.totalorder %s2157_s15, 4 }
   0xd   : > { %p47_p7 = scmp.eq.s32.totalorder %s44_s22, 0 }
   0xe   : > { %142 = sbr.rel (%p1775_p8) target bundleno = 57 (0x39), region = 16 }
   0xf   : > { %s2231_s24 = scalar_select %p47_p7, %s2137_s10, %s49_s23  }
  0x13   : > { %145 = sbr.rel (!%p58_p5) target bundleno = 57 (0x39), region = 20  ;;  %s147_s25 = sand.u32 (%p58_p5), 1, %s2137_s10  }
  0x14   : > { %s1777_s26 = sshll.u32 (%p58_p5), %s2153_s14, 7  ;;  %s1776_s27 = sshll.u32 (%p58_p5), %s147_s25, 7 }
  0x15   : > { %s152_s28 = sadd.s32 (%p58_p5), %s2149_s13, %s1777_s26  ;;  %s2245_s5 = scalar_lea.vmem (%p58_p5), [#allocation3], %s1776_s27 }
  0x16   : > { %s1778_s29 = sshll.u32 (%p58_p5), %s152_s28, 2 }
  0x17   : > { %s2240_s4 = scalar_lea.vmem (%p58_p5), %s2676_s0, %s1778_s29 }
  0x18   : > { %v171_v0 = vld [vmem:[%s2240_s4] sm:$0xf]  ;;  %v173_v1 = vld [vmem:[%s2240_s4 + $0x8] sm:$0xf]  ;;  %v175_v2 = vld [vmem:[%s2240_s4 + $0x10] sm:$0xf] }
  0x19   : > { %172 = vst [vmem:[%s2245_s5] sm:$0xf] %v171_v0  ;;  %v177_v3 = vld [vmem:[%s2240_s4 + $0x18] sm:$0xf]  ;;  %v179_v4 = vld [vmem:[%s2240_s4 + $0x20] sm:$0xf] }
  0x1a   : > { %174 = vst [vmem:[%s2245_s5 + $0x4] sm:$0xf] %v173_v1  ;;  %v181_v5 = vld [vmem:[%s2240_s4 + $0x28] sm:$0xf]  ;;  %v183_v6 = vld [vmem:[%s2240_s4 + $0x30] sm:$0xf] }
  0x1b   : > { %176 = vst [vmem:[%s2245_s5 + $0x8] sm:$0xf] %v175_v2  ;;  %v185_v7 = vld [vmem:[%s2240_s4 + $0x38] sm:$0xf]  ;;  %v187_v8 = vld [vmem:[%s2240_s4 + $0x40] sm:$0xf] }
  0x1c   : > { %178 = vst [vmem:[%s2245_s5 + $0xc] sm:$0xf] %v177_v3  ;;  %v189_v9 = vld [vmem:[%s2240_s4 + $0x48] sm:$0xf]  ;;  %v191_v10 = vld [vmem:[%s2240_s4 + $0x50] sm:$0xf] }
  0x1d   : > { %180 = vst [vmem:[%s2245_s5 + $0x10] sm:$0xf] %v179_v4  ;;  %v193_v11 = vld [vmem:[%s2240_s4 + $0x58] sm:$0xf]  ;;  %v195_v12 = vld [vmem:[%s2240_s4 + $0x60] sm:$0xf] }
  0x1e   : > { %182 = vst [vmem:[%s2245_s5 + $0x14] sm:$0xf] %v181_v5  ;;  %v197_v13 = vld [vmem:[%s2240_s4 + $0x68] sm:$0xf]  ;;  %v199_v14 = vld [vmem:[%s2240_s4 + $0x70] sm:$0xf] }
  0x1f   : > { %184 = vst [vmem:[%s2245_s5 + $0x18] sm:$0xf] %v183_v6  ;;  %v201_v15 = vld [vmem:[%s2240_s4 + $0x78] sm:$0xf]  ;;  %v203_v16 = vld [vmem:[%s2240_s4 + $0x80] sm:$0xf] }
  0x20   : > { %186 = vst [vmem:[%s2245_s5 + $0x1c] sm:$0xf] %v185_v7  ;;  %v205_v17 = vld [vmem:[%s2240_s4 + $0x88] sm:$0xf]  ;;  %v207_v18 = vld [vmem:[%s2240_s4 + $0x90] sm:$0xf] }
  0x21   : > { %188 = vst [vmem:[%s2245_s5 + $0x20] sm:$0xf] %v187_v8  ;;  %v209_v19 = vld [vmem:[%s2240_s4 + $0x98] sm:$0xf]  ;;  %v211_v20 = vld [vmem:[%s2240_s4 + $0xa0] sm:$0xf] }
  0x22   : > { %190 = vst [vmem:[%s2245_s5 + $0x24] sm:$0xf] %v189_v9  ;;  %v213_v21 = vld [vmem:[%s2240_s4 + $0xa8] sm:$0xf]  ;;  %v215_v22 = vld [vmem:[%s2240_s4 + $0xb0] sm:$0xf] }
  0x23   : > { %192 = vst [vmem:[%s2245_s5 + $0x28] sm:$0xf] %v191_v10  ;;  %v217_v23 = vld [vmem:[%s2240_s4 + $0xb8] sm:$0xf]  ;;  %v219_v24 = vld [vmem:[%s2240_s4 + $0xc0] sm:$0xf] }
  0x24   : > { %194 = vst [vmem:[%s2245_s5 + $0x2c] sm:$0xf] %v193_v11  ;;  %v221_v25 = vld [vmem:[%s2240_s4 + $0xc8] sm:$0xf]  ;;  %v223_v26 = vld [vmem:[%s2240_s4 + $0xd0] sm:$0xf] }
  0x25   : > { %196 = vst [vmem:[%s2245_s5 + $0x30] sm:$0xf] %v195_v12  ;;  %v225_v27 = vld [vmem:[%s2240_s4 + $0xd8] sm:$0xf]  ;;  %v227_v28 = vld [vmem:[%s2240_s4 + $0xe0] sm:$0xf] }
  0x26   : > { %198 = vst [vmem:[%s2245_s5 + $0x34] sm:$0xf] %v197_v13  ;;  %v229_v29 = vld [vmem:[%s2240_s4 + $0xe8] sm:$0xf]  ;;  %v231_v30 = vld [vmem:[%s2240_s4 + $0xf0] sm:$0xf] }
  0x27   : > { %200 = vst [vmem:[%s2245_s5 + $0x38] sm:$0xf] %v199_v14  ;;  %v233_v31 = vld [vmem:[%s2240_s4 + $0xf8] sm:$0xf] }
  0x28   : > { %202 = vst [vmem:[%s2245_s5 + $0x3c] sm:$0xf] %v201_v15 }
  0x29   : > { %204 = vst [vmem:[%s2245_s5 + $0x40] sm:$0xf] %v203_v16 }
  0x2a   : > { %206 = vst [vmem:[%s2245_s5 + $0x44] sm:$0xf] %v205_v17 }
  0x2b   : > { %208 = vst [vmem:[%s2245_s5 + $0x48] sm:$0xf] %v207_v18 }
  0x2c   : > { %210 = vst [vmem:[%s2245_s5 + $0x4c] sm:$0xf] %v209_v19 }
  0x2d   : > { %212 = vst [vmem:[%s2245_s5 + $0x50] sm:$0xf] %v211_v20 }
  0x2e   : > { %214 = vst [vmem:[%s2245_s5 + $0x54] sm:$0xf] %v213_v21 }
  0x2f   : > { %216 = vst [vmem:[%s2245_s5 + $0x58] sm:$0xf] %v215_v22 }
  0x30   : > { %218 = vst [vmem:[%s2245_s5 + $0x5c] sm:$0xf] %v217_v23 }
  0x31   : > { %220 = vst [vmem:[%s2245_s5 + $0x60] sm:$0xf] %v219_v24 }
  0x32   : > { %222 = vst [vmem:[%s2245_s5 + $0x64] sm:$0xf] %v221_v25 }
  0x33   : > { %224 = vst [vmem:[%s2245_s5 + $0x68] sm:$0xf] %v223_v26 }
  0x34   : > { %226 = vst [vmem:[%s2245_s5 + $0x6c] sm:$0xf] %v225_v27 }
  0x35   : > { %228 = vst [vmem:[%s2245_s5 + $0x70] sm:$0xf] %v227_v28 }
  0x36   : > { %230 = vst [vmem:[%s2245_s5 + $0x74] sm:$0xf] %v229_v29 }
  0x37   : > { %232 = vst [vmem:[%s2245_s5 + $0x78] sm:$0xf] %v231_v30 }
  0x38   : > { %234 = vst [vmem:[%s2245_s5 + $0x7c] sm:$0xf] %v233_v31 }
  0x39 PF: > { %p1779_p9 = scmp.ge.s32.totalorder %s2157_s15, 1  ;;  %p338_p10 = scmp.lt.s32.totalorder %s2157_s15, 5 }
  0x3b   : > { %p339_p11 = pnand %p1779_p9, %p338_p10 }
  0x3c   : > { %p379_p12 = scmp.lt.s32.totalorder (!%p339_p11), %s2145_s12, 1  ;;  %s345_s8 = sand.u32 (!%p339_p11), 1, %s2133_s9  }
  0x3d   : > { %342 = sbr.rel (%p339_p11) target bundleno = 349 (0x15d), region = 65  ;;  %s2322_s22 = sshll.u32 (!%p339_p11), %s345_s8, 7 }
  0x3e   : > { %s2341_s9 = scalar_lea.vmem (!%p339_p11), [#allocation3], %s2322_s22  ;;  %s2488_s23 = scalar_lea.vmem (!%p339_p11), [#allocation4], %s2322_s22 }
  0x42   : > { %s380_s6 = scalar_select %p379_p12, %s2145_s12, 1  ;;  %vm397_vm0 = vcmask 130048   ;;  %v462_v52 = vld [vmem:[%s2341_s9] sm:$0xf]  ;;  %v463_v53 = vld [vmem:[%s2341_s9 + $0x4] sm:$0xf] }
  0x43   : > { %v464_v54 = vld [vmem:[%s2341_s9 + $0x8] sm:$0xf]  ;;  %v465_v55 = vld [vmem:[%s2341_s9 + $0xc] sm:$0xf]  ;;  %v466_v0 = vld [vmem:[%s2341_s9 + $0x10] sm:$0xf] }
  0x44   : > { %s2013_s7 = sshll.u32 %s380_s6, 9  ;;  %v467_v1 = vld [vmem:[%s2341_s9 + $0x14] sm:$0xf]  ;;  %v468_v2 = vld [vmem:[%s2341_s9 + $0x18] sm:$0xf]  ;;  %vm1458_vm1 = vcmask 125952  }
  0x45   : > { %s2316_s21 = scalar_lea.vmem %s2677_s1, %s2013_s7  ;;  %v469_v3 = vld [vmem:[%s2341_s9 + $0x1c] sm:$0xf]  ;;  %v470_v12 = vld [vmem:[%s2341_s9 + $0x20] sm:$0xf]  ;;  %v471_v13 = vld [vmem:[%s2341_s9 + $0x24] sm:$0xf] }
  0x46   : > { %v2014_v32 = vld [vmem:[%s2316_s21 + $0x100] sm:$0xff]  ;;  %v2015_v33 = vld [vmem:[%s2316_s21 + $0x108] sm:$0xff]  ;;  %v2016_v34 = vld [vmem:[%s2316_s21 + $0x110] sm:$0xff]  ;;  %s2009_s25 = sshll.u32 (%p2223_p6), %s2145_s12, 6 }
  0x47   : > { %v2017_v35 = vld [vmem:[%s2316_s21 + $0x118] sm:$0xff]  ;;  %v2020_v36 = vld [vmem:[%s2316_s21 + $0x130] sm:$0xff]  ;;  %v568_v38 = vsel %vm397_vm0, %v2014_v32, 0  ;;  %v592_v39 = vsel %vm397_vm0, %v2015_v33, 0  ;;  %v616_v40 = vsel %vm397_vm0, %v2016_v34, 0  ;;  %v2018_v41 = vld [vmem:[%s2316_s21 + $0x120] sm:$0xff]  ;;  %s1500_s26 = sadd.s32 (%p2223_p6), %s2141_s11, %s2009_s25 }
  0x48   : > { %v2021_v37 = vld [vmem:[%s2316_s21 + $0x138] sm:$0xff]  ;;  %v2019_v42 = vld [vmem:[%s2316_s21 + $0x128] sm:$0xff]  ;;  %577 = vmatpush.bf16.xpose.msra.mxu0 %v568_v38  ;;  %601 = vmatpush.bf16.xpose.msra.mxu1 %v592_v39  ;;  %v640_v43 = vsel %vm397_vm0, %v2017_v35, 0  ;;  %v712_v44 = vsel %vm397_vm0, %v2020_v36, 0  ;;  %v664_v46 = vsel %vm397_vm0, %v2018_v41, 0  ;;  %v2024_v48 = vld [vmem:[%s2316_s21 + $0x150] sm:$0xff] }
  0x49   : > { %v736_v45 = vsel %vm397_vm0, %v2021_v37, 0  ;;  %625 = vmatpush.bf16.xpose.msra.mxu2 %v616_v40  ;;  %649 = vmatpush.bf16.xpose.msra.mxu3 %v640_v43  ;;  %v688_v47 = vsel %vm397_vm0, %v2019_v42, 0  ;;  %v2025_v49 = vld [vmem:[%s2316_s21 + $0x158] sm:$0xff]  ;;  %v2022_v50 = vld [vmem:[%s2316_s21 + $0x140] sm:$0xff]  ;;  %v2023_v51 = vld [vmem:[%s2316_s21 + $0x148] sm:$0xff]  ;;  %v808_v56 = vsel %vm397_vm0, %v2024_v48, 0 }
  0x4a   : > { %v832_v57 = vsel %vm397_vm0, %v2025_v49, 0  ;;  %v760_v58 = vsel %vm397_vm0, %v2022_v50, 0  ;;  %v784_v59 = vsel %vm397_vm0, %v2023_v51, 0  ;;  %v2028_v60 = vld [vmem:[%s2316_s21 + $0x170] sm:$0xff]  ;;  %v2029_v61 = vld [vmem:[%s2316_s21 + $0x178] sm:$0xff]  ;;  %v2026_v62 = vld [vmem:[%s2316_s21 + $0x160] sm:$0xff] }
  0x4b   : > { %v2027_v63 = vld [vmem:[%s2316_s21 + $0x168] sm:$0xff]  ;;  %v904_v4 = vsel %vm397_vm0, %v2028_v60, 0  ;;  %v928_v5 = vsel %vm397_vm0, %v2029_v61, 0  ;;  %v856_v6 = vsel %vm397_vm0, %v2026_v62, 0  ;;  %v2032_v8 = vld [vmem:[%s2316_s21 + $0x190] sm:$0xff]  ;;  %v2033_v9 = vld [vmem:[%s2316_s21 + $0x198] sm:$0xff] }
  0x4c   : > { %v880_v7 = vsel %vm397_vm0, %v2027_v63, 0  ;;  %v2030_v10 = vld [vmem:[%s2316_s21 + $0x180] sm:$0xff]  ;;  %v2031_v11 = vld [vmem:[%s2316_s21 + $0x188] sm:$0xff]  ;;  %v1000_v16 = vsel %vm397_vm0, %v2032_v8, 0  ;;  %v1024_v17 = vsel %vm397_vm0, %v2033_v9, 0  ;;  %v2036_v20 = vld [vmem:[%s2316_s21 + $0x1b0] sm:$0xff] }
  0x4d   : > { %v472_v14 = vld [vmem:[%s2341_s9 + $0x28] sm:$0xf]  ;;  %v473_v15 = vld [vmem:[%s2341_s9 + $0x2c] sm:$0xf]  ;;  %v952_v18 = vsel %vm397_vm0, %v2030_v10, 0  ;;  %v976_v19 = vsel %vm397_vm0, %v2031_v11, 0 }
  0x4e   : > { %v2037_v21 = vld [vmem:[%s2316_s21 + $0x1b8] sm:$0xff]  ;;  %v2034_v22 = vld [vmem:[%s2316_s21 + $0x1a0] sm:$0xff]  ;;  %v2035_v23 = vld [vmem:[%s2316_s21 + $0x1a8] sm:$0xff]  ;;  %v1096_v28 = vsel %vm397_vm0, %v2036_v20, 0  ;;  %s2010_s27 = sshll.u32 (%p2223_p6), %s1500_s26, 2 }
  0x4f   : > { %1852 = vmatmul.msk.bf16.vlgmr.msra.gmra.mxu0 %vm397_vm0, %v462_v52  ;;  %1857 = vmatmul.msk.bf16.vlgmr.msra.gmra.mxu1 %vm397_vm0, %v463_v53  ;;  %v474_v24 = vld [vmem:[%s2341_s9 + $0x30] sm:$0xf]  ;;  %v475_v25 = vld [vmem:[%s2341_s9 + $0x34] sm:$0xf]  ;;  %v476_v26 = vld [vmem:[%s2341_s9 + $0x38] sm:$0xf]  ;;  %s2591_s20 = scalar_lea.vmem (%p2223_p6), %s2678_s2, %s2010_s27 }
  0x50   : > { %673 = vmatpush.bf16.xpose.msrb.mxu0 %v664_v46  ;;  %697 = vmatpush.bf16.xpose.msrb.mxu1 %v688_v47  ;;  %v477_v27 = vld [vmem:[%s2341_s9 + $0x3c] sm:$0xf]  ;;  %v1120_v29 = vsel %vm397_vm0, %v2037_v21, 0  ;;  %v1048_v30 = vsel %vm397_vm0, %v2034_v22, 0  ;;  %v1072_v31 = vsel %vm397_vm0, %v2035_v23, 0  ;;  %v2040_v32 = vld [vmem:[%s2316_s21 + $0x1d0] sm:$0xff] }
  0x51   : > { %721 = vmatpush.bf16.xpose.msrb.mxu2 %v712_v44  ;;  %745 = vmatpush.bf16.xpose.msrb.mxu3 %v736_v45  ;;  %v2041_v33 = vld [vmem:[%s2316_s21 + $0x1d8] sm:$0xff]  ;;  %v2038_v34 = vld [vmem:[%s2316_s21 + $0x1c0] sm:$0xff]  ;;  %v2039_v35 = vld [vmem:[%s2316_s21 + $0x1c8] sm:$0xff]  ;;  %v1192_v40 = vsel %vm397_vm0, %v2040_v32, 0 }
  0x52   : > { %1862 = vmatmul.msk.bf16.vlgmr.msra.gmra.mxu2 %vm397_vm0, %v464_v54  ;;  %1867 = vmatmul.msk.bf16.vlgmr.msra.gmra.mxu3 %vm397_vm0, %v465_v55  ;;  %v478_v36 = vld [vmem:[%s2341_s9 + $0x40] sm:$0xf]  ;;  %v479_v37 = vld [vmem:[%s2341_s9 + $0x44] sm:$0xf]  ;;  %v480_v38 = vld [vmem:[%s2341_s9 + $0x48] sm:$0xf] }
  0x53   : > { %v481_v39 = vld [vmem:[%s2341_s9 + $0x4c] sm:$0xf]  ;;  %v1216_v41 = vsel %vm397_vm0, %v2041_v33, 0  ;;  %v1144_v42 = vsel %vm397_vm0, %v2038_v34, 0  ;;  %v1168_v43 = vsel %vm397_vm0, %v2039_v35, 0  ;;  %v2044_v44 = vld [vmem:[%s2316_s21 + $0x1f0] sm:$0xff] }
  0x54   : > { %v2045_v45 = vld [vmem:[%s2316_s21 + $0x1f8] sm:$0xff]  ;;  %v2042_v46 = vld [vmem:[%s2316_s21 + $0x1e0] sm:$0xff]  ;;  %v2043_v47 = vld [vmem:[%s2316_s21 + $0x1e8] sm:$0xff]  ;;  %v1288_v52 = vsel %vm397_vm0, %v2044_v44, 0 }
  0x55   : > { %v482_v48 = vld [vmem:[%s2341_s9 + $0x50] sm:$0xf]  ;;  %v483_v49 = vld [vmem:[%s2341_s9 + $0x54] sm:$0xf]  ;;  %v484_v50 = vld [vmem:[%s2341_s9 + $0x58] sm:$0xf] }
  0x56   : > { %v485_v51 = vld [vmem:[%s2341_s9 + $0x5c] sm:$0xf]  ;;  %v1312_v53 = vsel %vm397_vm0, %v2045_v45, 0  ;;  %v1240_v54 = vsel %vm397_vm0, %v2042_v46, 0  ;;  %v1264_v55 = vsel %vm397_vm0, %v2043_v47, 0 }
  0x57   : > { %v489_v60 = vld [vmem:[%s2341_s9 + $0x6c] sm:$0xf]  ;;  %v490_v61 = vld [vmem:[%s2341_s9 + $0x70] sm:$0xf]  ;;  %v491_v62 = vld [vmem:[%s2341_s9 + $0x74] sm:$0xf] }
  0x58   : > { %769 = vmatpush.bf16.xpose.msra.mxu0 %v760_v58  ;;  %793 = vmatpush.bf16.xpose.msra.mxu1 %v784_v59  ;;  %v487_v58 = vld [vmem:[%s2341_s9 + $0x64] sm:$0xf]  ;;  %v488_v59 = vld [vmem:[%s2341_s9 + $0x68] sm:$0xf]  ;;  %v492_v63 = vld [vmem:[%s2341_s9 + $0x78] sm:$0xf] }
  0x59   : > { %817 = vmatpush.bf16.xpose.msra.mxu2 %v808_v56  ;;  %841 = vmatpush.bf16.xpose.msra.mxu3 %v832_v57  ;;  %v2159_v56 = vmov 0.0   ;;  %v486_v57 = vld [vmem:[%s2341_s9 + $0x60] sm:$0xf] }
  0x5a   : > { %398 = vst.msk [vmem:[#allocation2] sm:$0xff] %vm397_vm0, %v2159_v56 }
  0x5b   : > { %399 = vst.msk [vmem:[#allocation2 + $0x8] sm:$0xff] %vm397_vm0, %v2159_v56 }
  0x5c   : > { %400 = vst.msk [vmem:[#allocation2 + $0x10] sm:$0xff] %vm397_vm0, %v2159_v56 }
  0x5d   : > { %401 = vst.msk [vmem:[#allocation2 + $0x18] sm:$0xff] %vm397_vm0, %v2159_v56 }
  0x5e   : > { %402 = vst.msk [vmem:[#allocation2 + $0x20] sm:$0xff] %vm397_vm0, %v2159_v56 }
  0x5f   : > { %1872 = vmatmul.msk.bf16.vlgmr.msrb.gmra.mxu0 %vm397_vm0, %v466_v0  ;;  %1877 = vmatmul.msk.bf16.vlgmr.msrb.gmra.mxu1 %vm397_vm0, %v467_v1  ;;  %403 = vst.msk [vmem:[#allocation2 + $0x28] sm:$0xff] %vm397_vm0, %v2159_v56  ;;  %v493_v0 = vld [vmem:[%s2341_s9 + $0x7c] sm:$0xf] }
  0x60   : > { %865 = vmatpush.bf16.xpose.msrb.mxu0 %v856_v6  ;;  %889 = vmatpush.bf16.xpose.msrb.mxu1 %v880_v7  ;;  %404 = vst.msk [vmem:[#allocation2 + $0x30] sm:$0xff] %vm397_vm0, %v2159_v56 }
  0x61   : > { %405 = vst.msk [vmem:[#allocation2 + $0x38] sm:$0xff] %vm397_vm0, %v2159_v56  ;;  %v430_v1 = vld [vmem:[#allocation2] sm:$0xff] }
  0x62   : > { %1882 = vmatmul.msk.bf16.vlgmr.msrb.gmra.mxu2 %vm397_vm0, %v468_v2  ;;  %1887 = vmatmul.msk.bf16.vlgmr.msrb.gmra.mxu3 %vm397_vm0, %v469_v3  ;;  %406 = vst.msk [vmem:[#allocation2 + $0x40] sm:$0xff] %vm397_vm0, %v2159_v56  ;;  %v431_v2 = vld [vmem:[#allocation2 + $0x8] sm:$0xff] }
  0x63   : > { %913 = vmatpush.bf16.xpose.msrb.mxu2 %v904_v4  ;;  %937 = vmatpush.bf16.xpose.msrb.mxu3 %v928_v5  ;;  %407 = vst.msk [vmem:[#allocation2 + $0x48] sm:$0xff] %vm397_vm0, %v2159_v56  ;;  %v432_v7 = vld [vmem:[#allocation2 + $0x10] sm:$0xff] }
  0x64   : > { %408 = vst.msk [vmem:[#allocation2 + $0x50] sm:$0xff] %vm397_vm0, %v2159_v56  ;;  %v433_v8 = vld [vmem:[#allocation2 + $0x18] sm:$0xff] }
  0x65   : > { %409 = vst.msk [vmem:[#allocation2 + $0x58] sm:$0xff] %vm397_vm0, %v2159_v56 }
  0x66   : > { %410 = vst.msk [vmem:[#allocation2 + $0x60] sm:$0xff] %vm397_vm0, %v2159_v56  ;;  %v435_v22 = vld [vmem:[#allocation2 + $0x28] sm:$0xff] }
  0x67   : > { %411 = vst.msk [vmem:[#allocation2 + $0x68] sm:$0xff] %vm397_vm0, %v2159_v56 }
  0x68   : > { %412 = vst.msk [vmem:[#allocation2 + $0x70] sm:$0xff] %vm397_vm0, %v2159_v56  ;;  %v437_v32 = vld [vmem:[#allocation2 + $0x38] sm:$0xff] }
  0x69   : > { %413 = vst.msk [vmem:[#allocation2 + $0x78] sm:$0xff] %vm397_vm0, %v2159_v56 }
  0x6a   : > { %414 = vst.msk [vmem:[#allocation2 + $0x80] sm:$0xff] %vm397_vm0, %v2159_v56  ;;  %v439_v46 = vld [vmem:[#allocation2 + $0x48] sm:$0xff] }
  0x6b   : > { %415 = vst.msk [vmem:[#allocation2 + $0x88] sm:$0xff] %vm397_vm0, %v2159_v56 }
  0x6c   : > { %416 = vst.msk [vmem:[#allocation2 + $0x90] sm:$0xff] %vm397_vm0, %v2159_v56 }
  0x6d   : > { %417 = vst.msk [vmem:[#allocation2 + $0x98] sm:$0xff] %vm397_vm0, %v2159_v56 }
  0x6e   : > { %418 = vst.msk [vmem:[#allocation2 + $0xa0] sm:$0xff] %vm397_vm0, %v2159_v56 }
  0x6f   : > { %1892 = vmatmul.msk.bf16.vlgmr.msra.gmra.mxu0 %vm397_vm0, %v470_v12  ;;  %1897 = vmatmul.msk.bf16.vlgmr.msra.gmra.mxu1 %vm397_vm0, %v471_v13  ;;  %419 = vst.msk [vmem:[#allocation2 + $0xa8] sm:$0xff] %vm397_vm0, %v2159_v56 }
  0x70   : > { %961 = vmatpush.bf16.xpose.msra.mxu0 %v952_v18  ;;  %985 = vmatpush.bf16.xpose.msra.mxu1 %v976_v19  ;;  %420 = vst.msk [vmem:[#allocation2 + $0xb0] sm:$0xff] %vm397_vm0, %v2159_v56  ;;  %v434_v19 = vld [vmem:[#allocation2 + $0x20] sm:$0xff] }
  0x71   : > { %421 = vst.msk [vmem:[#allocation2 + $0xb8] sm:$0xff] %vm397_vm0, %v2159_v56 }
  0x72   : > { %1902 = vmatmul.msk.bf16.vlgmr.msra.gmra.mxu2 %vm397_vm0, %v472_v14  ;;  %1907 = vmatmul.msk.bf16.vlgmr.msra.gmra.mxu3 %vm397_vm0, %v473_v15  ;;  %422 = vst.msk [vmem:[#allocation2 + $0xc0] sm:$0xff] %vm397_vm0, %v2159_v56 }
  0x73   : > { %1009 = vmatpush.bf16.xpose.msra.mxu2 %v1000_v16  ;;  %1033 = vmatpush.bf16.xpose.msra.mxu3 %v1024_v17  ;;  %423 = vst.msk [vmem:[#allocation2 + $0xc8] sm:$0xff] %vm397_vm0, %v2159_v56 }
  0x74   : > { %424 = vst.msk [vmem:[#allocation2 + $0xd0] sm:$0xff] %vm397_vm0, %v2159_v56 }
  0x75   : > { %425 = vst.msk [vmem:[#allocation2 + $0xd8] sm:$0xff] %vm397_vm0, %v2159_v56 }
  0x76   : > { %426 = vst.msk [vmem:[#allocation2 + $0xe0] sm:$0xff] %vm397_vm0, %v2159_v56 }
  0x77   : > { %427 = vst.msk [vmem:[#allocation2 + $0xe8] sm:$0xff] %vm397_vm0, %v2159_v56 }
  0x78   : > { %428 = vst.msk [vmem:[#allocation2 + $0xf0] sm:$0xff] %vm397_vm0, %v2159_v56 }
  0x79   : > { %429 = vst.msk [vmem:[#allocation2 + $0xf8] sm:$0xff] %vm397_vm0, %v2159_v56  ;;  %v441_v56 = vld [vmem:[#allocation2 + $0x58] sm:$0xff] }
  0x7f   : > { %1912 = vmatmul.msk.bf16.vlgmr.msrb.gmra.mxu0 %vm397_vm0, %v474_v24  ;;  %1917 = vmatmul.msk.bf16.vlgmr.msrb.gmra.mxu1 %vm397_vm0, %v475_v25 }
  0x80   : > { %1057 = vmatpush.bf16.xpose.msrb.mxu0 %v1048_v30  ;;  %1081 = vmatpush.bf16.xpose.msrb.mxu1 %v1072_v31  ;;  %v436_v31 = vld [vmem:[#allocation2 + $0x30] sm:$0xff] }
  0x82   : > { %1922 = vmatmul.msk.bf16.vlgmr.msrb.gmra.mxu2 %vm397_vm0, %v476_v26  ;;  %1927 = vmatmul.msk.bf16.vlgmr.msrb.gmra.mxu3 %vm397_vm0, %v477_v27 }
  0x83   : > { %1105 = vmatpush.bf16.xpose.msrb.mxu2 %v1096_v28  ;;  %1129 = vmatpush.bf16.xpose.msrb.mxu3 %v1120_v29 }
  0x8f   : > { %1932 = vmatmul.msk.bf16.vlgmr.msra.gmra.mxu0 %vm397_vm0, %v478_v36  ;;  %1937 = vmatmul.msk.bf16.vlgmr.msra.gmra.mxu1 %vm397_vm0, %v479_v37 }
  0x90   : > { %1153 = vmatpush.bf16.xpose.msra.mxu0 %v1144_v42  ;;  %1177 = vmatpush.bf16.xpose.msra.mxu1 %v1168_v43  ;;  %v438_v43 = vld [vmem:[#allocation2 + $0x40] sm:$0xff] }
  0x92   : > { %1942 = vmatmul.msk.bf16.vlgmr.msra.gmra.mxu2 %vm397_vm0, %v480_v38  ;;  %1947 = vmatmul.msk.bf16.vlgmr.msra.gmra.mxu3 %vm397_vm0, %v481_v39 }
  0x93   : > { %1201 = vmatpush.bf16.xpose.msra.mxu2 %v1192_v40  ;;  %1225 = vmatpush.bf16.xpose.msra.mxu3 %v1216_v41 }
  0x9f   : > { %1952 = vmatmul.msk.bf16.vlgmr.msrb.gmra.mxu0 %vm397_vm0, %v482_v48  ;;  %1957 = vmatmul.msk.bf16.vlgmr.msrb.gmra.mxu1 %vm397_vm0, %v483_v49 }
  0xa0   : > { %1249 = vmatpush.bf16.xpose.msrb.mxu0 %v1240_v54  ;;  %1273 = vmatpush.bf16.xpose.msrb.mxu1 %v1264_v55  ;;  %v440_v55 = vld [vmem:[#allocation2 + $0x50] sm:$0xff] }
  0xa2   : > { %1962 = vmatmul.msk.bf16.vlgmr.msrb.gmra.mxu2 %vm397_vm0, %v484_v50  ;;  %1967 = vmatmul.msk.bf16.vlgmr.msrb.gmra.mxu3 %vm397_vm0, %v485_v51 }
  0xa3   : > { %1297 = vmatpush.bf16.xpose.msrb.mxu2 %v1288_v52  ;;  %1321 = vmatpush.bf16.xpose.msrb.mxu3 %v1312_v53 }
  0xaf   : > { %1972 = vmatmul.msk.bf16.vlgmr.msra.gmra.mxu0 %vm397_vm0, %v486_v57  ;;  %1977 = vmatmul.msk.bf16.vlgmr.msra.gmra.mxu1 %vm397_vm0, %v487_v58 }
  0xb2   : > { %1982 = vmatmul.msk.bf16.vlgmr.msra.gmra.mxu2 %vm397_vm0, %v488_v59  ;;  %1987 = vmatmul.msk.bf16.vlgmr.msra.gmra.mxu3 %vm397_vm0, %v489_v60 }
  0xbf   : > { %1992 = vmatmul.msk.bf16.vlgmr.msrb.gmra.mxu0 %vm397_vm0, %v490_v61  ;;  %1997 = vmatmul.msk.bf16.vlgmr.msrb.gmra.mxu1 %vm397_vm0, %v491_v62 }
  0xc2   : > { %2002 = vmatmul.msk.bf16.vlgmr.msrb.gmra.mxu2 %vm397_vm0, %v492_v63  ;;  %2007 = vmatmul.msk.bf16.vlgmr.msrb.gmra.mxu3 %vm397_vm0, %v493_v0 }
  0xcc   : > { %v579_v3 = vpop.f32.mrf.mxu0  ;;  %v603_v4 = vpop.f32.mrf.mxu1 }
  0xcd   : > { %v1327_v5 = vadd.f32 %v579_v3, %v430_v1  ;;  %v1328_v6 = vadd.f32 %v603_v4, %v431_v2  ;;  %v442_v3 = vld [vmem:[#allocation2 + $0x60] sm:$0xff] }
  0xcf   : > { %1359 = vst.msk [vmem:[#allocation2] sm:$0xff] %vm397_vm0, %v1327_v5 }
  0xd0   : > { %1360 = vst.msk [vmem:[#allocation2 + $0x8] sm:$0xff] %vm397_vm0, %v1328_v6  ;;  %v443_v6 = vld [vmem:[#allocation2 + $0x68] sm:$0xff] }
  0xd4   : > { %v581_v13 = vpop.f32.mrf.mxu0  ;;  %v605_v14 = vpop.f32.mrf.mxu1 }
  0xd5   : > { %v627_v9 = vpop.f32.mrf.mxu2  ;;  %v651_v10 = vpop.f32.mrf.mxu3 }
  0xd6   : > { %v1329_v11 = vadd.f32 %v627_v9, %v432_v7  ;;  %v1330_v12 = vadd.f32 %v651_v10, %v433_v8  ;;  %v1394_v15 = vld [vmem:[#allocation2] sm:$0xff] }
  0xd7   : > { %v1426_v16 = vpack.c.bf16 %v1394_v15, %v1394_v15  ;;  %v1395_v17 = vld [vmem:[#allocation2 + $0x8] sm:$0xff]  ;;  %v444_v15 = vld [vmem:[#allocation2 + $0x70] sm:$0xff] }
  0xd8   : > { %1361 = vst.msk [vmem:[#allocation2 + $0x10] sm:$0xff] %vm397_vm0, %v1329_v11  ;;  %v1427_v18 = vpack.c.bf16 %v1395_v17, %v1395_v17 }
  0xd9   : > { %1362 = vst.msk [vmem:[#allocation2 + $0x18] sm:$0xff] %vm397_vm0, %v1330_v12 }
  0xda   : > { %1459 = vst.msk [vmem:[%s2488_s23] sm:$0xf] %vm1458_vm1, %v1426_v16  ;;  %v445_v16 = vld [vmem:[#allocation2 + $0x78] sm:$0xff] }
  0xdb   : > { %1460 = vst.msk [vmem:[%s2488_s23 + $0x4] sm:$0xf] %vm1458_vm1, %v1427_v18 }
  0xdc   : > { %v675_v23 = vpop.f32.mrf.mxu0  ;;  %v699_v24 = vpop.f32.mrf.mxu1 }
  0xdd   : > { %v629_v20 = vpop.f32.mrf.mxu2  ;;  %v653_v21 = vpop.f32.mrf.mxu3  ;;  %v1331_v26 = vadd.f32 %v675_v23, %v434_v19  ;;  %v1332_v29 = vadd.f32 %v699_v24, %v435_v22 }
  0xdf   : > { %v1396_v25 = vld [vmem:[#allocation2 + $0x10] sm:$0xff]  ;;  %1363 = vst.msk [vmem:[#allocation2 + $0x20] sm:$0xff] %vm397_vm0, %v1331_v26 }
  0xe0   : > { %v1428_v27 = vpack.c.bf16 %v1396_v25, %v1396_v25  ;;  %v1397_v28 = vld [vmem:[#allocation2 + $0x18] sm:$0xff]  ;;  %1364 = vst.msk [vmem:[#allocation2 + $0x28] sm:$0xff] %vm397_vm0, %v1332_v29 }
  0xe1   : > { %v1429_v30 = vpack.c.bf16 %v1397_v28, %v1397_v28 }
  0xe2   : > { %1461 = vst.msk [vmem:[%s2488_s23 + $0x8] sm:$0xf] %vm1458_vm1, %v1428_v27  ;;  %v446_v27 = vld [vmem:[#allocation2 + $0x80] sm:$0xff] }
  0xe3   : > { %1462 = vst.msk [vmem:[%s2488_s23 + $0xc] sm:$0xf] %vm1458_vm1, %v1429_v30  ;;  %v447_v30 = vld [vmem:[#allocation2 + $0x88] sm:$0xff] }
  0xe4   : > { %v677_v37 = vpop.f32.mrf.mxu0  ;;  %v701_v38 = vpop.f32.mrf.mxu1 }
  0xe5   : > { %v723_v33 = vpop.f32.mrf.mxu2  ;;  %v747_v34 = vpop.f32.mrf.mxu3 }
  0xe6   : > { %v1333_v35 = vadd.f32 %v723_v33, %v436_v31  ;;  %v1334_v36 = vadd.f32 %v747_v34, %v437_v32  ;;  %v1398_v39 = vld [vmem:[#allocation2 + $0x20] sm:$0xff] }
  0xe7   : > { %v1430_v40 = vpack.c.bf16 %v1398_v39, %v1398_v39  ;;  %v1399_v41 = vld [vmem:[#allocation2 + $0x28] sm:$0xff]  ;;  %v448_v39 = vld [vmem:[#allocation2 + $0x90] sm:$0xff] }
  0xe8   : > { %1365 = vst.msk [vmem:[#allocation2 + $0x30] sm:$0xff] %vm397_vm0, %v1333_v35  ;;  %v1431_v42 = vpack.c.bf16 %v1399_v41, %v1399_v41 }
  0xe9   : > { %1366 = vst.msk [vmem:[#allocation2 + $0x38] sm:$0xff] %vm397_vm0, %v1334_v36 }
  0xea   : > { %1463 = vst.msk [vmem:[%s2488_s23 + $0x10] sm:$0xf] %vm1458_vm1, %v1430_v40  ;;  %v449_v40 = vld [vmem:[#allocation2 + $0x98] sm:$0xff] }
  0xeb   : > { %1464 = vst.msk [vmem:[%s2488_s23 + $0x14] sm:$0xf] %vm1458_vm1, %v1431_v42 }
  0xec   : > { %v771_v47 = vpop.f32.mrf.mxu0  ;;  %v795_v48 = vpop.f32.mrf.mxu1 }
  0xed   : > { %v725_v44 = vpop.f32.mrf.mxu2  ;;  %v749_v45 = vpop.f32.mrf.mxu3  ;;  %v1335_v50 = vadd.f32 %v771_v47, %v438_v43  ;;  %v1336_v53 = vadd.f32 %v795_v48, %v439_v46 }
  0xef   : > { %v1400_v49 = vld [vmem:[#allocation2 + $0x30] sm:$0xff]  ;;  %1367 = vst.msk [vmem:[#allocation2 + $0x40] sm:$0xff] %vm397_vm0, %v1335_v50 }
  0xf0   : > { %v1432_v51 = vpack.c.bf16 %v1400_v49, %v1400_v49  ;;  %v1401_v52 = vld [vmem:[#allocation2 + $0x38] sm:$0xff]  ;;  %1368 = vst.msk [vmem:[#allocation2 + $0x48] sm:$0xff] %vm397_vm0, %v1336_v53 }
  0xf1   : > { %v1433_v54 = vpack.c.bf16 %v1401_v52, %v1401_v52 }
  0xf2   : > { %1465 = vst.msk [vmem:[%s2488_s23 + $0x18] sm:$0xf] %vm1458_vm1, %v1432_v51  ;;  %v450_v51 = vld [vmem:[#allocation2 + $0xa0] sm:$0xff] }
  0xf3   : > { %1466 = vst.msk [vmem:[%s2488_s23 + $0x1c] sm:$0xf] %vm1458_vm1, %v1433_v54  ;;  %v451_v54 = vld [vmem:[#allocation2 + $0xa8] sm:$0xff] }
  0xf4   : > { %v773_v61 = vpop.f32.mrf.mxu0  ;;  %v797_v62 = vpop.f32.mrf.mxu1 }
  0xf5   : > { %v819_v57 = vpop.f32.mrf.mxu2  ;;  %v843_v58 = vpop.f32.mrf.mxu3 }
  0xf6   : > { %v1337_v59 = vadd.f32 %v819_v57, %v440_v55  ;;  %v1338_v60 = vadd.f32 %v843_v58, %v441_v56  ;;  %v1402_v63 = vld [vmem:[#allocation2 + $0x40] sm:$0xff] }
  0xf7   : > { %v1434_v0 = vpack.c.bf16 %v1402_v63, %v1402_v63  ;;  %v1403_v1 = vld [vmem:[#allocation2 + $0x48] sm:$0xff]  ;;  %v452_v63 = vld [vmem:[#allocation2 + $0xb0] sm:$0xff] }
  0xf8   : > { %1369 = vst.msk [vmem:[#allocation2 + $0x50] sm:$0xff] %vm397_vm0, %v1337_v59  ;;  %v1435_v2 = vpack.c.bf16 %v1403_v1, %v1403_v1 }
  0xf9   : > { %1370 = vst.msk [vmem:[#allocation2 + $0x58] sm:$0xff] %vm397_vm0, %v1338_v60 }
  0xfa   : > { %1467 = vst.msk [vmem:[%s2488_s23 + $0x20] sm:$0xf] %vm1458_vm1, %v1434_v0  ;;  %v453_v0 = vld [vmem:[#allocation2 + $0xb8] sm:$0xff] }
  0xfb   : > { %1468 = vst.msk [vmem:[%s2488_s23 + $0x24] sm:$0xf] %vm1458_vm1, %v1435_v2 }
  0xfc   : > { %v867_v7 = vpop.f32.mrf.mxu0  ;;  %v891_v8 = vpop.f32.mrf.mxu1 }
  0xfd   : > { %v821_v4 = vpop.f32.mrf.mxu2  ;;  %v845_v5 = vpop.f32.mrf.mxu3  ;;  %v1339_v10 = vadd.f32 %v867_v7, %v442_v3  ;;  %v1340_v13 = vadd.f32 %v891_v8, %v443_v6 }
  0xff   : > { %v1404_v9 = vld [vmem:[#allocation2 + $0x50] sm:$0xff]  ;;  %1371 = vst.msk [vmem:[#allocation2 + $0x60] sm:$0xff] %vm397_vm0, %v1339_v10 }
 0x100   : > { %v1436_v11 = vpack.c.bf16 %v1404_v9, %v1404_v9  ;;  %v1405_v12 = vld [vmem:[#allocation2 + $0x58] sm:$0xff]  ;;  %1372 = vst.msk [vmem:[#allocation2 + $0x68] sm:$0xff] %vm397_vm0, %v1340_v13 }
 0x101   : > { %v1437_v14 = vpack.c.bf16 %v1405_v12, %v1405_v12 }
 0x102   : > { %1469 = vst.msk [vmem:[%s2488_s23 + $0x28] sm:$0xf] %vm1458_vm1, %v1436_v11  ;;  %v454_v11 = vld [vmem:[#allocation2 + $0xc0] sm:$0xff] }
 0x103   : > { %1470 = vst.msk [vmem:[%s2488_s23 + $0x2c] sm:$0xf] %vm1458_vm1, %v1437_v14  ;;  %v455_v14 = vld [vmem:[#allocation2 + $0xc8] sm:$0xff] }
 0x104   : > { %v869_v21 = vpop.f32.mrf.mxu0  ;;  %v893_v22 = vpop.f32.mrf.mxu1 }
 0x105   : > { %v915_v17 = vpop.f32.mrf.mxu2  ;;  %v939_v18 = vpop.f32.mrf.mxu3 }
 0x106   : > { %v1341_v19 = vadd.f32 %v915_v17, %v444_v15  ;;  %v1342_v20 = vadd.f32 %v939_v18, %v445_v16  ;;  %v1406_v23 = vld [vmem:[#allocation2 + $0x60] sm:$0xff] }
 0x107   : > { %v1438_v24 = vpack.c.bf16 %v1406_v23, %v1406_v23  ;;  %v1407_v25 = vld [vmem:[#allocation2 + $0x68] sm:$0xff]  ;;  %v456_v23 = vld [vmem:[#allocation2 + $0xd0] sm:$0xff] }
 0x108   : > { %1373 = vst.msk [vmem:[#allocation2 + $0x70] sm:$0xff] %vm397_vm0, %v1341_v19  ;;  %v1439_v26 = vpack.c.bf16 %v1407_v25, %v1407_v25 }
 0x109   : > { %1374 = vst.msk [vmem:[#allocation2 + $0x78] sm:$0xff] %vm397_vm0, %v1342_v20 }
 0x10a   : > { %1471 = vst.msk [vmem:[%s2488_s23 + $0x30] sm:$0xf] %vm1458_vm1, %v1438_v24  ;;  %v457_v24 = vld [vmem:[#allocation2 + $0xd8] sm:$0xff] }
 0x10b   : > { %1472 = vst.msk [vmem:[%s2488_s23 + $0x34] sm:$0xf] %vm1458_vm1, %v1439_v26 }
 0x10c   : > { %v963_v31 = vpop.f32.mrf.mxu0  ;;  %v987_v32 = vpop.f32.mrf.mxu1 }
 0x10d   : > { %v917_v28 = vpop.f32.mrf.mxu2  ;;  %v941_v29 = vpop.f32.mrf.mxu3  ;;  %v1343_v34 = vadd.f32 %v963_v31, %v446_v27  ;;  %v1344_v37 = vadd.f32 %v987_v32, %v447_v30 }
 0x10f   : > { %v1408_v33 = vld [vmem:[#allocation2 + $0x70] sm:$0xff]  ;;  %1375 = vst.msk [vmem:[#allocation2 + $0x80] sm:$0xff] %vm397_vm0, %v1343_v34 }
 0x110   : > { %v1440_v35 = vpack.c.bf16 %v1408_v33, %v1408_v33  ;;  %v1409_v36 = vld [vmem:[#allocation2 + $0x78] sm:$0xff]  ;;  %1376 = vst.msk [vmem:[#allocation2 + $0x88] sm:$0xff] %vm397_vm0, %v1344_v37 }
 0x111   : > { %v1441_v38 = vpack.c.bf16 %v1409_v36, %v1409_v36 }
 0x112   : > { %1473 = vst.msk [vmem:[%s2488_s23 + $0x38] sm:$0xf] %vm1458_vm1, %v1440_v35  ;;  %v458_v35 = vld [vmem:[#allocation2 + $0xe0] sm:$0xff] }
 0x113   : > { %1474 = vst.msk [vmem:[%s2488_s23 + $0x3c] sm:$0xf] %vm1458_vm1, %v1441_v38  ;;  %v459_v38 = vld [vmem:[#allocation2 + $0xe8] sm:$0xff] }
 0x114   : > { %v965_v45 = vpop.f32.mrf.mxu0  ;;  %v989_v46 = vpop.f32.mrf.mxu1 }
 0x115   : > { %v1011_v41 = vpop.f32.mrf.mxu2  ;;  %v1035_v42 = vpop.f32.mrf.mxu3 }
 0x116   : > { %v1345_v43 = vadd.f32 %v1011_v41, %v448_v39  ;;  %v1346_v44 = vadd.f32 %v1035_v42, %v449_v40  ;;  %v1410_v47 = vld [vmem:[#allocation2 + $0x80] sm:$0xff] }
 0x117   : > { %v1442_v48 = vpack.c.bf16 %v1410_v47, %v1410_v47  ;;  %v1411_v49 = vld [vmem:[#allocation2 + $0x88] sm:$0xff]  ;;  %v460_v47 = vld [vmem:[#allocation2 + $0xf0] sm:$0xff] }
 0x118   : > { %1377 = vst.msk [vmem:[#allocation2 + $0x90] sm:$0xff] %vm397_vm0, %v1345_v43  ;;  %v1443_v50 = vpack.c.bf16 %v1411_v49, %v1411_v49 }
 0x119   : > { %1378 = vst.msk [vmem:[#allocation2 + $0x98] sm:$0xff] %vm397_vm0, %v1346_v44 }
 0x11a   : > { %1475 = vst.msk [vmem:[%s2488_s23 + $0x40] sm:$0xf] %vm1458_vm1, %v1442_v48  ;;  %v461_v48 = vld [vmem:[#allocation2 + $0xf8] sm:$0xff] }
 0x11b   : > { %1476 = vst.msk [vmem:[%s2488_s23 + $0x44] sm:$0xf] %vm1458_vm1, %v1443_v50 }
 0x11c   : > { %v1059_v55 = vpop.f32.mrf.mxu0  ;;  %v1083_v56 = vpop.f32.mrf.mxu1 }
 0x11d   : > { %v1013_v52 = vpop.f32.mrf.mxu2  ;;  %v1037_v53 = vpop.f32.mrf.mxu3  ;;  %v1347_v58 = vadd.f32 %v1059_v55, %v450_v51  ;;  %v1348_v61 = vadd.f32 %v1083_v56, %v451_v54 }
 0x11f   : > { %v1412_v57 = vld [vmem:[#allocation2 + $0x90] sm:$0xff]  ;;  %1379 = vst.msk [vmem:[#allocation2 + $0xa0] sm:$0xff] %vm397_vm0, %v1347_v58 }
 0x120   : > { %v1444_v59 = vpack.c.bf16 %v1412_v57, %v1412_v57  ;;  %v1413_v60 = vld [vmem:[#allocation2 + $0x98] sm:$0xff]  ;;  %1380 = vst.msk [vmem:[#allocation2 + $0xa8] sm:$0xff] %vm397_vm0, %v1348_v61 }
 0x121   : > { %v1445_v62 = vpack.c.bf16 %v1413_v60, %v1413_v60 }
 0x122   : > { %1477 = vst.msk [vmem:[%s2488_s23 + $0x48] sm:$0xf] %vm1458_vm1, %v1444_v59 }
 0x123   : > { %1478 = vst.msk [vmem:[%s2488_s23 + $0x4c] sm:$0xf] %vm1458_vm1, %v1445_v62 }
 0x124   : > { %v1061_v5 = vpop.f32.mrf.mxu0  ;;  %v1085_v6 = vpop.f32.mrf.mxu1 }
 0x125   : > { %v1107_v1 = vpop.f32.mrf.mxu2  ;;  %v1131_v2 = vpop.f32.mrf.mxu3  ;;  %v1527_v5 = vld [vmem:[%s2488_s23 + $0x10] sm:$0xf] (%p2223_p6)  ;;  %v1529_v6 = vld [vmem:[%s2488_s23 + $0x14] sm:$0xf] (%p2223_p6) }
 0x126   : > { %v1349_v3 = vadd.f32 %v1107_v1, %v452_v63  ;;  %v1350_v4 = vadd.f32 %v1131_v2, %v453_v0  ;;  %v1414_v7 = vld [vmem:[#allocation2 + $0xa0] sm:$0xff]  ;;  %1528 = vst [vmem:[%s2591_s20 + $0x20] sm:$0xf] (%p2223_p6), %v1527_v5 }
 0x127   : > { %v1446_v8 = vpack.c.bf16 %v1414_v7, %v1414_v7  ;;  %v1415_v9 = vld [vmem:[#allocation2 + $0xa8] sm:$0xff]  ;;  %v1519_v1 = vld [vmem:[%s2488_s23] sm:$0xf] (%p2223_p6)  ;;  %v1521_v2 = vld [vmem:[%s2488_s23 + $0x4] sm:$0xf] (%p2223_p6) }
 0x128   : > { %1381 = vst.msk [vmem:[#allocation2 + $0xb0] sm:$0xff] %vm397_vm0, %v1349_v3  ;;  %v1447_v10 = vpack.c.bf16 %v1415_v9, %v1415_v9  ;;  %v1523_v3 = vld [vmem:[%s2488_s23 + $0x8] sm:$0xf] (%p2223_p6)  ;;  %v1531_v7 = vld [vmem:[%s2488_s23 + $0x18] sm:$0xf] (%p2223_p6) }
 0x129   : > { %1382 = vst.msk [vmem:[#allocation2 + $0xb8] sm:$0xff] %vm397_vm0, %v1350_v4  ;;  %v1525_v4 = vld [vmem:[%s2488_s23 + $0xc] sm:$0xf] (%p2223_p6)  ;;  %v1535_v9 = vld [vmem:[%s2488_s23 + $0x20] sm:$0xf] (%p2223_p6) }
 0x12a   : > { %1479 = vst.msk [vmem:[%s2488_s23 + $0x50] sm:$0xf] %vm1458_vm1, %v1446_v8  ;;  %v1533_v8 = vld [vmem:[%s2488_s23 + $0x1c] sm:$0xf] (%p2223_p6) }
 0x12b   : > { %1480 = vst.msk [vmem:[%s2488_s23 + $0x54] sm:$0xf] %vm1458_vm1, %v1447_v10  ;;  %v1537_v10 = vld [vmem:[%s2488_s23 + $0x24] sm:$0xf] (%p2223_p6) }
 0x12c   : > { %v1155_v15 = vpop.f32.mrf.mxu0  ;;  %v1179_v16 = vpop.f32.mrf.mxu1  ;;  %1520 = vst [vmem:[%s2591_s20] sm:$0xf] (%p2223_p6), %v1519_v1 }
 0x12d   : > { %v1109_v12 = vpop.f32.mrf.mxu2  ;;  %v1133_v13 = vpop.f32.mrf.mxu3  ;;  %v1351_v18 = vadd.f32 %v1155_v15, %v454_v11  ;;  %v1352_v21 = vadd.f32 %v1179_v16, %v455_v14  ;;  %1522 = vst [vmem:[%s2591_s20 + $0x8] sm:$0xf] (%p2223_p6), %v1521_v2  ;;  %v1539_v11 = vld [vmem:[%s2488_s23 + $0x28] sm:$0xf] (%p2223_p6)  ;;  %v1545_v14 = vld [vmem:[%s2488_s23 + $0x34] sm:$0xf] (%p2223_p6) }
 0x12e   : > { %1524 = vst [vmem:[%s2591_s20 + $0x10] sm:$0xf] (%p2223_p6), %v1523_v3  ;;  %v1541_v12 = vld [vmem:[%s2488_s23 + $0x2c] sm:$0xf] (%p2223_p6)  ;;  %v1543_v13 = vld [vmem:[%s2488_s23 + $0x30] sm:$0xf] (%p2223_p6) }
 0x12f   : > { %v1416_v17 = vld [vmem:[#allocation2 + $0xb0] sm:$0xff]  ;;  %1383 = vst.msk [vmem:[#allocation2 + $0xc0] sm:$0xff] %vm397_vm0, %v1351_v18  ;;  %v1547_v15 = vld [vmem:[%s2488_s23 + $0x38] sm:$0xf] (%p2223_p6)  ;;  %v1549_v16 = vld [vmem:[%s2488_s23 + $0x3c] sm:$0xf] (%p2223_p6) }
 0x130   : > { %v1448_v19 = vpack.c.bf16 %v1416_v17, %v1416_v17  ;;  %v1417_v20 = vld [vmem:[#allocation2 + $0xb8] sm:$0xff]  ;;  %1384 = vst.msk [vmem:[#allocation2 + $0xc8] sm:$0xff] %vm397_vm0, %v1352_v21  ;;  %v1551_v17 = vld [vmem:[%s2488_s23 + $0x40] sm:$0xf] (%p2223_p6)  ;;  %v1553_v18 = vld [vmem:[%s2488_s23 + $0x44] sm:$0xf] (%p2223_p6) }
 0x131   : > { %v1449_v22 = vpack.c.bf16 %v1417_v20, %v1417_v20  ;;  %1526 = vst [vmem:[%s2591_s20 + $0x18] sm:$0xf] (%p2223_p6), %v1525_v4  ;;  %v1557_v20 = vld [vmem:[%s2488_s23 + $0x4c] sm:$0xf] (%p2223_p6)  ;;  %v1559_v21 = vld [vmem:[%s2488_s23 + $0x50] sm:$0xf] (%p2223_p6) }
 0x132   : > { %1481 = vst.msk [vmem:[%s2488_s23 + $0x58] sm:$0xf] %vm1458_vm1, %v1448_v19  ;;  %v1555_v19 = vld [vmem:[%s2488_s23 + $0x48] sm:$0xf] (%p2223_p6) }
 0x133   : > { %1482 = vst.msk [vmem:[%s2488_s23 + $0x5c] sm:$0xf] %vm1458_vm1, %v1449_v22  ;;  %v1561_v22 = vld [vmem:[%s2488_s23 + $0x54] sm:$0xf] (%p2223_p6) }
 0x134   : > { %v1157_v29 = vpop.f32.mrf.mxu0  ;;  %v1181_v30 = vpop.f32.mrf.mxu1  ;;  %1530 = vst [vmem:[%s2591_s20 + $0x28] sm:$0xf] (%p2223_p6), %v1529_v6 }
 0x135   : > { %v1203_v25 = vpop.f32.mrf.mxu2  ;;  %v1227_v26 = vpop.f32.mrf.mxu3  ;;  %1532 = vst [vmem:[%s2591_s20 + $0x30] sm:$0xf] (%p2223_p6), %v1531_v7 }
 0x136   : > { %v1353_v27 = vadd.f32 %v1203_v25, %v456_v23  ;;  %v1354_v28 = vadd.f32 %v1227_v26, %v457_v24  ;;  %v1418_v31 = vld [vmem:[#allocation2 + $0xc0] sm:$0xff]  ;;  %1534 = vst [vmem:[%s2591_s20 + $0x38] sm:$0xf] (%p2223_p6), %v1533_v8 }
 0x137   : > { %v1450_v32 = vpack.c.bf16 %v1418_v31, %v1418_v31  ;;  %v1419_v33 = vld [vmem:[#allocation2 + $0xc8] sm:$0xff]  ;;  %1536 = vst [vmem:[%s2591_s20 + $0x40] sm:$0xf] (%p2223_p6), %v1535_v9 }
 0x138   : > { %1385 = vst.msk [vmem:[#allocation2 + $0xd0] sm:$0xff] %vm397_vm0, %v1353_v27  ;;  %v1451_v34 = vpack.c.bf16 %v1419_v33, %v1419_v33 }
 0x139   : > { %1386 = vst.msk [vmem:[#allocation2 + $0xd8] sm:$0xff] %vm397_vm0, %v1354_v28  ;;  %v1563_v23 = vld [vmem:[%s2488_s23 + $0x58] sm:$0xf] (%p2223_p6) }
 0x13a   : > { %1483 = vst.msk [vmem:[%s2488_s23 + $0x60] sm:$0xf] %vm1458_vm1, %v1450_v32  ;;  %v1565_v24 = vld [vmem:[%s2488_s23 + $0x5c] sm:$0xf] (%p2223_p6) }
 0x13b   : > { %1484 = vst.msk [vmem:[%s2488_s23 + $0x64] sm:$0xf] %vm1458_vm1, %v1451_v34 }
 0x13c   : > { %v1251_v39 = vpop.f32.mrf.mxu0  ;;  %v1275_v40 = vpop.f32.mrf.mxu1  ;;  %1538 = vst [vmem:[%s2591_s20 + $0x48] sm:$0xf] (%p2223_p6), %v1537_v10 }
 0x13d   : > { %v1205_v36 = vpop.f32.mrf.mxu2  ;;  %v1229_v37 = vpop.f32.mrf.mxu3  ;;  %v1355_v42 = vadd.f32 %v1251_v39, %v458_v35  ;;  %v1356_v45 = vadd.f32 %v1275_v40, %v459_v38  ;;  %1540 = vst [vmem:[%s2591_s20 + $0x50] sm:$0xf] (%p2223_p6), %v1539_v11 }
 0x13e   : > { %1542 = vst [vmem:[%s2591_s20 + $0x58] sm:$0xf] (%p2223_p6), %v1541_v12 }
 0x13f   : > { %v1420_v41 = vld [vmem:[#allocation2 + $0xd0] sm:$0xff]  ;;  %1387 = vst.msk [vmem:[#allocation2 + $0xe0] sm:$0xff] %vm397_vm0, %v1355_v42 }
 0x140   : > { %v1452_v43 = vpack.c.bf16 %v1420_v41, %v1420_v41  ;;  %v1421_v44 = vld [vmem:[#allocation2 + $0xd8] sm:$0xff]  ;;  %1388 = vst.msk [vmem:[#allocation2 + $0xe8] sm:$0xff] %vm397_vm0, %v1356_v45 }
 0x141   : > { %v1453_v46 = vpack.c.bf16 %v1421_v44, %v1421_v44  ;;  %1544 = vst [vmem:[%s2591_s20 + $0x60] sm:$0xf] (%p2223_p6), %v1543_v13  ;;  %v1567_v25 = vld [vmem:[%s2488_s23 + $0x60] sm:$0xf] (%p2223_p6) }
 0x142   : > { %1485 = vst.msk [vmem:[%s2488_s23 + $0x68] sm:$0xf] %vm1458_vm1, %v1452_v43  ;;  %v1569_v26 = vld [vmem:[%s2488_s23 + $0x64] sm:$0xf] (%p2223_p6) }
 0x143   : > { %1486 = vst.msk [vmem:[%s2488_s23 + $0x6c] sm:$0xf] %vm1458_vm1, %v1453_v46 }
 0x144   : > { %v1253_v53 = vpop.f32.mrf.mxu0  ;;  %v1277_v54 = vpop.f32.mrf.mxu1  ;;  %1546 = vst [vmem:[%s2591_s20 + $0x68] sm:$0xf] (%p2223_p6), %v1545_v14 }
 0x145   : > { %v1299_v49 = vpop.f32.mrf.mxu2  ;;  %v1323_v50 = vpop.f32.mrf.mxu3  ;;  %1548 = vst [vmem:[%s2591_s20 + $0x70] sm:$0xf] (%p2223_p6), %v1547_v15 }
 0x146   : > { %v1357_v51 = vadd.f32 %v1299_v49, %v460_v47  ;;  %v1358_v52 = vadd.f32 %v1323_v50, %v461_v48  ;;  %v1422_v55 = vld [vmem:[#allocation2 + $0xe0] sm:$0xff]  ;;  %1550 = vst [vmem:[%s2591_s20 + $0x78] sm:$0xf] (%p2223_p6), %v1549_v16 }
 0x147   : > { %v1454_v56 = vpack.c.bf16 %v1422_v55, %v1422_v55  ;;  %v1423_v57 = vld [vmem:[#allocation2 + $0xe8] sm:$0xff]  ;;  %1552 = vst [vmem:[%s2591_s20 + $0x80] sm:$0xf] (%p2223_p6), %v1551_v17 }
 0x148   : > { %1389 = vst.msk [vmem:[#allocation2 + $0xf0] sm:$0xff] %vm397_vm0, %v1357_v51  ;;  %v1455_v58 = vpack.c.bf16 %v1423_v57, %v1423_v57 }
 0x149   : > { %1390 = vst.msk [vmem:[#allocation2 + $0xf8] sm:$0xff] %vm397_vm0, %v1358_v52  ;;  %v1571_v27 = vld [vmem:[%s2488_s23 + $0x68] sm:$0xf] (%p2223_p6) }
 0x14a   : > { %1487 = vst.msk [vmem:[%s2488_s23 + $0x70] sm:$0xf] %vm1458_vm1, %v1454_v56  ;;  %v1573_v28 = vld [vmem:[%s2488_s23 + $0x6c] sm:$0xf] (%p2223_p6) }
 0x14b   : > { %1488 = vst.msk [vmem:[%s2488_s23 + $0x74] sm:$0xf] %vm1458_vm1, %v1455_v58 }
 0x14c   : > { %1554 = vst [vmem:[%s2591_s20 + $0x88] sm:$0xf] (%p2223_p6), %v1553_v18 }
 0x14d   : > { %v1301_v59 = vpop.f32.mrf.mxu2  ;;  %v1325_v60 = vpop.f32.mrf.mxu3  ;;  %1556 = vst [vmem:[%s2591_s20 + $0x90] sm:$0xf] (%p2223_p6), %v1555_v19 }
 0x14e   : > { %1558 = vst [vmem:[%s2591_s20 + $0x98] sm:$0xf] (%p2223_p6), %v1557_v20 }
 0x14f   : > { %v1424_v61 = vld [vmem:[#allocation2 + $0xf0] sm:$0xff]  ;;  %1497 = sbr.rel (!%p2223_p6) target bundleno = 349 (0x15d), region = 81  ;;  %1560 = vst [vmem:[%s2591_s20 + $0xa0] sm:$0xf] (%p2223_p6), %v1559_v21 }
 0x150   : > { %v1456_v62 = vpack.c.bf16 %v1424_v61, %v1424_v61  ;;  %v1425_v63 = vld [vmem:[#allocation2 + $0xf8] sm:$0xff]  ;;  %1562 = vst [vmem:[%s2591_s20 + $0xa8] sm:$0xf] (%p2223_p6), %v1561_v22 }
 0x151   : > { %v1457_v0 = vpack.c.bf16 %v1425_v63, %v1425_v63  ;;  %1564 = vst [vmem:[%s2591_s20 + $0xb0] sm:$0xf] (%p2223_p6), %v1563_v23  ;;  %v1575_v29 = vld [vmem:[%s2488_s23 + $0x70] sm:$0xf] (%p2223_p6) }
 0x152   : > { %1489 = vst.msk [vmem:[%s2488_s23 + $0x78] sm:$0xf] %vm1458_vm1, %v1456_v62  ;;  %v1577_v30 = vld [vmem:[%s2488_s23 + $0x74] sm:$0xf] (%p2223_p6) }
 0x153   : > { %1490 = vst.msk [vmem:[%s2488_s23 + $0x7c] sm:$0xf] %vm1458_vm1, %v1457_v0 }
 0x154   : > { %1566 = vst [vmem:[%s2591_s20 + $0xb8] sm:$0xf] %v1565_v24 }
 0x155   : > { %1568 = vst [vmem:[%s2591_s20 + $0xc0] sm:$0xf] %v1567_v25 }
 0x156   : > { %1570 = vst [vmem:[%s2591_s20 + $0xc8] sm:$0xf] %v1569_v26 }
 0x157   : > { %1572 = vst [vmem:[%s2591_s20 + $0xd0] sm:$0xf] %v1571_v27 }
 0x158   : > { %1574 = vst [vmem:[%s2591_s20 + $0xd8] sm:$0xf] %v1573_v28 }
 0x159   : > { %v1579_v31 = vld [vmem:[%s2488_s23 + $0x78] sm:$0xf]  ;;  %1576 = vst [vmem:[%s2591_s20 + $0xe0] sm:$0xf] %v1575_v29 }
 0x15a   : > { %v1581_v32 = vld [vmem:[%s2488_s23 + $0x7c] sm:$0xf]  ;;  %1578 = vst [vmem:[%s2591_s20 + $0xe8] sm:$0xf] %v1577_v30 }
 0x15b   : > { %1580 = vst [vmem:[%s2591_s20 + $0xf0] sm:$0xf] %v1579_v31 }
 0x15c   : > { %1582 = vst [vmem:[%s2591_s20 + $0xf8] sm:$0xf] %v1581_v32 }
 0x15d PF: > { %s12_s15 = sadd.s32 1, %s2157_s15   ;;  %s2680_s9 = smov %s2137_s10 }
 0x15e   : > { %p9_p13 = scmp.ge.s32.totalorder %s12_s15, 6   ;;  %s2681_s10 = smov %s2231_s24 }
 0x15f   : > { %s2682_s11 = smov %s2149_s13  ;;  %s2683_s12 = smov %s2153_s14 }
 0x160   : > { %s2684_s13 = smov %s2687_s16  ;;  %s2685_s14 = smov %s2691_s17 }
 0x161   :  { %11 = sbr.rel (!%p9_p13) target bundleno = 4 (0x4), region = 156 }

// kernel: triangle_multiplication_ffb.5
= control target key start
LH: loop header
LB: loop body
LE: loop exit
PB: predicated region body
PF: predicated region fallthrough
CT: control target
= control target key end

     0   :  { %s4094_s0 = inlined_call_operand.vmem [shape: bf16[2,256,32], index: 0, kind: input, shape index: {}]   ;;  %s4095_s1 = inlined_call_operand.vmem [shape: f32[2,256,16], index: 1, kind: input, shape index: {}]   ;;  %s4096_s2 = inlined_call_operand.vmem [shape: f32[1,16], index: 2, kind: input, shape index: {}]   ;;  %s4097_s3 = inlined_call_operand.vmem [shape: f32[1,16], index: 3, kind: input, shape index: {}]   ;;  %s4098_s4 = inlined_call_operand.vmem [shape: bf16[16,16], index: 4, kind: input, shape index: {}]   ;;  %s4099_s5 = inlined_call_operand.vmem [shape: f32[1,16], index: 5, kind: input, shape index: {}]   ;;  %s4100_s6 = inlined_call_operand.vmem [shape: f32[1,32], index: 6, kind: input, shape index: {}]   ;;  %s4101_s7 = inlined_call_operand.vmem [shape: f32[1,32], index: 7, kind: input, shape index: {}]   ;;  %s4102_s8 = inlined_call_operand.vmem [shape: bf16[32,16], index: 8, kind: input, shape index: {}]   ;;  %s4103_s9 = inlined_call_operand.vmem [shape: f32[1,16], index: 9, kind: input, shape index: {}]   ;;  %s4104_s10 = inlined_call_operand.hbm [shape: f32[2,256,16], index: 10, kind: output, shape index: {}]  }
   0x1   :  { %4109 = sst [smem:[#allocation9_spill]] %s4094_s0 }
   0x2   :  { %15 = vsyncpa [#allocation3], 0 }
   0x3   :  { %17 = vsyncpa [#allocation3 + $0x1], 0  ;;  %s2429_s13 = smov 0   ;;  %s2431_s14 = smov 0  }
   0x4   :  { %s2433_s15 = smov 0   ;;  %s2435_s16 = smov 0  }
   0x5   :  { %s2437_s17 = smov 0   ;;  %s2439_s18 = smov 0  }
   0x6   :  { %s2441_s19 = smov 0   ;;  %s2443_s20 = smov 0  }
   0x7 LB: > { %4110 = sst [smem:[#allocation5_spill]] %s2364_s19  ;;  %s1938_s21 = sadd.s32 4294967295, %s2368_s20   ;;  %s2368_s20 = sphi %s2443_s20, %s23_s20   ;;  %s2364_s19 = sphi %s2441_s19, %s4196_s19   ;;  %s2360_s18 = sphi %s2439_s18, %s4201_s18   ;;  %s2356_s17 = sphi %s2437_s17, %s4194_s17   ;;  %s2352_s16 = sphi %s2435_s16, %s4200_s16   ;;  %s2348_s15 = sphi %s2433_s15, %s4199_s15   ;;  %s2344_s14 = sphi %s2431_s14, %s4198_s14   ;;  %s2340_s13 = sphi %s2429_s13, %s4197_s13  }
   0x8   : > { %s1939_s22 = sadd.s32 4294967294, %s2368_s20   ;;  %s32_s23 = sadd.s32 1, %s2360_s18 }
   0x9   : > { %p33_p0 = scmp.ge.s32.totalorder %s32_s23, 2  ;;  %s35_s24 = sadd.s32 1, %s2364_s19 }
   0xa   : > { %p278_p1 = scmp.ne.s32.totalorder %s2348_s15, %s2344_s14  ;;  %p279_p2 = scmp.eq.s32.totalorder %s1938_s21, 3 }
   0xb   : > { %s4203_s23 = smov (%p33_p0, %s32_s23), 0  ;;  %s4205_s24 = smov (!%p33_p0, %s35_s24), %s2364_s19 }
   0xc   : > { %4111 = sst [smem:[#allocation6_spill]] %s4203_s23  ;;  %s264_s25 = ssub.s32 %s2360_s18, %s4203_s23 }
   0xd   : > { %p2480_p3 = por %p279_p2, %p278_p1  ;;  %p37_p4 = scmp.ge.s32.totalorder %s4205_s24, 2 }
   0xe   : > { %p284_p5 = scmp.ne.s32.totalorder %s2344_s14, %s2340_s13  ;;  %p285_p6 = scmp.eq.s32.totalorder %s1939_s22, 3 }
   0xf   : > { %p1942_p7 = scmp.ge.s32.totalorder %s2368_s20, 1  ;;  %s4207_s24 = smov (%p37_p4, %s4205_s24), 0 }
  0x10   : > { %4113 = sst [smem:[#allocation7_spill]] %s4207_s24  ;;  %p2489_p8 = por %p285_p6, %p284_p5 }
  0x11   : > { %p353_p9 = scmp.lt.s32.totalorder %s2368_s20, 5  ;;  %s263_s28 = ssub.s32 %s2364_s19, %s4207_s24 }
  0x12   : > { %s268_s29 = sadd.s32 1, %s2348_s15  ;;  %s265_s30 = sor.u32 %s264_s25, %s263_s28 }
  0x13   : > { %p354_p10 = pnand %p1942_p7, %p353_p9  ;;  %p266_p11 = scmp.eq.s32.totalorder %s265_s30, 0 }
  0x15   : > { %s2498_s11 = scalar_select %p266_p11, %s2348_s15, %s268_s29  }
  0x16   : > { %357 = sbr.rel (%p354_p10) target bundleno = 598 (0x256), region = 60 }
  0x1b   : > { %s2501_s12 = sshll.u32 %s2352_s16, 4  ;;  %p405_p12 = scmp.lt.s32.totalorder %s2356_s17, 1  ;;  %vm444_vm0 = vcmask 130048   ;;  %vm1273_vm1 = vcmask 261120   ;;  %v2370_v61 = vmov 16.0  }
  0x1c   : > { %p407_p13 = scmp.lt.s32.totalorder %s2501_s12, 31  ;;  %s4115_s0 = sld [smem:[#allocation9_spill]]  ;;  %2126 = vrcp.f32 %v2370_v61 }
  0x1d   : > { %s406_s21 = scalar_select %p405_p12, %s2356_s17, 1 }
  0x1e   : > { %s408_s22 = scalar_select %p407_p13, %s2501_s12, 31 }
  0x1f   : > { %s1945_s23 = sshll.u32 %s406_s21, 5  ;;  %s1996_s25 = sshll.u32 %s2356_s17, 5 }
  0x20   : > { %s410_s24 = sadd.s32 %s1945_s23, %s408_s22  ;;  %s401_s23 = sand.u32 1, %s2344_s14  }
  0x21   : > { %s1949_s19 = sshll.u32 %s410_s24, 3  ;;  %s1946_s16 = sshll.u32 %s410_s24, 2 }
  0x22   : > { %s2510_s29 = scalar_lea.vmem %s4095_s1, %s1949_s19  ;;  %s2539_s30 = scalar_lea.vmem %s4115_s0, %s1946_s16 }
  0x23   : > { %v2513_v0 = vld [vmem:[%s2510_s29 + $0x10] sm:$0xff]  ;;  %v2516_v1 = vld [vmem:[%s2510_s29] sm:$0xff]  ;;  %v2528_v6 = vld [vmem:[%s2510_s29 + $0x18] sm:$0xff]  ;;  %s1943_s21 = sshll.u32 %s401_s23, 7  ;;  %s1832_s17 = sadd.s32 %s1996_s25, %s2501_s12 }
  0x24   : > { %v2519_v2 = vld [vmem:[%s2510_s29 + $0x50] sm:$0xff]  ;;  %v451_v3 = vsel %vm444_vm0, %v2513_v0, 0.0  ;;  %v445_v4 = vsel %vm444_vm0, %v2516_v1, 0.0  ;;  %v2531_v7 = vld [vmem:[%s2510_s29 + $0x8] sm:$0xff]  ;;  %v2534_v8 = vld [vmem:[%s2510_s29 + $0x58] sm:$0xff]  ;;  %v454_v9 = vsel %vm444_vm0, %v2528_v6, 0.0 }
  0x25   : > { %v475_v5 = vsel %vm444_vm0, %v2519_v2, 0.0  ;;  %452 = vadd.xlane.f32.xlu1 %v451_v3  ;;  %446 = vadd.xlane.f32.xlu0 %v445_v4  ;;  %v448_v10 = vsel %vm444_vm0, %v2531_v7, 0.0  ;;  %v478_v11 = vsel %vm444_vm0, %v2534_v8, 0.0  ;;  %v2548_v12 = vld [vmem:[%s2539_s30 + $0x20] sm:$0xff]   ;;  %v2551_v13 = vld [vmem:[%s2510_s29 + $0x28] sm:$0xff]  ;;  %v2584_v28 = vld [vmem:[%s2510_s29 + $0x38] sm:$0xff]  ;;  %v2127_v3 = vpop.eup %2126 }
  0x26   : > { %476 = vadd.xlane.f32.xlu2 %v475_v5  ;;  %v2554_v14 = vld [vmem:[%s2510_s29 + $0x20] sm:$0xff]  ;;  %v2021_v15 = vunpack.c.l.bf16 %v2548_v12  ;;  %v460_v16 = vsel %vm444_vm0, %v2551_v13, 0.0  ;;  %v2022_v19 = vunpack.c.h.bf16 %v2548_v12  ;;  %v2569_v21 = vld [vmem:[%s2510_s29 + $0x68] sm:$0xff]  ;;  %v466_v31 = vsel %vm444_vm0, %v2584_v28, 0.0  ;;  %v2599_v34 = vld [vmem:[%s2510_s29 + $0x30] sm:$0xff]  ;;  %s3731_s22 = scalar_lea.vmem [#allocation2], %s1943_s21 }
  0x27   : > { %v457_v17 = vsel %vm444_vm0, %v2554_v14, 0.0  ;;  %v2566_v20 = vld [vmem:[%s2510_s29 + $0x60] sm:$0xff]  ;;  %v484_v25 = vsel %vm444_vm0, %v2569_v21, 0.0  ;;  %v2595_v32 = vld [vmem:[%s2539_s30 + $0x28] sm:$0xff]   ;;  %v2602_v35 = vld [vmem:[%s2510_s29 + $0x70] sm:$0xff]  ;;  %v463_v36 = vsel %vm444_vm0, %v2599_v34, 0.0  ;;  %vm498_vm2 = vweird.f32 %v2127_v3 }
  0x28   : > { %v1298_v18 = vsel %vm1273_vm1, %v2021_v15, 0.0  ;;  %v481_v22 = vsel %vm444_vm0, %v2566_v20, 0.0  ;;  %v1301_v23 = vsel %vm1273_vm1, %v2022_v19, 0.0  ;;  %v2577_v24 = vld [vmem:[%s2539_s30] sm:$0xff]   ;;  %v2025_v33 = vunpack.c.l.bf16 %v2595_v32  ;;  %v2612_v39 = vld [vmem:[%s2539_s30 + $0x8] sm:$0xff]   ;;  %v2617_v42 = vld [vmem:[%s2510_s29 + $0x78] sm:$0xff] }
  0x29   : > { %v2006_v26 = vunpack.c.h.bf16 %v2577_v24  ;;  %v2005_v27 = vunpack.c.l.bf16 %v2577_v24  ;;  %v487_v38 = vsel %vm444_vm0, %v2602_v35, 0.0  ;;  %v2026_v40 = vunpack.c.h.bf16 %v2595_v32  ;;  %v2629_v47 = vld [vmem:[%s2510_s29 + $0x48] sm:$0xff]  ;;  %v2632_v48 = vld [vmem:[%s2510_s29 + $0x40] sm:$0xff]  ;;  %v2642_v52 = vld [vmem:[%s2539_s30 + $0x30] sm:$0xff]   ;;  %s1997_s12 = sshll.u32 %s1832_s17, 3  ;;  %s1835_s24 = sshll.u32 %s3731_s22, 4  ;;  %s1836_s24 = int_to_ptr.vmem [resolvable:$true] %s1835_s24 }
  0x2a   : > { %v1304_v37 = vsel %vm1273_vm1, %v2025_v33, 0.0  ;;  %v2010_v41 = vunpack.c.h.bf16 %v2612_v39  ;;  %v490_v44 = vsel %vm444_vm0, %v2617_v42, 0.0  ;;  %v2009_v46 = vunpack.c.l.bf16 %v2612_v39  ;;  %v2645_v53 = vld [vmem:[%s2539_s30 + $0x10] sm:$0xff]   ;;  %v2660_v60 = vld [vmem:[%s2539_s30 + $0x38] sm:$0xff]   ;;  %s1834_s19 = scalar_lea.hbm %s4104_s10, %s1997_s12  ;;  %s1821_s21 = scalar_lea.sflag [#allocation3], %s401_s23 }
  0x2b   : > { %v1277_v29 = vsel %vm1273_vm1, %v2006_v26, 0.0  ;;  %v1274_v30 = vsel %vm1273_vm1, %v2005_v27, 0.0  ;;  %v1307_v43 = vsel %vm1273_vm1, %v2026_v40, 0.0  ;;  %v472_v50 = vsel %vm444_vm0, %v2629_v47, 0.0  ;;  %s2294_s16 = scalar_lea.hbm %s4104_s10, 512 }
  0x2c   : > { %v1283_v45 = vsel %vm1273_vm1, %v2010_v41, 0.0  ;;  %v1280_v49 = vsel %vm1273_vm1, %v2009_v46, 0.0  ;;  %v469_v51 = vsel %vm444_vm0, %v2632_v48, 0.0  ;;  %v2029_v54 = vunpack.c.l.bf16 %v2642_v52 }
  0x2d   : > { %455 = vadd.xlane.f32.xlu1 %v454_v9  ;;  %449 = vadd.xlane.f32.xlu0 %v448_v10  ;;  %v2014_v55 = vunpack.c.h.bf16 %v2645_v53  ;;  %v2030_v56 = vunpack.c.h.bf16 %v2642_v52  ;;  %v2034_v62 = vunpack.c.h.bf16 %v2660_v60  ;;  %v494_v4 = vmul.f32 16.0, %v2127_v3 }
  0x2e   : > { %479 = vadd.xlane.f32.xlu2 %v478_v11  ;;  %v1310_v57 = vsel %vm1273_vm1, %v2029_v54, 0.0 }
  0x2f   : > { %v1289_v58 = vsel %vm1273_vm1, %v2014_v55, 0.0  ;;  %v1313_v59 = vsel %vm1273_vm1, %v2030_v56, 0.0  ;;  %v1319_v63 = vsel %vm1273_vm1, %v2034_v62, 0.0  ;;  %v495_v5 = vsub.f32 1.0, %v494_v4 }
  0x31   : > { %v496_v9 = vmul.f32 %v2127_v3, %v495_v5  ;;  %v2033_v5 = vunpack.c.l.bf16 %v2660_v60 }
  0x33   : > { %v497_v10 = vadd.f32 %v2127_v3, %v496_v9 }
  0x35   : > { %461 = vadd.xlane.f32.xlu1 %v460_v16  ;;  %458 = vadd.xlane.f32.xlu0 %v457_v17  ;;  %v2666_v11 = vsel %vm498_vm2, %v2127_v3, %v497_v10 }
  0x36   : > { %1299 = vadd.xlane.f32.xlu2 %v1298_v18 }
  0x3d   : > { %482 = vadd.xlane.f32.xlu1 %v481_v22  ;;  %1302 = vadd.xlane.f32.xlu0 %v1301_v23 }
  0x3e   : > { %485 = vadd.xlane.f32.xlu2 %v484_v25 }
  0x45   : > { %1278 = vadd.xlane.f32.xlu1 %v1277_v29  ;;  %1275 = vadd.xlane.f32.xlu0 %v1274_v30  ;;  %v2371_v29 = vmov 32.0  }
  0x46   : > { %467 = vadd.xlane.f32.xlu2 %v466_v31  ;;  %2128 = vrcp.f32 %v2371_v29 }
  0x4d   : > { %464 = vadd.xlane.f32.xlu1 %v463_v36  ;;  %1305 = vadd.xlane.f32.xlu0 %v1304_v37 }
  0x4e   : > { %488 = vadd.xlane.f32.xlu2 %v487_v38 }
  0x55   : > { %1308 = vadd.xlane.f32.xlu1 %v1307_v43  ;;  %491 = vadd.xlane.f32.xlu0 %v490_v44  ;;  %v2013_v44 = vunpack.c.l.bf16 %v2645_v53 }
  0x56   : > { %1284 = vadd.xlane.f32.xlu2 %v1283_v45 }
  0x5d   : > { %1281 = vadd.xlane.f32.xlu1 %v1280_v49  ;;  %473 = vadd.xlane.f32.xlu0 %v472_v50  ;;  %v2129_v50 = vpop.eup %2128 }
  0x5e   : > { %470 = vadd.xlane.f32.xlu2 %v469_v51  ;;  %vm1327_vm3 = vweird.f32 %v2129_v50 }
  0x65   : > { %1311 = vadd.xlane.f32.xlu1 %v1310_v57  ;;  %1290 = vadd.xlane.f32.xlu0 %v1289_v58  ;;  %v1286_v57 = vsel %vm1273_vm1, %v2013_v44, 0.0 }
  0x66   : > { %1314 = vadd.xlane.f32.xlu2 %v1313_v59 }
  0x6d   : > { %1320 = vadd.xlane.f32.xlu0 %v1319_v63  ;;  %v1323_v63 = vmul.f32 32.0, %v2129_v50 }
  0x98   : > { %v453_v16 = vpop.xlane.xlu1 %452  ;;  %v447_v17 = vpop.xlane.xlu0 %446 }
  0x99   : > { %v500_v18 = vmul.f32 %v2666_v11, %v447_v17  ;;  %v477_v22 = vpop.xlane.xlu2 %476  ;;  %v502_v17 = vmul.f32 %v2666_v11, %v453_v16 }
  0x9b   : > { %v2670_v23 = vsub.f32 %v2516_v1, %v500_v18 }
  0x9d   : > { %v532_v25 = vmul.f32 %v2670_v23, %v2670_v23 }
  0x9f   : > { %v548_v30 = vsel %vm444_vm0, %v532_v25, 0.0  ;;  %v1324_v25 = vsub.f32 1.0, %v1323_v63 }
  0xa0   : > { %v456_v31 = vpop.xlane.xlu1 %455  ;;  %v450_v36 = vpop.xlane.xlu0 %449  ;;  %549 = vadd.xlane.f32.xlu2 %v548_v30  ;;  %v1316_v30 = vsel %vm1273_vm1, %v2033_v5, 0.0 }
  0xa1   : > { %v503_v37 = vmul.f32 %v2666_v11, %v456_v31  ;;  %v501_v38 = vmul.f32 %v2666_v11, %v450_v36  ;;  %v480_v43 = vpop.xlane.xlu2 %479  ;;  %v2714_v36 = vsub.f32 %v2513_v0, %v502_v17  ;;  %v1325_v16 = vmul.f32 %v2129_v50, %v1324_v25 }
  0xa2   : > { %v511_v1 = vmul.f32 %v2666_v11, %v480_v43 }
  0xa3   : > { %v2680_v45 = vsub.f32 %v2528_v6, %v503_v37  ;;  %v2683_v49 = vsub.f32 %v2531_v7, %v501_v38  ;;  %v2698_v7 = vld [vmem:[%s2539_s30 + $0x18] sm:$0xff]   ;;  %s1837_s30 = sshll.u32 %s1834_s19, 4  ;;  %s1838_s30 = int_to_ptr.hbm [resolvable:$true] %s1837_s30 }
  0xa4   : > { %v2686_v51 = vsub.f32 %v2534_v8, %v511_v1  ;;  %v2018_v18 = vunpack.c.h.bf16 %v2698_v7  ;;  %s2288_s25 = sshra.s32 %s1838_s30, 4  ;;  %s2289_s25 = int_to_ptr.hbm [resolvable:$true] %s2288_s25 }
  0xa5   : > { %v535_v58 = vmul.f32 %v2680_v45, %v2680_v45  ;;  %v533_v59 = vmul.f32 %v2683_v49, %v2683_v49  ;;  %s2290_s17 = scalar_lea.hbm %s2289_s25, 128  ;;  %p2295_p4 = scmp.lt.s32.totalorder %s2289_s25, %s4104_s10 }
  0xa6   : > { %v543_v9 = vmul.f32 %v2686_v51, %v2686_v51  ;;  %v1295_v37 = vsel %vm1273_vm1, %v2018_v18, 0.0  ;;  %p2291_p0 = scmp.ne.s32.totalorder %s2289_s25, %s2290_s17  ;;  %p2296_p5 = scmp.lt.s32.totalorder %s2294_s16, %s2290_s17 }
  0xa7   : > { %v557_v6 = vsel %vm444_vm0, %v535_v58, 0.0  ;;  %v551_v61 = vsel %vm444_vm0, %v533_v59, 0.0  ;;  %v510_v59 = vmul.f32 %v2666_v11, %v477_v22 }
  0xa8   : > { %v462_v3 = vpop.xlane.xlu1 %461  ;;  %1287 = vadd.xlane.f32.xlu2 %v1286_v57  ;;  %558 = vadd.xlane.f32.xlu1 %v557_v6  ;;  %v459_v8 = vpop.xlane.xlu0 %458  ;;  %v581_v31 = vsel %vm444_vm0, %v543_v9, 0.0  ;;  %v2017_v57 = vunpack.c.l.bf16 %v2698_v7  ;;  %v534_v6 = vmul.f32 %v2714_v36, %v2714_v36  ;;  %p2292_p1 = pnand %p2291_p0, %p2480_p3  ;;  %p2297_p6 = por %p2296_p5, %p2295_p4 }
  0xa9   : > { %552 = vadd.xlane.f32.xlu0 %v551_v61  ;;  %v504_v4 = vmul.f32 %v2666_v11, %v459_v8  ;;  %v1300_v10 = vpop.xlane.xlu2 %1299  ;;  %v1326_v61 = vadd.f32 %v2129_v50, %v1325_v16  ;;  %v2738_v9 = vsub.f32 %v2519_v2, %v510_v59 }
  0xaa   : > { %v1292_v8 = vsel %vm1273_vm1, %v2017_v57, 0.0  ;;  %v554_v22 = vsel %vm444_vm0, %v534_v6, 0.0  ;;  %p2293_p2 = pneg %p2292_p1 }
  0xab   : > { %v2707_v29 = vsub.f32 %v2554_v14, %v504_v4  ;;  %v505_v14 = vmul.f32 %v2666_v11, %v462_v3  ;;  %v2741_v17 = vsel %vm1327_vm3, %v2129_v50, %v1326_v61  ;;  %v542_v50 = vmul.f32 %v2738_v9, %v2738_v9 }
  0xac   : > { %v1337_v2 = vmul.f32 %v2741_v17, %v1300_v10  ;;  %p2298_p7 = pnand %p2297_p6, %p2293_p2 }
  0xad   : > { %v536_v0 = vmul.f32 %v2707_v29, %v2707_v29  ;;  %v2728_v63 = vsub.f32 %v2551_v13, %v505_v14 }
  0xaf   : > { %v560_v4 = vsel %vm444_vm0, %v536_v0, 0.0  ;;  %v578_v0 = vsel %vm444_vm0, %v542_v50, 0.0 }
  0xb0   : > { %v483_v38 = vpop.xlane.xlu1 %482  ;;  %1317 = vadd.xlane.f32.xlu2 %v1316_v30  ;;  %582 = vadd.xlane.f32.xlu1 %v581_v31  ;;  %v1303_v43 = vpop.xlane.xlu0 %1302  ;;  %v537_v30 = vmul.f32 %v2728_v63, %v2728_v63 }
  0xb1   : > { %v512_v1 = vmul.f32 %v2666_v11, %v483_v38  ;;  %1296 = vadd.xlane.f32.xlu0 %v1295_v37  ;;  %v486_v58 = vpop.xlane.xlu2 %485  ;;  %v1338_v59 = vmul.f32 %v2741_v17, %v1303_v43 }
  0xb2   : > { %v563_v38 = vsel %vm444_vm0, %v537_v30, 0.0 }
  0xb3   : > { %v2731_v3 = vsub.f32 %v2566_v20, %v512_v1  ;;  %v513_v20 = vmul.f32 %v2666_v11, %v486_v58  ;;  %v2758_v1 = vsub.f32 %v2021_v15, %v1337_v2  ;;  %v2774_v43 = vsub.f32 %v2022_v19, %v1338_v59 }
  0xb5   : > { %v544_v31 = vmul.f32 %v2731_v3, %v2731_v3  ;;  %v2752_v16 = vsub.f32 %v2569_v21, %v513_v20  ;;  %v1369_v15 = vmul.f32 %v2758_v1, %v2758_v1  ;;  %v1370_v50 = vmul.f32 %v2774_v43, %v2774_v43 }
  0xb7   : > { %v584_v14 = vsel %vm444_vm0, %v544_v31, 0.0  ;;  %v545_v61 = vmul.f32 %v2752_v16, %v2752_v16 }
  0xb8   : > { %1293 = vadd.xlane.f32.xlu2 %v1292_v8  ;;  %561 = vadd.xlane.f32.xlu1 %v560_v4  ;;  %v1279_v13 = vpop.xlane.xlu1 %1278  ;;  %v1276_v25 = vpop.xlane.xlu0 %1275 }
  0xb9   : > { %555 = vadd.xlane.f32.xlu0 %v554_v22  ;;  %v468_v37 = vpop.xlane.xlu2 %467  ;;  %v1329_v4 = vmul.f32 %v2741_v17, %v1276_v25  ;;  %v587_v30 = vsel %vm444_vm0, %v545_v61, 0.0  ;;  %v1330_v19 = vmul.f32 %v2741_v17, %v1279_v13 }
  0xba   : > { %v507_v21 = vmul.f32 %v2666_v11, %v468_v37  ;;  %v1401_v37 = vsel %vm1273_vm1, %v1369_v15, 0.0 }
  0xbb   : > { %v2785_v25 = vsub.f32 %v2005_v27, %v1329_v4 }
  0xbc   : > { %v2777_v20 = vsub.f32 %v2584_v28, %v507_v21 }
  0xbd   : > { %v1361_v27 = vmul.f32 %v2785_v25, %v2785_v25 }
  0xbe   : > { %v539_v2 = vmul.f32 %v2777_v20, %v2777_v20 }
  0xbf   : > { %v1377_v21 = vsel %vm1273_vm1, %v1361_v27, 0.0 }
  0xc0   : > { %564 = vadd.xlane.f32.xlu2 %v563_v38  ;;  %585 = vadd.xlane.f32.xlu1 %v584_v14  ;;  %v465_v58 = vpop.xlane.xlu1 %464  ;;  %v1306_v10 = vpop.xlane.xlu0 %1305  ;;  %v569_v59 = vsel %vm444_vm0, %v539_v2, 0.0 }
  0xc1   : > { %v506_v6 = vmul.f32 %v2666_v11, %v465_v58  ;;  %579 = vadd.xlane.f32.xlu0 %v578_v0  ;;  %v489_v8 = vpop.xlane.xlu2 %488  ;;  %v1339_v38 = vmul.f32 %v2741_v17, %v1306_v10  ;;  %v2799_v58 = vsub.f32 %v2006_v26, %v1330_v19 }
  0xc2   : > { %v514_v28 = vmul.f32 %v2666_v11, %v489_v8 }
  0xc3   : > { %v2770_v22 = vsub.f32 %v2599_v34, %v506_v6  ;;  %v1404_v6 = vsel %vm1273_vm1, %v1370_v50, 0.0  ;;  %v2809_v61 = vsub.f32 %v2025_v33, %v1339_v38  ;;  %v1362_v8 = vmul.f32 %v2799_v58, %v2799_v58 }
  0xc4   : > { %v2802_v13 = vsub.f32 %v2602_v35, %v514_v28 }
  0xc5   : > { %v538_v31 = vmul.f32 %v2770_v22, %v2770_v22  ;;  %v1371_v15 = vmul.f32 %v2809_v61, %v2809_v61 }
  0xc6   : > { %v546_v26 = vmul.f32 %v2802_v13, %v2802_v13 }
  0xc7   : > { %v566_v34 = vsel %vm444_vm0, %v538_v31, 0.0  ;;  %v1407_v19 = vsel %vm1273_vm1, %v1371_v15, 0.0 }
  0xc8   : > { %588 = vadd.xlane.f32.xlu2 %v587_v30  ;;  %567 = vadd.xlane.f32.xlu1 %v566_v34  ;;  %v1309_v12 = vpop.xlane.xlu1 %1308  ;;  %v492_v14 = vpop.xlane.xlu0 %491  ;;  %v590_v31 = vsel %vm444_vm0, %v546_v26, 0.0  ;;  %v1380_v34 = vsel %vm1273_vm1, %v1362_v8, 0.0 }
  0xc9   : > { %1402 = vadd.xlane.f32.xlu0 %v1401_v37  ;;  %v1285_v0 = vpop.xlane.xlu2 %1284  ;;  %v1340_v24 = vmul.f32 %v2741_v17, %v1309_v12  ;;  %v515_v33 = vmul.f32 %v2666_v11, %v492_v14 }
  0xca   : > { %v1332_v35 = vmul.f32 %v2741_v17, %v1285_v0 }
  0xcb   : > { %v2822_v30 = vsub.f32 %v2026_v40, %v1340_v24  ;;  %v2832_v28 = vsub.f32 %v2617_v42, %v515_v33 }
  0xcc   : > { %v2827_v37 = vsub.f32 %v2010_v41, %v1332_v35 }
  0xcd   : > { %v1372_v41 = vmul.f32 %v2822_v30, %v2822_v30  ;;  %v547_v42 = vmul.f32 %v2832_v28, %v2832_v28 }
  0xce   : > { %v1364_v40 = vmul.f32 %v2827_v37, %v2827_v37 }
  0xcf   : > { %v1410_v0 = vsel %vm1273_vm1, %v1372_v41, 0.0 }
  0xd0   : > { %570 = vadd.xlane.f32.xlu2 %v569_v59  ;;  %1405 = vadd.xlane.f32.xlu1 %v1404_v6  ;;  %v1282_v10 = vpop.xlane.xlu1 %1281  ;;  %v474_v4 = vpop.xlane.xlu0 %473  ;;  %v1386_v14 = vsel %vm1273_vm1, %v1364_v40, 0.0 }
  0xd1   : > { %1378 = vadd.xlane.f32.xlu0 %v1377_v21  ;;  %v471_v12 = vpop.xlane.xlu2 %470  ;;  %v1331_v32 = vmul.f32 %v2741_v17, %v1282_v10  ;;  %v593_v21 = vsel %vm444_vm0, %v547_v42, 0.0  ;;  %v509_v39 = vmul.f32 %v2666_v11, %v474_v4 }
  0xd2   : > { %v508_v27 = vmul.f32 %v2666_v11, %v471_v12 }
  0xd3   : > { %v2845_v38 = vsub.f32 %v2009_v46, %v1331_v32  ;;  %v2867_v8 = vsub.f32 %v2629_v47, %v509_v39 }
  0xd4   : > { %v2854_v6 = vsub.f32 %v2632_v48, %v508_v27 }
  0xd5   : > { %v1363_v46 = vmul.f32 %v2845_v38, %v2845_v38  ;;  %v541_v47 = vmul.f32 %v2867_v8, %v2867_v8 }
  0xd6   : > { %v540_v35 = vmul.f32 %v2854_v6, %v2854_v6 }
  0xd7   : > { %v1383_v15 = vsel %vm1273_vm1, %v1363_v46, 0.0 }
  0xd8   : > { %591 = vadd.xlane.f32.xlu2 %v590_v31  ;;  %1381 = vadd.xlane.f32.xlu1 %v1380_v34  ;;  %v1312_v2 = vpop.xlane.xlu1 %1311  ;;  %v1291_v10 = vpop.xlane.xlu0 %1290  ;;  %v572_v34 = vsel %vm444_vm0, %v540_v35, 0.0 }
  0xd9   : > { %1408 = vadd.xlane.f32.xlu0 %v1407_v19  ;;  %v1341_v50 = vmul.f32 %v2741_v17, %v1312_v2  ;;  %v1315_v24 = vpop.xlane.xlu2 %1314 }
  0xda   : > { %v1342_v48 = vmul.f32 %v2741_v17, %v1315_v24 }
  0xdb   : > { %v2851_v59 = vsub.f32 %v2029_v54, %v1341_v50  ;;  %v1334_v54 = vmul.f32 %v2741_v17, %v1291_v10  ;;  %v2000_v50 = vld [vmem:[%s4098_s4] sm:$0xff] }
  0xdc   : > { %v2877_v31 = vsub.f32 %v2030_v56, %v1342_v48  ;;  %893 = vmatpush.bf16.msra.mxu0 %v2000_v50  ;;  %2042 = vmatpush.bf16.msra.mxu3 %v2000_v50 }
  0xdd   : > { %v1373_v26 = vmul.f32 %v2851_v59, %v2851_v59  ;;  %v2873_v4 = vsub.f32 %v2014_v55, %v1334_v54  ;;  %v575_v55 = vsel %vm444_vm0, %v541_v47, 0.0 }
  0xde   : > { %v1374_v19 = vmul.f32 %v2877_v31, %v2877_v31 }
  0xdf   : > { %v1413_v33 = vsel %vm1273_vm1, %v1373_v26, 0.0  ;;  %v1366_v12 = vmul.f32 %v2873_v4, %v2873_v4 }
  0xe0   : > { %1387 = vadd.xlane.f32.xlu2 %v1386_v14  ;;  %1411 = vadd.xlane.f32.xlu1 %v1410_v0  ;;  %v1416_v56 = vsel %vm1273_vm1, %v1374_v19, 0.0  ;;  %v1321_v2 = vpop.xlane.xlu0 %1320 }
  0xe1   : > { %594 = vadd.xlane.f32.xlu0 %v593_v21  ;;  %v1392_v52 = vsel %vm1273_vm1, %v1366_v12, 0.0  ;;  %v1344_v39 = vmul.f32 %v2741_v17, %v1321_v2 }
  0xe8   : > { %1384 = vadd.xlane.f32.xlu1 %v1383_v15  ;;  %1414 = vadd.xlane.f32.xlu2 %v1413_v33  ;;  %v2912_v33 = vsub.f32 %v2034_v62, %v1344_v39 }
  0xe9   : > { %573 = vadd.xlane.f32.xlu0 %v572_v34 }
  0xf0   : > { %576 = vadd.xlane.f32.xlu1 %v575_v55  ;;  %1393 = vadd.xlane.f32.xlu2 %v1392_v52 }
  0xf1   : > { %1417 = vadd.xlane.f32.xlu0 %v1416_v56 }
 0x113   : > { %v550_v32 = vpop.xlane.xlu2 %549 }
 0x114   : > { %v596_v40 = vmul.f32 %v550_v32, %v2666_v11  ;;  %v1376_v32 = vmul.f32 %v2912_v33, %v2912_v33 }
 0x116   : > { %v612_v41 = vadd.f32 1e-05, %v596_v40 }
 0x118   : > { %2130 = vrsqrt.f32 %v612_v41  ;;  %vm634_vm5 = vweird.f32 %v612_v41 }
 0x11b   : > { %v1288_v27 = vpop.xlane.xlu2 %1287  ;;  %v559_v42 = vpop.xlane.xlu1 %558 }
 0x11c   : > { %v1333_v14 = vmul.f32 %v2741_v17, %v1288_v27  ;;  %v599_v0 = vmul.f32 %v559_v42, %v2666_v11  ;;  %v553_v21 = vpop.xlane.xlu0 %552 }
 0x11d   : > { %v597_v10 = vmul.f32 %v553_v21, %v2666_v11 }
 0x11e   : > { %v2896_v24 = vpop.eup %2130  ;;  %v2901_v46 = vsub.f32 %v2013_v44, %v1333_v14  ;;  %v2903_v26 = vadd.f32 1e-05, %v599_v0  ;;  %v1422_v0 = vsel %vm1273_vm1, %v1376_v32, 0.0 }
 0x11f   : > { %v629_v54 = vmul.f32 %v2896_v24, %v612_v41  ;;  %v613_v48 = vadd.f32 1e-05, %v597_v10  ;;  %vm635_vm4 = vweird.f32 %v2896_v24 }
 0x120   : > { %2132 = vrsqrt.f32 %v2903_v26  ;;  %v1365_v35 = vmul.f32 %v2901_v46, %v2901_v46  ;;  %vm2951_vm7 = vmor %vm634_vm5, %vm635_vm4  ;;  %vm664_vm10 = vweird.f32 %v2903_v26 }
 0x121   : > { %v630_v15 = vmul.f32 %v2896_v24, %v629_v54  ;;  %2134 = vrsqrt.f32 %v613_v48  ;;  %vm644_vm6 = vweird.f32 %v613_v48 }
 0x122   : > { %v1389_v53 = vsel %vm1273_vm1, %v1365_v35, 0.0 }
 0x123   : > { %v631_v44 = vmul.f32 0.5, %v630_v15  ;;  %v1318_v34 = vpop.xlane.xlu2 %1317  ;;  %v583_v47 = vpop.xlane.xlu1 %582  ;;  %1390 = vadd.xlane.f32.xlu1 %v1389_v53 }
 0x124   : > { %v1343_v12 = vmul.f32 %v2741_v17, %v1318_v34  ;;  %v607_v19 = vmul.f32 %v583_v47, %v2666_v11  ;;  %v1297_v55 = vpop.xlane.xlu0 %1296 }
 0x125   : > { %v1336_v52 = vmul.f32 %v2741_v17, %v1297_v55  ;;  %v632_v50 = vsub.f32 1.5, %v631_v44 }
 0x126   : > { %v2918_v56 = vpop.eup %2132  ;;  %v2922_v2 = vsub.f32 %v2033_v5, %v1343_v12  ;;  %v2924_v62 = vadd.f32 1e-05, %v607_v19  ;;  %v2998_v19 = vld [vmem:[%s4097_s3] ss:$0 sm:$0xff] }
 0x127   : > { %v2135_v40 = vpop.eup %2134  ;;  %v659_v27 = vmul.f32 %v2918_v56, %v2903_v26  ;;  %v2933_v14 = vsub.f32 %v2018_v18, %v1336_v52  ;;  %v633_v21 = vmul.f32 %v2896_v24, %v632_v50  ;;  %vm665_vm11 = vweird.f32 %v2918_v56 }
 0x128   : > { %v639_v42 = vmul.f32 %v2135_v40, %v613_v48  ;;  %2136 = vrsqrt.f32 %v2924_v62  ;;  %v1375_v60 = vmul.f32 %v2922_v2, %v2922_v2  ;;  %vm645_vm8 = vweird.f32 %v2135_v40  ;;  %vm3006_vm12 = vmor %vm664_vm10, %vm665_vm11 }
 0x129   : > { %4116 = vst [vmem:[#allocation8_spill] sm:$0xff] %v2933_v14  ;;  %v660_v10 = vmul.f32 %v2918_v56, %v659_v27  ;;  %v1368_v47 = vmul.f32 %v2933_v14, %v2933_v14  ;;  %v637_v32 = vsel %vm2951_vm7, %v2896_v24, %v633_v21  ;;  %vm646_vm9 = vmor %vm644_vm6, %vm645_vm8  ;;  %vm744_vm13 = vweird.f32 %v2924_v62 }
 0x12a   : > { %v640_v5 = vmul.f32 %v2135_v40, %v639_v42  ;;  %v1419_v35 = vsel %vm1273_vm1, %v1375_v60, 0.0 }
 0x12b   : > { %v1294_v39 = vpop.xlane.xlu2 %1293  ;;  %v562_v54 = vpop.xlane.xlu1 %561  ;;  %1423 = vadd.xlane.f32.xlu1 %v1422_v0  ;;  %1420 = vadd.xlane.f32.xlu0 %v1419_v35  ;;  %v661_v50 = vmul.f32 0.5, %v660_v10  ;;  %v1398_v24 = vsel %vm1273_vm1, %v1368_v47, 0.0  ;;  %v2980_v10 = vld [vmem:[%s4096_s2] ss:$0 sm:$0xff] }
 0x12c   : > { %v641_v15 = vmul.f32 0.5, %v640_v5  ;;  %v1335_v18 = vmul.f32 %v2741_v17, %v1294_v39  ;;  %v600_v53 = vmul.f32 %v562_v54, %v2666_v11  ;;  %v556_v44 = vpop.xlane.xlu0 %555  ;;  %v788_v5 = vmul.f32 %v637_v32, %v2670_v23 }
 0x12d   : > { %v598_v34 = vmul.f32 %v556_v44, %v2666_v11  ;;  %v662_v39 = vsub.f32 1.5, %v661_v50 }
 0x12e   : > { %v2947_v12 = vpop.eup %2136  ;;  %v642_v55 = vsub.f32 1.5, %v641_v15  ;;  %v2957_v52 = vsub.f32 %v2017_v57, %v1335_v18  ;;  %v2959_v41 = vadd.f32 1e-05, %v600_v53  ;;  %v807_v47 = vmul.f32 %v2980_v10, %v788_v5 }
 0x12f   : > { %v739_v27 = vmul.f32 %v2947_v12, %v2924_v62  ;;  %v2966_v42 = vadd.f32 1e-05, %v598_v34  ;;  %v663_v26 = vmul.f32 %v2918_v56, %v662_v39  ;;  %vm745_vm14 = vweird.f32 %v2947_v12 }
 0x130   : > { %v643_v60 = vmul.f32 %v2135_v40, %v642_v55  ;;  %2138 = vrsqrt.f32 %v2959_v41  ;;  %v1367_v7 = vmul.f32 %v2957_v52, %v2957_v52  ;;  %vm3034_vm3 = vmor %vm744_vm13, %vm745_vm14  ;;  %vm674_vm5 = vweird.f32 %v2959_v41 }
 0x131   : > { %v740_v57 = vmul.f32 %v2947_v12, %v739_v27  ;;  %2140 = vrsqrt.f32 %v2966_v42  ;;  %vm654_vm15 = vweird.f32 %v2966_v42 }
 0x132   : > { %v647_v0 = vsel %vm646_vm9, %v2135_v40, %v643_v60  ;;  %v1395_v21 = vsel %vm1273_vm1, %v1367_v7, 0.0 }
 0x133   : > { %v789_v48 = vmul.f32 %v647_v0, %v2683_v49  ;;  %v565_v54 = vpop.xlane.xlu2 %564  ;;  %v586_v35 = vpop.xlane.xlu1 %585  ;;  %1396 = vadd.xlane.f32.xlu2 %v1395_v21  ;;  %1399 = vadd.xlane.f32.xlu0 %v1398_v24  ;;  %v741_v40 = vmul.f32 0.5, %v740_v57  ;;  %v826_v0 = vadd.f32 %v2998_v19, %v807_v47  ;;  %v667_v21 = vsel %vm3006_vm12, %v2918_v56, %v663_v26 }
 0x134   : > { %v601_v15 = vmul.f32 %v565_v54, %v2666_v11  ;;  %v608_v18 = vmul.f32 %v586_v35, %v2666_v11  ;;  %v580_v23 = vpop.xlane.xlu0 %579 }
 0x135   : > { %v606_v53 = vmul.f32 %v580_v23, %v2666_v11  ;;  %v808_v27 = vmul.f32 %v2980_v10, %v789_v48  ;;  %v742_v57 = vsub.f32 1.5, %v741_v40 }
 0x136   : > { %v2988_v44 = vpop.eup %2138  ;;  %v2990_v34 = vadd.f32 1e-05, %v601_v15  ;;  %v2992_v49 = vadd.f32 1e-05, %v608_v18 }
 0x137   : > { %v2141_v55 = vpop.eup %2140  ;;  %v669_v32 = vmul.f32 %v2988_v44, %v2959_v41  ;;  %v3003_v50 = vadd.f32 1e-05, %v606_v53  ;;  %v827_v39 = vadd.f32 %v2998_v19, %v808_v27  ;;  %v743_v40 = vmul.f32 %v2947_v12, %v742_v57 }
 0x138   : > { %v649_v7 = vmul.f32 %v2141_v55, %v2966_v42  ;;  %2142 = vrsqrt.f32 %v2990_v34  ;;  %vm655_vm2 = vweird.f32 %v2141_v55  ;;  %vm675_vm6 = vweird.f32 %v2988_v44 }
 0x139   : > { %v670_v24 = vmul.f32 %v2988_v44, %v669_v32  ;;  %2144 = vrsqrt.f32 %v2992_v49  ;;  %v842_v47 = vpack.c.bf16 %v827_v39, %v826_v0  ;;  %v791_v32 = vmul.f32 %v667_v21, %v2680_v45  ;;  %vm3044_vm4 = vmor %vm654_vm15, %vm655_vm2 }
 0x13a   : > { %v650_v5 = vmul.f32 %v2141_v55, %v649_v7  ;;  %2146 = vrsqrt.f32 %v3003_v50  ;;  %v747_v39 = vsel %vm3034_vm3, %v2947_v12, %v743_v40  ;;  %vm734_vm7 = vweird.f32 %v3003_v50  ;;  %vm3087_vm8 = vmor %vm674_vm5, %vm675_vm6 }
 0x13b   : > { %v589_v48 = vpop.xlane.xlu2 %588  ;;  %v568_v54 = vpop.xlane.xlu1 %567  ;;  %v671_v53 = vmul.f32 0.5, %v670_v24  ;;  %1954 = vmatmul.msk.bf16.vlgmr.msra.gmra.mxu0 %vm444_vm0, %v842_v47  ;;  %vm684_vm10 = vweird.f32 %v2990_v34  ;;  %vm754_vm11 = vweird.f32 %v2992_v49 }
 0x13c   : > { %v651_v35 = vmul.f32 0.5, %v650_v5  ;;  %v609_v15 = vmul.f32 %v589_v48, %v2666_v11  ;;  %v602_v18 = vmul.f32 %v568_v54, %v2666_v11  ;;  %v1403_v23 = vpop.xlane.xlu0 %1402 }
 0x13d   : > { %v1433_v56 = vmul.f32 %v1403_v23, %v2741_v17  ;;  %v672_v48 = vsub.f32 1.5, %v671_v53  ;;  %v810_v23 = vmul.f32 %v2980_v10, %v791_v32 }
 0x13e   : > { %v3027_v26 = vpop.eup %2142  ;;  %v652_v60 = vsub.f32 1.5, %v651_v35  ;;  %v3038_v7 = vadd.f32 1e-05, %v609_v15  ;;  %v3051_v62 = vadd.f32 1e-05, %v602_v18 }
 0x13f   : > { %v3040_v57 = vpop.eup %2144  ;;  %v679_v45 = vmul.f32 %v3027_v26, %v2990_v34  ;;  %v3058_v42 = vadd.f32 1e-05, %v1433_v56  ;;  %v799_v56 = vmul.f32 %v747_v39, %v2686_v51  ;;  %v673_v27 = vmul.f32 %v2988_v44, %v672_v48 }
 0x140   : > { %v3053_v5 = vpop.eup %2146  ;;  %v653_v0 = vmul.f32 %v2141_v55, %v652_v60  ;;  %v749_v21 = vmul.f32 %v3040_v57, %v2992_v49  ;;  %2148 = vrsqrt.f32 %v3038_v7  ;;  %vm685_vm13 = vweird.f32 %v3027_v26 }
 0x141   : > { %v729_v54 = vmul.f32 %v3053_v5, %v3003_v50  ;;  %v680_v15 = vmul.f32 %v3027_v26, %v679_v45  ;;  %2150 = vrsqrt.f32 %v3051_v62  ;;  %vm735_vm9 = vweird.f32 %v3053_v5  ;;  %vm3144_vm15 = vmor %vm684_vm10, %vm685_vm13 }
 0x142   : > { %v657_v35 = vsel %vm3044_vm4, %v2141_v55, %v653_v0  ;;  %v750_v18 = vmul.f32 %v3040_v57, %v749_v21  ;;  %2152 = vrsqrt.f32 %v3058_v42  ;;  %vm3110_vm12 = vmor %vm734_vm7, %vm735_vm9  ;;  %vm755_vm14 = vweird.f32 %v3040_v57 }
 0x143   : > { %v790_v47 = vmul.f32 %v657_v35, %v2714_v36  ;;  %v730_v12 = vmul.f32 %v3053_v5, %v729_v54  ;;  %v571_v40 = vpop.xlane.xlu2 %570  ;;  %v1406_v53 = vpop.xlane.xlu1 %1405  ;;  %v681_v45 = vmul.f32 0.5, %v680_v15  ;;  %v829_v35 = vadd.f32 %v2998_v19, %v810_v23  ;;  %vm3155_vm3 = vmor %vm754_vm11, %vm755_vm14 }
 0x144   : > { %v1379_v55 = vpop.xlane.xlu0 %1378  ;;  %v603_v60 = vmul.f32 %v571_v40, %v2666_v11  ;;  %v1434_v36 = vmul.f32 %v1406_v53, %v2741_v17  ;;  %v751_v0 = vmul.f32 0.5, %v750_v18  ;;  %v818_v15 = vmul.f32 %v2980_v10, %v799_v56 }
 0x145   : > { %v731_v32 = vmul.f32 0.5, %v730_v12  ;;  %v1425_v21 = vmul.f32 %v1379_v55, %v2741_v17  ;;  %v809_v54 = vmul.f32 %v2980_v10, %v790_v47  ;;  %v677_v12 = vsel %vm3087_vm8, %v2988_v44, %v673_v27 }
 0x146   : > { %v3081_v24 = vpop.eup %2148  ;;  %v3099_v41 = vadd.f32 1e-05, %v603_v60  ;;  %v3115_v53 = vadd.f32 1e-05, %v1434_v36  ;;  %v682_v56 = vsub.f32 1.5, %v681_v45  ;;  %vm764_vm2 = vweird.f32 %v3038_v7 }
 0x147   : > { %v732_v39 = vsub.f32 1.5, %v731_v32  ;;  %v759_v48 = vmul.f32 %v3081_v24, %v3038_v7  ;;  %v3102_v18 = vpop.eup %2150  ;;  %v752_v32 = vsub.f32 1.5, %v751_v0  ;;  %v3121_v44 = vadd.f32 1e-05, %v1425_v21 }
 0x148   : > { %v3117_v55 = vpop.eup %2152  ;;  %v689_v60 = vmul.f32 %v3102_v18, %v3051_v62  ;;  %v828_v51 = vadd.f32 %v2998_v19, %v809_v54  ;;  %2154 = vrsqrt.f32 %v3099_v41  ;;  %v792_v21 = vmul.f32 %v677_v12, %v2707_v29 }
 0x149   : > { %v733_v40 = vmul.f32 %v3053_v5, %v732_v39  ;;  %v760_v47 = vmul.f32 %v3081_v24, %v759_v48  ;;  %v1538_v27 = vmul.f32 %v3117_v55, %v3058_v42  ;;  %2156 = vrsqrt.f32 %v3115_v53 }
 0x14a   : > { %v690_v45 = vmul.f32 %v3102_v18, %v689_v60  ;;  %v3137_v54 = vadd.f32 %v2998_v19, %v818_v15  ;;  %v683_v14 = vmul.f32 %v3027_v26, %v682_v56  ;;  %v753_v29 = vmul.f32 %v3040_v57, %v752_v32  ;;  %v2002_v56 = vld [vmem:[%s4102_s8 + $0x8] sm:$0xff] }
 0x14b   : > { %v761_v50 = vmul.f32 0.5, %v760_v47  ;;  %v592_v39 = vpop.xlane.xlu2 %591  ;;  %v737_v36 = vsel %vm3110_vm12, %v3053_v5, %v733_v40  ;;  %v1382_v0 = vpop.xlane.xlu1 %1381  ;;  %v1539_v48 = vmul.f32 %v3117_v55, %v1538_v27  ;;  %2158 = vrsqrt.f32 %v3121_v44  ;;  %2043 = vmatpush.bf16.msra.mxu2 %v2002_v56  ;;  %1729 = vmatpush.bf16.msra.mxu1 %v2002_v56 }
 0x14c   : > { %v1409_v47 = vpop.xlane.xlu0 %1408  ;;  %v798_v34 = vmul.f32 %v737_v36, %v2738_v9  ;;  %v843_v40 = vpack.c.bf16 %v829_v35, %v828_v51  ;;  %v610_v23 = vmul.f32 %v592_v39, %v2666_v11  ;;  %v691_v32 = vmul.f32 0.5, %v690_v45 }
 0x14d   : > { %v762_v12 = vsub.f32 1.5, %v761_v50  ;;  %v1540_v60 = vmul.f32 0.5, %v1539_v48  ;;  %v1426_v27 = vmul.f32 %v1382_v0, %v2741_v17  ;;  %v1435_v49 = vmul.f32 %v1409_v47, %v2741_v17 }
 0x14e   : > { %vm765_vm4 = vweird.f32 %v3081_v24  ;;  %vm694_vm5 = vweird.f32 %v3051_v62  ;;  %vm1543_vm6 = vweird.f32 %v3058_v42  ;;  %1955 = vmatmul.msk.bf16.gmra.mxu0 %vm444_vm0, %v843_v40  ;;  %v3170_v9 = vadd.f32 1e-05, %v610_v23  ;;  %v3172_v35 = vpop.eup %2154 }
 0x14f   : > { %v687_v50 = vsel %vm3144_vm15, %v3027_v26, %v683_v14  ;;  %v757_v51 = vsel %vm3155_vm3, %v3040_v57, %v753_v29  ;;  %v3180_v39 = vadd.f32 1e-05, %v1426_v27  ;;  %v3183_v36 = vmul.f32 %v2980_v10, %v792_v21  ;;  %v3185_v45 = vpop.eup %2156  ;;  %v2001_v26 = vld [vmem:[%s4102_s8] sm:$0xff]  ;;  %vm3202_vm7 = vmor %vm764_vm2, %vm765_vm4 }
 0x150   : > { %v763_v0 = vmul.f32 %v3081_v24, %v762_v12  ;;  %v699_v48 = vmul.f32 %v3172_v35, %v3099_v41  ;;  %2160 = vrsqrt.f32 %v3170_v9  ;;  %v3191_v14 = vadd.f32 1e-05, %v1435_v49  ;;  %2044 = vmatpush.bf16.msra.mxu2 %v2001_v26  ;;  %1730 = vmatpush.bf16.msra.mxu1 %v2001_v26 }
 0x151   : > { %v3196_v57 = vpop.eup %2158  ;;  %v692_v47 = vsub.f32 1.5, %v691_v32  ;;  %v1541_v5 = vsub.f32 1.5, %v1540_v60  ;;  %v1548_v29 = vmul.f32 %v3185_v45, %v3115_v53  ;;  %v817_v15 = vmul.f32 %v2980_v10, %v798_v34 }
 0x152   : > { %v793_v12 = vmul.f32 %v687_v50, %v2728_v63  ;;  %vm695_vm8 = vweird.f32 %v3102_v18  ;;  %v700_v40 = vmul.f32 %v3172_v35, %v699_v48  ;;  %v1458_v7 = vmul.f32 %v3196_v57, %v3121_v44 }
 0x153   : > { %v1388_v23 = vpop.xlane.xlu2 %1387  ;;  %v3215_v56 = vmul.f32 %v757_v51, %v2731_v3  ;;  %vm1544_vm9 = vweird.f32 %v3117_v55  ;;  %v1549_v32 = vmul.f32 %v3185_v45, %v1548_v29  ;;  %2162 = vrsqrt.f32 %v3180_v39  ;;  %v1412_v34 = vpop.xlane.xlu1 %1411  ;;  %vm3231_vm11 = vmor %vm694_vm5, %vm695_vm8 }
 0x154   : > { %v767_v63 = vsel %vm3202_vm7, %v3081_v24, %v763_v0  ;;  %vm704_vm10 = vweird.f32 %v3099_v41  ;;  %v1459_v60 = vmul.f32 %v3196_v57, %v1458_v7  ;;  %2164 = vrsqrt.f32 %v3191_v14  ;;  %v595_v3 = vpop.xlane.xlu0 %594  ;;  %vm3244_vm12 = vmor %vm1543_vm6, %vm1544_vm9 }
 0x155   : > { %v693_v27 = vmul.f32 %v3102_v18, %v692_v47  ;;  %v1542_v50 = vmul.f32 %v3117_v55, %v1541_v5  ;;  %v836_v24 = vadd.f32 %v2998_v19, %v817_v15  ;;  %v1428_v51 = vmul.f32 %v1388_v23, %v2741_v17 }
 0x156   : > { %v3238_v0 = vpop.eup %2160  ;;  %v701_v62 = vmul.f32 0.5, %v700_v40  ;;  %v1550_v26 = vmul.f32 0.5, %v1549_v32  ;;  %vm1553_vm13 = vweird.f32 %v3115_v53  ;;  %v1436_v21 = vmul.f32 %v1412_v34, %v2741_v17 }
 0x157   : > { %v1460_v47 = vmul.f32 0.5, %v1459_v60  ;;  %v769_v5 = vmul.f32 %v3238_v0, %v3170_v9  ;;  %v847_v29 = vpack.c.bf16 %v3137_v54, %v836_v24  ;;  %v611_v15 = vmul.f32 %v595_v3, %v2666_v11 }
 0x158   : > { %v3255_v42 = vmul.f32 %v767_v63, %v2752_v16  ;;  %vm705_vm14 = vweird.f32 %v3172_v35  ;;  %vm1463_vm15 = vweird.f32 %v3121_v44  ;;  %v812_v40 = vmul.f32 %v2980_v10, %v793_v12 }
 0x159   : > { %v3260_v7 = vpop.eup %2162  ;;  %v697_v23 = vsel %vm3231_vm11, %v3102_v18, %v693_v27  ;;  %v1546_v54 = vsel %vm3244_vm12, %v3117_v55, %v1542_v50  ;;  %v770_v32 = vmul.f32 %v3238_v0, %v769_v5  ;;  %1959 = vmatmul.msk.bf16.vlgmr.msra.gmra.mxu3 %vm444_vm0, %v847_v29  ;;  %v3270_v16 = vadd.f32 1e-05, %v1428_v51  ;;  %vm3299_vm5 = vmor %vm704_vm10, %vm705_vm14 }
 0x15a   : > { %v3272_v34 = vpop.eup %2164  ;;  %v702_v63 = vsub.f32 1.5, %v701_v62  ;;  %v1551_v12 = vsub.f32 1.5, %v1550_v26  ;;  %v1468_v60 = vmul.f32 %v3260_v7, %v3180_v39  ;;  %v3276_v3 = vadd.f32 1e-05, %v1436_v21 }
 0x15b   : > { %v1461_v18 = vsub.f32 1.5, %v1460_v47  ;;  %v771_v27 = vmul.f32 0.5, %v770_v32  ;;  %v1558_v55 = vmul.f32 %v3272_v34, %v3191_v14  ;;  %v3280_v49 = vadd.f32 1e-05, %v611_v15  ;;  %v1415_v62 = vpop.xlane.xlu2 %1414  ;;  %v1385_v26 = vpop.xlane.xlu1 %1384 }
 0x15c   : > { %v3283_v50 = vmul.f32 %v697_v23, %v2770_v22  ;;  %vm1554_vm2 = vweird.f32 %v3185_v45  ;;  %vm774_vm3 = vweird.f32 %v3170_v9  ;;  %v1469_v24 = vmul.f32 %v3260_v7, %v1468_v60  ;;  %v574_v47 = vpop.xlane.xlu0 %573 }
 0x15d   : > { %v3289_v51 = vmul.f32 %v1546_v54, %v2758_v1  ;;  %vm1464_vm4 = vweird.f32 %v3196_v57  ;;  %v1559_v48 = vmul.f32 %v3272_v34, %v1558_v55  ;;  %2166 = vrsqrt.f32 %v3270_v16  ;;  %vm3310_vm7 = vmor %vm1553_vm13, %vm1554_vm2 }
 0x15e   : > { %v703_v22 = vmul.f32 %v3172_v35, %v702_v63  ;;  %v1552_v1 = vmul.f32 %v3185_v45, %v1551_v12  ;;  %vm1473_vm6 = vweird.f32 %v3180_v39  ;;  %2168 = vrsqrt.f32 %v3276_v3  ;;  %vm3322_vm8 = vmor %vm1463_vm15, %vm1464_vm4 }
 0x15f   : > { %v1462_v41 = vmul.f32 %v3196_v57, %v1461_v18  ;;  %v772_v29 = vsub.f32 1.5, %v771_v27  ;;  %2170 = vrsqrt.f32 %v3280_v49  ;;  %v830_v15 = vadd.f32 %v2998_v19, %v3183_v36 }
 0x160   : > { %v1470_v53 = vmul.f32 0.5, %v1469_v24  ;;  %v831_v54 = vadd.f32 %v2998_v19, %v812_v40  ;;  %v1437_v32 = vmul.f32 %v1415_v62, %v2741_v17  ;;  %v1427_v63 = vmul.f32 %v1385_v26, %v2741_v17  ;;  %v3428_v62 = vld [vmem:[%s4101_s7] ss:$0 sm:$0xff] }
 0x161   : > { %vm775_vm9 = vweird.f32 %v3238_v0  ;;  %v1560_v12 = vmul.f32 0.5, %v1559_v48  ;;  %vm1563_vm10 = vweird.f32 %v3191_v14  ;;  %v604_v36 = vmul.f32 %v574_v47, %v2666_v11 }
 0x162   : > { %v707_v44 = vsel %vm3299_vm5, %v3172_v35, %v703_v22  ;;  %vm1474_vm11 = vweird.f32 %v3260_v7  ;;  %v844_v60 = vpack.c.bf16 %v831_v54, %v830_v15  ;;  %v3336_v18 = vadd.f32 1e-05, %v1437_v32  ;;  %vm3353_vm12 = vmor %vm774_vm3, %vm775_vm9 }
 0x163   : > { %v3338_v40 = vpop.eup %2166  ;;  %v1556_v27 = vsel %vm3310_vm7, %v3185_v45, %v1552_v1  ;;  %v1466_v55 = vsel %vm3322_vm8, %v3196_v57, %v1462_v41  ;;  %v773_v24 = vmul.f32 %v3238_v0, %v772_v29  ;;  %v3347_v48 = vadd.f32 1e-05, %v1427_v63  ;;  %vm3399_vm14 = vmor %vm1473_vm6, %vm1474_vm11 }
 0x164   : > { %v3349_v35 = vpop.eup %2168  ;;  %v1471_v26 = vsub.f32 1.5, %v1470_v53  ;;  %v1488_v45 = vmul.f32 %v3338_v40, %v3270_v16  ;;  %1956 = vmatmul.msk.bf16.gmra.mxu0 %vm444_vm0, %v844_v60  ;;  %2172 = vrsqrt.f32 %v3336_v18  ;;  %v3361_v57 = vadd.f32 1e-05, %v604_v36 }
 0x165   : > { %v3363_v22 = vpop.eup %2170  ;;  %v1561_v21 = vsub.f32 1.5, %v1560_v12  ;;  %v1568_v9 = vmul.f32 %v3349_v35, %v3276_v3  ;;  %v819_v1 = vmul.f32 %v2980_v10, %v3215_v56  ;;  %v820_v47 = vmul.f32 %v2980_v10, %v3255_v42 }
 0x166   : > { %v3372_v5 = vmul.f32 %v707_v44, %v2777_v20  ;;  %v1626_v41 = vmul.f32 %v1556_v27, %v2774_v43  ;;  %vm1564_vm13 = vweird.f32 %v3272_v34  ;;  %v779_v29 = vmul.f32 %v3363_v22, %v3280_v49  ;;  %v3389_v43 = vld [vmem:[%s4100_s6] ss:$0 sm:$0xff]  ;;  %v577_v20 = vpop.xlane.xlu1 %576 }
 0x167   : > { %v3379_v15 = vmul.f32 %v1466_v55, %v2785_v25  ;;  %v777_v56 = vsel %vm3353_vm12, %v3238_v0, %v773_v24  ;;  %v1569_v23 = vmul.f32 %v3349_v35, %v1568_v9  ;;  %2174 = vrsqrt.f32 %v3347_v48  ;;  %vm3412_vm15 = vmor %vm1563_vm10, %vm1564_vm13 }
 0x168   : > { %v1472_v42 = vmul.f32 %v3260_v7, %v1471_v26  ;;  %v1489_v53 = vmul.f32 %v3338_v40, %v1488_v45  ;;  %v780_v25 = vmul.f32 %v3363_v22, %v779_v29  ;;  %2176 = vrsqrt.f32 %v3361_v57 }
 0x169   : > { %v1562_v54 = vmul.f32 %v3272_v34, %v1561_v21  ;;  %v1570_v32 = vmul.f32 0.5, %v1569_v23  ;;  %v838_v63 = vadd.f32 %v2998_v19, %v819_v1  ;;  %v839_v12 = vadd.f32 %v2998_v19, %v820_v47 }
 0x16a   : > { %v3406_v36 = vpop.eup %2172  ;;  %vm1573_vm2 = vweird.f32 %v3276_v3  ;;  %v781_v39 = vmul.f32 0.5, %v780_v25  ;;  %v1645_v60 = vmul.f32 %v3389_v43, %v1626_v41  ;;  %v605_v27 = vmul.f32 %v577_v20, %v2666_v11 }
 0x16b   : > { %vm1493_vm3 = vweird.f32 %v3270_v16  ;;  %vm784_vm4 = vweird.f32 %v3280_v49  ;;  %v1578_v55 = vmul.f32 %v3406_v36, %v3336_v18  ;;  %v848_v24 = vpack.c.bf16 %v839_v12, %v838_v63 }
 0x16c   : > { %v1644_v14 = vmul.f32 %v3389_v43, %v3289_v51  ;;  %v3431_v26 = vmul.f32 %v777_v56, %v2802_v13  ;;  %v1490_v11 = vmul.f32 0.5, %v1489_v53  ;;  %v782_v45 = vsub.f32 1.5, %v781_v39 }
 0x16d   : > { %vm785_vm5 = vweird.f32 %v3363_v22  ;;  %v3434_v21 = vpop.eup %2174  ;;  %v1476_v9 = vsel %vm3399_vm14, %v3260_v7, %v1472_v42  ;;  %v1566_v51 = vsel %vm3412_vm15, %v3272_v34, %v1562_v54  ;;  %v1571_v1 = vsub.f32 1.5, %v1570_v32  ;;  %1960 = vmatmul.msk.bf16.gmra.mxu3 %vm444_vm0, %v848_v24  ;;  %v1418_v54 = vpop.xlane.xlu0 %1417 }
 0x16e   : > { %v1664_v13 = vadd.f32 %v3428_v62, %v1645_v60  ;;  %v3444_v47 = vpop.eup %2176  ;;  %vm1494_vm6 = vweird.f32 %v3338_v40  ;;  %v783_v41 = vmul.f32 %v3363_v22, %v782_v45  ;;  %v1478_v29 = vmul.f32 %v3434_v21, %v3347_v48  ;;  %vm3455_vm8 = vmor %vm784_vm4, %vm785_vm5 }
 0x16f   : > { %v3450_v56 = vadd.f32 1e-05, %v605_v27  ;;  %vm1574_vm7 = vweird.f32 %v3349_v35  ;;  %v1579_v34 = vmul.f32 %v3406_v36, %v1578_v55  ;;  %v709_v23 = vmul.f32 %v3444_v47, %v3361_v57  ;;  %vm3499_vm14 = vmor %vm1493_vm3, %vm1494_vm6 }
 0x170   : > { %v1663_v20 = vadd.f32 %v3428_v62, %v1644_v14  ;;  %v1618_v42 = vmul.f32 %v1476_v9, %v2799_v58  ;;  %v1627_v53 = vmul.f32 %v1566_v51, %v2809_v61  ;;  %v1491_v25 = vsub.f32 1.5, %v1490_v11  ;;  %vm3471_vm10 = vmor %vm1573_vm2, %vm1574_vm7 }
 0x171   : > { %v1479_v0 = vmul.f32 %v3434_v21, %v1478_v29  ;;  %v1572_v49 = vmul.f32 %v3349_v35, %v1571_v1  ;;  %vm1483_vm9 = vweird.f32 %v3347_v48  ;;  %v710_v32 = vmul.f32 %v3444_v47, %v709_v23 }
 0x172   : > { %v1675_v63 = vpack.c.bf16 %v1664_v13, %v1663_v20  ;;  %v787_v58 = vsel %vm3455_vm8, %v3363_v22, %v783_v41  ;;  %vm714_vm11 = vweird.f32 %v3361_v57  ;;  %2178 = vrsqrt.f32 %v3450_v56 }
 0x173   : > { %v1480_v61 = vmul.f32 0.5, %v1479_v0  ;;  %v1580_v44 = vmul.f32 0.5, %v1579_v34  ;;  %vm1583_vm12 = vweird.f32 %v3336_v18  ;;  %v711_v39 = vmul.f32 0.5, %v710_v32 }
 0x174   : > { %1990 = vmatmul.msk.bf16.vlgmr.msra.gmra.mxu2 %vm1273_vm1, %v1675_v63  ;;  %v1438_v3 = vmul.f32 %v1418_v54, %v2741_v17  ;;  %v813_v60 = vmul.f32 %v2980_v10, %v3283_v50  ;;  %v1492_v27 = vmul.f32 %v3338_v40, %v1491_v25  ;;  %vm1484_vm13 = vweird.f32 %v3434_v21 }
 0x175   : > { %v1481_v55 = vsub.f32 1.5, %v1480_v61  ;;  %v814_v22 = vmul.f32 %v2980_v10, %v3372_v5  ;;  %v1576_v24 = vsel %vm3471_vm10, %v3349_v35, %v1572_v49  ;;  %v803_v14 = vmul.f32 %v787_v58, %v2832_v28  ;;  %v1394_v5 = vpop.xlane.xlu2 %1393  ;;  %vm3510_vm15 = vmor %vm1483_vm9, %vm1484_vm13 }
 0x176   : > { %v712_v11 = vsub.f32 1.5, %v711_v39  ;;  %v3493_v45 = vadd.f32 1e-05, %v1438_v3  ;;  %v832_v51 = vadd.f32 %v2998_v19, %v813_v60  ;;  %v1636_v28 = vmul.f32 %v3389_v43, %v3379_v15 }
 0x177   : > { %v1482_v9 = vmul.f32 %v3434_v21, %v1481_v55  ;;  %v833_v35 = vadd.f32 %v2998_v19, %v814_v22  ;;  %v1581_v1 = vsub.f32 1.5, %v1580_v44  ;;  %vm715_vm2 = vweird.f32 %v3444_v47 }
 0x178   : > { %2180 = vrsqrt.f32 %v3493_v45  ;;  %v1637_v16 = vmul.f32 %v3389_v43, %v1618_v42  ;;  %v2179_v41 = vpop.eup %2178  ;;  %v1628_v29 = vmul.f32 %v1576_v24, %v2822_v30  ;;  %vm1584_vm3 = vweird.f32 %v3406_v36  ;;  %vm3532_vm4 = vmor %vm714_vm11, %vm715_vm2 }
 0x179   : > { %v845_v7 = vpack.c.bf16 %v833_v35, %v832_v51  ;;  %v821_v15 = vmul.f32 %v2980_v10, %v3431_v26  ;;  %v1496_v48 = vsel %vm3499_vm14, %v3338_v40, %v1492_v27  ;;  %v713_v34 = vmul.f32 %v3444_v47, %v712_v11  ;;  %vm3554_vm7 = vmor %vm1583_vm12, %vm1584_vm3 }
 0x17a   : > { %v719_v23 = vmul.f32 %v2179_v41, %v3450_v56  ;;  %v1430_v20 = vmul.f32 %v1394_v5, %v2741_v17  ;;  %v1486_v30 = vsel %vm3510_vm15, %v3434_v21, %v1482_v9  ;;  %v1655_v40 = vadd.f32 %v3428_v62, %v1636_v28 }
 0x17b   : > { %1957 = vmatmul.msk.bf16.gmra.mxu0 %vm444_vm0, %v845_v7  ;;  %v1656_v26 = vadd.f32 %v3428_v62, %v1637_v16  ;;  %v822_v25 = vmul.f32 %v2980_v10, %v803_v14  ;;  %v1582_v0 = vmul.f32 %v3406_v36, %v1581_v1  ;;  %vm724_vm5 = vweird.f32 %v3450_v56 }
 0x17c   : > { %v720_v54 = vmul.f32 %v2179_v41, %v719_v23  ;;  %v1646_v21 = vmul.f32 %v3389_v43, %v1627_v53  ;;  %v840_v49 = vadd.f32 %v2998_v19, %v821_v15  ;;  %v1647_v63 = vmul.f32 %v3389_v43, %v1628_v29 }
 0x17d   : > { %v1671_v57 = vpack.c.bf16 %v1656_v26, %v1655_v40  ;;  %v841_v32 = vadd.f32 %v2998_v19, %v822_v25  ;;  %v1619_v58 = vmul.f32 %v1486_v30, %v2845_v38  ;;  %v717_v61 = vsel %vm3532_vm4, %v3444_v47, %v713_v34 }
 0x17e   : > { %v2181_v12 = vpop.eup %2180  ;;  %v721_v44 = vmul.f32 0.5, %v720_v54  ;;  %vm725_vm6 = vweird.f32 %v2179_v41  ;;  %v1665_v38 = vadd.f32 %v3428_v62, %v1646_v21  ;;  %v1666_v60 = vadd.f32 %v3428_v62, %v1647_v63 }
 0x17f   : > { %v1588_v39 = vmul.f32 %v2181_v12, %v3493_v45  ;;  %1986 = vmatmul.msk.bf16.vlgmr.msra.gmra.mxu1 %vm1273_vm1, %v1671_v57  ;;  %v849_v3 = vpack.c.bf16 %v841_v32, %v840_v49  ;;  %v1620_v27 = vmul.f32 %v1496_v48, %v2827_v37  ;;  %v796_v55 = vmul.f32 %v717_v61, %v2854_v6  ;;  %vm726_vm8 = vmor %vm724_vm5, %vm725_vm6 }
 0x180   : > { %v722_v47 = vsub.f32 1.5, %v721_v44  ;;  %v1676_v22 = vpack.c.bf16 %v1666_v60, %v1665_v38  ;;  %v1586_v24 = vsel %vm3554_vm7, %v3406_v36, %v1582_v0  ;;  %v1446_v11 = vadd.f32 1e-05, %v1430_v20 }
 0x181   : > { %v1589_v18 = vmul.f32 %v2181_v12, %v1588_v39  ;;  %1961 = vmatmul.msk.bf16.gmra.mxu3 %vm444_vm0, %v849_v3  ;;  %vm1593_vm9 = vweird.f32 %v3493_v45  ;;  %vm1594_vm10 = vweird.f32 %v2181_v12  ;;  %v1638_v37 = vmul.f32 %v3389_v43, %v1619_v58 }
 0x182   : > { %v723_v14 = vmul.f32 %v2179_v41, %v722_v47  ;;  %v1639_v5 = vmul.f32 %v3389_v43, %v1620_v27  ;;  %v815_v51 = vmul.f32 %v2980_v10, %v796_v55  ;;  %v1629_v36 = vmul.f32 %v1586_v24, %v2851_v59  ;;  %vm1595_vm11 = vmor %vm1593_vm9, %vm1594_vm10 }
 0x183   : > { %v1590_v50 = vmul.f32 0.5, %v1589_v18  ;;  %2182 = vrsqrt.f32 %v1446_v11  ;;  %v1657_v45 = vadd.f32 %v3428_v62, %v1638_v37  ;;  %vm1513_vm12 = vweird.f32 %v1446_v11 }
 0x184   : > { %v727_v6 = vsel %vm726_vm8, %v2179_v41, %v723_v14  ;;  %1991 = vmatmul.msk.bf16.gmra.mxu2 %vm1273_vm1, %v1676_v22  ;;  %v1658_v13 = vadd.f32 %v3428_v62, %v1639_v5  ;;  %v834_v16 = vadd.f32 %v2998_v19, %v815_v51  ;;  %v1648_v29 = vmul.f32 %v3389_v43, %v1629_v36 }
 0x185   : > { %v797_v56 = vmul.f32 %v727_v6, %v2867_v8  ;;  %v1591_v9 = vsub.f32 1.5, %v1590_v50 }
 0x186   : > { %v1672_v7 = vpack.c.bf16 %v1658_v13, %v1657_v45 }
 0x187   : > { %v1592_v35 = vmul.f32 %v2181_v12, %v1591_v9  ;;  %v816_v28 = vmul.f32 %v2980_v10, %v797_v56  ;;  %v1667_v10 = vadd.f32 %v3428_v62, %v1648_v29 }
 0x189   : > { %v1596_v1 = vsel %vm1595_vm11, %v2181_v12, %v1592_v35  ;;  %v835_v8 = vadd.f32 %v2998_v19, %v816_v28  ;;  %v2183_v48 = vpop.eup %2182 }
 0x18a   : > { %v1630_v41 = vmul.f32 %v1596_v1, %v2877_v31  ;;  %v1508_v23 = vmul.f32 %v2183_v48, %v1446_v11  ;;  %vm1514_vm13 = vweird.f32 %v2183_v48 }
 0x18b   : > { %v846_v59 = vpack.c.bf16 %v835_v8, %v834_v16  ;;  %vm1515_vm14 = vmor %vm1513_vm12, %vm1514_vm13 }
 0x18c   : > { %v1649_v15 = vmul.f32 %v3389_v43, %v1630_v41  ;;  %v1509_v19 = vmul.f32 %v2183_v48, %v1508_v23 }
 0x18d   : > { %1958 = vmatmul.msk.bf16.gmra.mxu0 %vm444_vm0, %v846_v59 }
 0x18e   : > { %v1668_v34 = vadd.f32 %v3428_v62, %v1649_v15  ;;  %v1510_v40 = vmul.f32 0.5, %v1509_v19 }
 0x18f   : > { %1987 = vmatmul.msk.bf16.gmra.mxu1 %vm1273_vm1, %v1672_v7 }
 0x190   : > { %v1677_v20 = vpack.c.bf16 %v1668_v34, %v1667_v10  ;;  %v1511_v26 = vsub.f32 1.5, %v1510_v40 }
 0x192   : > { %v1512_v32 = vmul.f32 %v2183_v48, %v1511_v26 }
 0x194   : > { %1992 = vmatmul.msk.bf16.gmra.mxu2 %vm1273_vm1, %v1677_v20  ;;  %v1516_v61 = vsel %vm1515_vm14, %v2183_v48, %v1512_v32 }
 0x195   : > { %v1622_v27 = vmul.f32 %v1516_v61, %v2873_v4 }
 0x196   : > { %v1391_v31 = vpop.xlane.xlu1 %1390 }
 0x197   : > { %v1429_v30 = vmul.f32 %v1391_v31, %v2741_v17 }
 0x199   : > { %v1445_v42 = vadd.f32 1e-05, %v1429_v30 }
 0x19b   : > { %2184 = vrsqrt.f32 %v1445_v42  ;;  %vm1503_vm2 = vweird.f32 %v1445_v42 }
 0x19e   : > { %v1424_v25 = vpop.xlane.xlu1 %1423  ;;  %v1421_v54 = vpop.xlane.xlu0 %1420 }
 0x19f   : > { %v1440_v0 = vmul.f32 %v1424_v25, %v2741_v17  ;;  %v1439_v21 = vmul.f32 %v1421_v54, %v2741_v17 }
 0x1a1   : > { %v2185_v57 = vpop.eup %2184  ;;  %v1456_v49 = vadd.f32 1e-05, %v1440_v0  ;;  %v1455_v12 = vadd.f32 1e-05, %v1439_v21  ;;  %v4163_v21 = vld [vmem:[#allocation8_spill] sm:$0xff] }
 0x1a2   : > { %v1498_v63 = vmul.f32 %v2185_v57, %v1445_v42  ;;  %vm1504_vm15 = vweird.f32 %v2185_v57 }
 0x1a3   : > { %2186 = vrsqrt.f32 %v1456_v49  ;;  %vm1505_vm3 = vmor %vm1503_vm2, %vm1504_vm15  ;;  %vm1613_vm6 = vweird.f32 %v1456_v49  ;;  %vm1603_vm8 = vweird.f32 %v1455_v12 }
 0x1a4   : > { %v1499_v58 = vmul.f32 %v2185_v57, %v1498_v63  ;;  %2188 = vrsqrt.f32 %v1455_v12 }
 0x1a6   : > { %v1500_v44 = vmul.f32 0.5, %v1499_v58  ;;  %v1397_v53 = vpop.xlane.xlu2 %1396  ;;  %v1400_v3 = vpop.xlane.xlu0 %1399 }
 0x1a7   : > { %v1431_v39 = vmul.f32 %v1397_v53, %v2741_v17  ;;  %v1432_v60 = vmul.f32 %v1400_v3, %v2741_v17  ;;  %v1641_v17 = vmul.f32 %v3389_v43, %v1622_v27 }
 0x1a8   : > { %v1501_v38 = vsub.f32 1.5, %v1500_v44 }
 0x1a9   : > { %v2187_v47 = vpop.eup %2186  ;;  %v1447_v55 = vadd.f32 1e-05, %v1431_v39  ;;  %v1448_v14 = vadd.f32 1e-05, %v1432_v60  ;;  %v1660_v28 = vadd.f32 %v3428_v62, %v1641_v17 }
 0x1aa   : > { %v2189_v18 = vpop.eup %2188  ;;  %v1502_v22 = vmul.f32 %v2185_v57, %v1501_v38  ;;  %v1608_v24 = vmul.f32 %v2187_v47, %v1456_v49  ;;  %vm1614_vm4 = vweird.f32 %v2187_v47 }
 0x1ab   : > { %v1598_v11 = vmul.f32 %v2189_v18, %v1455_v12  ;;  %2190 = vrsqrt.f32 %v1447_v55  ;;  %vm1604_vm5 = vweird.f32 %v2189_v18  ;;  %vm1615_vm7 = vmor %vm1613_vm6, %vm1614_vm4  ;;  %vm1523_vm12 = vweird.f32 %v1447_v55 }
 0x1ac   : > { %v1506_v50 = vsel %vm1505_vm3, %v2185_v57, %v1502_v22  ;;  %v1609_v37 = vmul.f32 %v2187_v47, %v1608_v24  ;;  %2192 = vrsqrt.f32 %v1448_v14  ;;  %vm1605_vm9 = vmor %vm1603_vm8, %vm1604_vm5  ;;  %vm1533_vm14 = vweird.f32 %v1448_v14 }
 0x1ad   : > { %v1621_v6 = vmul.f32 %v1506_v50, %v2901_v46  ;;  %v1599_v56 = vmul.f32 %v2189_v18, %v1598_v11 }
 0x1ae   : > { %v1610_v9 = vmul.f32 0.5, %v1609_v37 }
 0x1af   : > { %v1600_v5 = vmul.f32 0.5, %v1599_v56  ;;  %v1640_v4 = vmul.f32 %v3389_v43, %v1621_v6 }
 0x1b0   : > { %v1611_v51 = vsub.f32 1.5, %v1610_v9 }
 0x1b1   : > { %v2191_v36 = vpop.eup %2190  ;;  %v1601_v35 = vsub.f32 1.5, %v1600_v5  ;;  %v1659_v45 = vadd.f32 %v3428_v62, %v1640_v4 }
 0x1b2   : > { %v2193_v1 = vpop.eup %2192  ;;  %v1612_v13 = vmul.f32 %v2187_v47, %v1611_v51  ;;  %v1518_v46 = vmul.f32 %v2191_v36, %v1447_v55  ;;  %vm1524_vm10 = vweird.f32 %v2191_v36 }
 0x1b3   : > { %v1602_v16 = vmul.f32 %v2189_v18, %v1601_v35  ;;  %v1528_v8 = vmul.f32 %v2193_v1, %v1448_v14  ;;  %v1673_v41 = vpack.c.bf16 %v1660_v28, %v1659_v45  ;;  %vm1534_vm11 = vweird.f32 %v2193_v1  ;;  %vm1525_vm13 = vmor %vm1523_vm12, %vm1524_vm10 }
 0x1b4   : > { %v1616_v29 = vsel %vm1615_vm7, %v2187_v47, %v1612_v13  ;;  %v1519_v7 = vmul.f32 %v2191_v36, %v1518_v46  ;;  %vm1535_vm15 = vmor %vm1533_vm14, %vm1534_vm11 }
 0x1b5   : > { %v1632_v59 = vmul.f32 %v1616_v29, %v2912_v33  ;;  %v1606_v15 = vsel %vm1605_vm9, %v2189_v18, %v1602_v16  ;;  %v1529_v48 = vmul.f32 %v2193_v1, %v1528_v8  ;;  %1988 = vmatmul.msk.bf16.gmra.mxu1 %vm1273_vm1, %v1673_v41 }
 0x1b6   : > { %v1631_v10 = vmul.f32 %v1606_v15, %v2922_v2  ;;  %v1520_v34 = vmul.f32 0.5, %v1519_v7 }
 0x1b7   : > { %v1530_v23 = vmul.f32 0.5, %v1529_v48  ;;  %v1651_v20 = vmul.f32 %v3389_v43, %v1632_v59 }
 0x1b8   : > { %v1521_v19 = vsub.f32 1.5, %v1520_v34  ;;  %v1650_v31 = vmul.f32 %v3389_v43, %v1631_v10  ;;  %v895_v49 = vpop.f32.mrf.mxu0 }
 0x1b9   : > { %v1531_v30 = vsub.f32 1.5, %v1530_v23  ;;  %v1670_v42 = vadd.f32 %v3428_v62, %v1651_v20 }
 0x1ba   : > { %v1522_v40 = vmul.f32 %v2191_v36, %v1521_v19  ;;  %v1669_v33 = vadd.f32 %v3428_v62, %v1650_v31 }
 0x1bb   : > { %v1532_v26 = vmul.f32 %v2193_v1, %v1531_v30 }
 0x1bc   : > { %v1526_v2 = vsel %vm1525_vm13, %v2191_v36, %v1522_v40  ;;  %v1678_v25 = vpack.c.bf16 %v1670_v42, %v1669_v33 }
 0x1bd   : > { %v1623_v0 = vmul.f32 %v1526_v2, %v2957_v52  ;;  %v1536_v54 = vsel %vm1535_vm15, %v2193_v1, %v1532_v26  ;;  %v3619_v52 = vld [vmem:[%s4099_s5] ss:$0 sm:$0xff] }
 0x1be   : > { %v1624_v57 = vmul.f32 %v1536_v54, %v4163_v21  ;;  %1993 = vmatmul.msk.bf16.gmra.mxu2 %vm1273_vm1, %v1678_v25  ;;  %v896_v53 = vadd.f32 %v3619_v52, %v895_v49  ;;  %v3685_v21 = vld [vmem:[%s4103_s9] ss:$0 sm:$0xff] }
 0x1bf   : > { %v1642_v32 = vmul.f32 %v3389_v43, %v1623_v0 }
 0x1c0   : > { %v1643_v63 = vmul.f32 %v3389_v43, %v1624_v57  ;;  %v897_v44 = vpop.f32.mrf.mxu0  ;;  %v1962_v39 = vmul.f32 -1.442695, %v896_v53 }
 0x1c1   : > { %v1661_v12 = vadd.f32 %v3428_v62, %v1642_v32  ;;  %v898_v43 = vadd.f32 %v3619_v52, %v897_v44 }
 0x1c2   : > { %v1662_v58 = vadd.f32 %v3428_v62, %v1643_v63  ;;  %2194 = vpow2.f32 %v1962_v39 }
 0x1c3   : > { %v1963_v38 = vmul.f32 -1.442695, %v898_v43 }
 0x1c4   : > { %v1674_v61 = vpack.c.bf16 %v1662_v58, %v1661_v12 }
 0x1c5   : > { %2196 = vpow2.f32 %v1963_v38 }
 0x1c6   : > { %1989 = vmatmul.msk.bf16.gmra.mxu1 %vm1273_vm1, %v1674_v61 }
 0x1c8   : > { %v2195_v60 = vpop.eup %2194 }
 0x1c9   : > { %v3624_v27 = vadd.f32 1.0, %v2195_v60 }
 0x1cb   : > { %v900_v3 = vpop.f32.mrf.mxu0  ;;  %2198 = vrcp.f32 %v3624_v27  ;;  %v2197_v14 = vpop.eup %2196  ;;  %v1008_v23 = vand.u32 2147483647, %v3624_v27  ;;  %v1010_v30 = vand.u32 2147483648, %v3624_v27  ;;  %vm1004_vm2 = vweird.f32 %v3624_v27 }
 0x1cc   : > { %v901_v62 = vadd.f32 %v3619_v52, %v900_v3  ;;  %v3629_v37 = vadd.f32 1.0, %v2197_v14 }
 0x1cd   : > { %vm1009_vm4 = vcmp.eq.f32.partialorder %v1008_v23, 8.507059e+37  ;;  %v1011_v49 = vor.u32 1.1754944e-38, %v1010_v30 }
 0x1ce   : > { %v1964_v18 = vmul.f32 -1.442695, %v901_v62  ;;  %v1023_v44 = vand.u32 2147483647, %v3629_v37  ;;  %v1025_v43 = vand.u32 2147483648, %v3629_v37  ;;  %vm1019_vm6 = vweird.f32 %v3629_v37 }
 0x1d0   : > { %2200 = vpow2.f32 %v1964_v18  ;;  %vm3711_vm7 = vcmp.eq.f32.partialorder %v1023_v44, 8.507059e+37 }
 0x1d1   : > { %v3632_v17 = vpop.eup %2198 }
 0x1d2   : > { %v1000_v45 = vmul.f32 %v3632_v17, %v3624_v27  ;;  %vm1005_vm1 = vweird.f32 %v3632_v17 }
 0x1d3   : > { %v902_v47 = vpop.f32.mrf.mxu0  ;;  %vm3675_vm3 = vmor %vm1004_vm2, %vm1005_vm1 }
 0x1d4   : > { %v903_v11 = vadd.f32 %v3619_v52, %v902_v47  ;;  %v1001_v13 = vsub.f32 1.0, %v1000_v45 }
 0x1d6   : > { %v1965_v9 = vmul.f32 -1.442695, %v903_v11  ;;  %v2201_v5 = vpop.eup %2200  ;;  %v1002_v59 = vmul.f32 %v3632_v17, %v1001_v13 }
 0x1d7   : > { %v3637_v35 = vadd.f32 1.0, %v2201_v5 }
 0x1d8   : > { %v1003_v31 = vadd.f32 %v3632_v17, %v1002_v59 }
 0x1d9   : > { %vm1034_vm8 = vweird.f32 %v3637_v35 }
 0x1da   : > { %v1007_v57 = vsel %vm3675_vm3, %v3632_v17, %v1003_v31 }
 0x1db   : > { %v1012_v60 = vsel %vm1009_vm4, %v1011_v49, %v1007_v57 }
 0x1dc   : > { %v920_v55 = vpop.f32.mrf.mxu3 }
 0x1dd   : > { %v921_v22 = vadd.f32 %v3619_v52, %v920_v55 }
 0x1df   : > { %v1972_v24 = vmul.f32 -1.442695, %v921_v22  ;;  %v1038_v22 = vand.u32 2147483647, %v3637_v35 }
 0x1e1   : > { %2202 = vpow2.f32 %v1972_v24  ;;  %v905_v50 = vpop.f32.mrf.mxu0  ;;  %vm3740_vm12 = vcmp.eq.f32.partialorder %v1038_v22, 8.507059e+37 }
 0x1e2   : > { %2204 = vrcp.f32 %v3629_v37  ;;  %v906_v12 = vadd.f32 %v3619_v52, %v905_v50  ;;  %v2258_v50 = vld [vmem:[%s2510_s29] sm:$0xff] }
 0x1e4   : > { %v922_v6 = vpop.f32.mrf.mxu3  ;;  %v1966_v24 = vmul.f32 -1.442695, %v906_v12 }
 0x1e5   : > { %v923_v56 = vadd.f32 %v3619_v52, %v922_v6 }
 0x1e7   : > { %v1973_v4 = vmul.f32 -1.442695, %v923_v56  ;;  %v2203_v51 = vpop.eup %2202  ;;  %v1026_v56 = vor.u32 1.1754944e-38, %v1025_v43 }
 0x1e8   : > { %v3635_v36 = vadd.f32 1.0, %v2203_v51  ;;  %v3644_v1 = vpop.eup %2204 }
 0x1e9   : > { %2206 = vpow2.f32 %v1973_v4  ;;  %v3642_v28 = vpop.f32.mrf.mxu0  ;;  %v1015_v15 = vmul.f32 %v3644_v1, %v3629_v37  ;;  %vm1020_vm5 = vweird.f32 %v3644_v1  ;;  %v1040_v4 = vand.u32 2147483648, %v3637_v35 }
 0x1ea   : > { %2208 = vpow2.f32 %v1965_v9  ;;  %vm3724_vm9 = vmor %vm1019_vm6, %vm1020_vm5  ;;  %v1160_v13 = vand.u32 2147483648, %v3635_v36  ;;  %vm1154_vm13 = vweird.f32 %v3635_v36 }
 0x1eb   : > { %2210 = vrcp.f32 %v3635_v36  ;;  %v1016_v42 = vsub.f32 1.0, %v1015_v15 }
 0x1ec   : > { %2212 = vrcp.f32 %v3637_v35 }
 0x1ed   : > { %v1017_v32 = vmul.f32 %v3644_v1, %v1016_v42 }
 0x1ef   : > { %v2207_v46 = vpop.eup %2206  ;;  %v1018_v18 = vadd.f32 %v3644_v1, %v1017_v32  ;;  %v2259_v32 = vld [vmem:[%s2510_s29 + $0x8] sm:$0xff] }
 0x1f0   : > { %v2209_v16 = vpop.eup %2208  ;;  %v3647_v8 = vadd.f32 1.0, %v2207_v46  ;;  %v925_v41 = vpop.f32.mrf.mxu3 }
 0x1f1   : > { %v926_v29 = vadd.f32 %v3619_v52, %v925_v41  ;;  %v3650_v7 = vpop.eup %2210  ;;  %v3655_v48 = vadd.f32 1.0, %v2209_v16  ;;  %v1022_v45 = vsel %vm3724_vm9, %v3644_v1, %v1018_v18  ;;  %v908_v1 = vadd.f32 %v3619_v52, %v3642_v28 }
 0x1f2   : > { %v3657_v34 = vpop.eup %2212  ;;  %2214 = vrcp.f32 %v3647_v8  ;;  %v1150_v20 = vmul.f32 %v3650_v7, %v3635_v36  ;;  %vm1155_vm10 = vweird.f32 %v3650_v7  ;;  %v1041_v28 = vor.u32 1.1754944e-38, %v1040_v4 }
 0x1f3   : > { %v1974_v10 = vmul.f32 -1.442695, %v926_v29  ;;  %v1030_v33 = vmul.f32 %v3657_v34, %v3637_v35  ;;  %vm1035_vm11 = vweird.f32 %v3657_v34  ;;  %v1158_v29 = vand.u32 2147483647, %v3635_v36  ;;  %vm3756_vm14 = vmor %vm1154_vm13, %vm1155_vm10 }
 0x1f4   : > { %v1151_v0 = vsub.f32 1.0, %v1150_v20  ;;  %v1027_v36 = vsel %vm3711_vm7, %v1026_v56, %v1022_v45  ;;  %vm3771_vm15 = vmor %vm1034_vm8, %vm1035_vm11  ;;  %vm1049_vm1 = vweird.f32 %v3655_v48  ;;  %v1053_v49 = vand.u32 2147483647, %v3655_v48 }
 0x1f5   : > { %2216 = vpow2.f32 %v1974_v10  ;;  %v1031_v53 = vsub.f32 1.0, %v1030_v33  ;;  %vm1159_vm2 = vcmp.eq.f32.partialorder %v1158_v29, 8.507059e+37  ;;  %v1967_v35 = vmul.f32 -1.442695, %v908_v1  ;;  %v2261_v29 = vld [vmem:[%s2510_s29 + $0x10] sm:$0xff] }
 0x1f6   : > { %2218 = vrcp.f32 %v3655_v48  ;;  %v1152_v62 = vmul.f32 %v3650_v7, %v1151_v0  ;;  %v1175_v43 = vand.u32 2147483648, %v3647_v8  ;;  %vm1169_vm5 = vweird.f32 %v3647_v8 }
 0x1f7   : > { %v3663_v19 = vpop.f32.mrf.mxu2  ;;  %v1032_v11 = vmul.f32 %v3657_v34, %v1031_v53  ;;  %v1173_v14 = vand.u32 2147483647, %v3647_v8  ;;  %vm3834_vm9 = vcmp.eq.f32.partialorder %v1053_v49, 8.507059e+37 }
 0x1f8   : > { %v3669_v40 = vpop.f32.mrf.mxu0  ;;  %v927_v26 = vpop.f32.mrf.mxu3  ;;  %v1153_v5 = vadd.f32 %v3650_v7, %v1152_v62  ;;  %v1055_v62 = vand.u32 2147483648, %v3655_v48  ;;  %v1176_v4 = vor.u32 1.1754944e-38, %v1175_v43 }
 0x1f9   : > { %v928_v25 = vadd.f32 %v3619_v52, %v927_v26  ;;  %v3680_v54 = vpop.eup %2214  ;;  %v1033_v59 = vadd.f32 %v3657_v34, %v1032_v11  ;;  %v1161_v26 = vor.u32 1.1754944e-38, %v1160_v13  ;;  %vm1174_vm7 = vcmp.eq.f32.partialorder %v1173_v14, 8.507059e+37 }
 0x1fa   : > { %v1165_v47 = vmul.f32 %v3680_v54, %v3647_v8  ;;  %v1157_v30 = vsel %vm3756_vm14, %v3650_v7, %v1153_v5  ;;  %vm1170_vm3 = vweird.f32 %v3680_v54 }
 0x1fb   : > { %v2217_v63 = vpop.eup %2216  ;;  %v1975_v61 = vmul.f32 -1.442695, %v928_v25  ;;  %v1037_v57 = vsel %vm3771_vm15, %v3657_v34, %v1033_v59  ;;  %vm3805_vm6 = vmor %vm1169_vm5, %vm1170_vm3 }
 0x1fc   : > { %v1732_v58 = vpop.f32.mrf.mxu1  ;;  %v3693_v39 = vadd.f32 1.0, %v2217_v63  ;;  %v3700_v38 = vpop.eup %2218  ;;  %v1166_v51 = vsub.f32 1.0, %v1165_v47  ;;  %v1042_v22 = vsel %vm3740_vm12, %v1041_v28, %v1037_v57 }
 0x1fd   : > { %v1733_v3 = vadd.f32 %v3685_v21, %v1732_v58  ;;  %2220 = vpow2.f32 %v1975_v61  ;;  %v1045_v17 = vmul.f32 %v3700_v38, %v3655_v48  ;;  %v1162_v58 = vsel %vm1159_vm2, %v1161_v26, %v1157_v30 }
 0x1fe   : > { %2222 = vrcp.f32 %v3693_v39  ;;  %v1167_v42 = vmul.f32 %v3680_v54, %v1166_v51  ;;  %vm1050_vm4 = vweird.f32 %v3700_v38  ;;  %v1190_v57 = vand.u32 2147483648, %v3693_v39 }
 0x1ff   : > { %v1772_v27 = vmul.f32 %v1733_v3, %v1012_v60  ;;  %v3706_v55 = vpop.f32.mrf.mxu2  ;;  %2224 = vpow2.f32 %v1966_v24  ;;  %v1046_v31 = vsub.f32 1.0, %v1045_v17  ;;  %vm3826_vm8 = vmor %vm1049_vm1, %vm1050_vm4  ;;  %vm1184_vm11 = vweird.f32 %v3693_v39 }
 0x200   : > { %v3720_v9 = vpop.f32.mrf.mxu0  ;;  %v1168_v3 = vadd.f32 %v3680_v54, %v1167_v42 }
 0x201   : > { %v1788_v6 = vadd.f32 %v2258_v50, %v1772_v27  ;;  %v1047_v61 = vmul.f32 %v3700_v38, %v1046_v31  ;;  %v2260_v27 = vld [vmem:[%s2510_s29 + $0x50] sm:$0xff]  ;;  %v1056_v31 = vor.u32 1.1754944e-38, %v1055_v62 }
 0x202   : > { %v1172_v8 = vsel %vm3805_vm6, %v3680_v54, %v1168_v3 }
 0x203   : > { %1804 = vst.msk [vmem:[%s3731_s22] sm:$0xff] %vm444_vm0, %v1788_v6  ;;  %v2221_v16 = vpop.eup %2220  ;;  %v1048_v37 = vadd.f32 %v3700_v38, %v1047_v61  ;;  %v1177_v1 = vsel %vm1174_vm7, %v1176_v4, %v1172_v8 }
 0x204   : > { %v1734_v41 = vpop.f32.mrf.mxu1  ;;  %v3747_v15 = vpop.eup %2222  ;;  %v3751_v10 = vadd.f32 1.0, %v2221_v16  ;;  %v911_v16 = vadd.f32 %v3619_v52, %v3669_v40 }
 0x205   : > { %v1735_v23 = vadd.f32 %v3685_v21, %v1734_v41  ;;  %v1180_v7 = vmul.f32 %v3747_v15, %v3693_v39  ;;  %v930_v12 = vpop.f32.mrf.mxu3  ;;  %v2225_v44 = vpop.eup %2224  ;;  %vm1185_vm10 = vweird.f32 %v3747_v15 }
 0x206   : > { %2226 = vrcp.f32 %v3751_v10  ;;  %v3800_v50 = vadd.f32 1.0, %v2225_v44  ;;  %v931_v5 = vadd.f32 %v3619_v52, %v930_v12  ;;  %v1968_v26 = vmul.f32 -1.442695, %v911_v16  ;;  %vm3860_vm12 = vmor %vm1184_vm11, %vm1185_vm10 }
 0x207   : > { %v1773_v33 = vmul.f32 %v1735_v23, %v1027_v36  ;;  %v1757_v2 = vpop.f32.mrf.mxu2  ;;  %v1181_v47 = vsub.f32 1.0, %v1180_v7  ;;  %2228 = vpow2.f32 %v1967_v35  ;;  %v1052_v23 = vsel %vm3826_vm8, %v3700_v38, %v1048_v37 }
 0x208   : > { %v1758_v0 = vadd.f32 %v3685_v21, %v1757_v2  ;;  %v1976_v20 = vmul.f32 -1.442695, %v931_v5  ;;  %v2262_v2 = vld [vmem:[%s2510_s29 + $0x58] sm:$0xff]  ;;  %v1057_v7 = vsel %vm3834_vm9, %v1056_v31, %v1052_v23  ;;  %v913_v12 = vadd.f32 %v3619_v52, %v3720_v9 }
 0x209   : > { %v1789_v63 = vadd.f32 %v2259_v32, %v1773_v33  ;;  %v1182_v13 = vmul.f32 %v3747_v15, %v1181_v47  ;;  %v1188_v32 = vand.u32 2147483647, %v3693_v39  ;;  %vm1199_vm15 = vweird.f32 %v3751_v10 }
 0x20a   : > { %v1782_v53 = vmul.f32 %v1758_v0, %v1162_v58  ;;  %v915_v60 = vpop.f32.mrf.mxu0  ;;  %v1203_v5 = vand.u32 2147483647, %v3751_v10  ;;  %vm1064_vm9 = vweird.f32 %v3800_v50 }
 0x20b   : > { %1805 = vst.msk [vmem:[%s3731_s22 + $0x8] sm:$0xff] %vm444_vm0, %v1789_v63  ;;  %v916_v34 = vadd.f32 %v3619_v52, %v915_v60  ;;  %v1183_v28 = vadd.f32 %v3747_v15, %v1182_v13  ;;  %v1191_v60 = vor.u32 1.1754944e-38, %v1190_v57  ;;  %vm1189_vm13 = vcmp.eq.f32.partialorder %v1188_v32, 8.507059e+37 }
 0x20c   : > { %v1798_v18 = vadd.f32 %v2260_v27, %v1782_v53  ;;  %v1737_v24 = vpop.f32.mrf.mxu1  ;;  %v3798_v11 = vpop.eup %2226  ;;  %vm1204_vm2 = vcmp.eq.f32.partialorder %v1203_v5, 8.507059e+37 }
 0x20d   : > { %v1738_v6 = vadd.f32 %v3685_v21, %v1737_v24  ;;  %v1970_v17 = vmul.f32 -1.442695, %v916_v34  ;;  %v1195_v46 = vmul.f32 %v3798_v11, %v3751_v10  ;;  %v932_v30 = vpop.f32.mrf.mxu3  ;;  %v2229_v33 = vpop.eup %2228  ;;  %v1187_v39 = vsel %vm3860_vm12, %v3747_v15, %v1183_v28  ;;  %v2263_v34 = vld [vmem:[%s2510_s29 + $0x18] sm:$0xff] }
 0x20e   : > { %1814 = vst.msk [vmem:[%s3731_s22 + $0x50] sm:$0xff] %vm444_vm0, %v1798_v18  ;;  %v933_v58 = vadd.f32 %v3619_v52, %v932_v30  ;;  %v3870_v43 = vadd.f32 1.0, %v2229_v33  ;;  %v1969_v15 = vmul.f32 -1.442695, %v913_v12  ;;  %v1192_v27 = vsel %vm1189_vm13, %v1191_v60, %v1187_v39  ;;  %v2266_v39 = vld [vmem:[%s2510_s29 + $0x40] sm:$0xff] }
 0x20f   : > { %v1774_v51 = vmul.f32 %v1738_v6, %v1042_v22  ;;  %v1759_v45 = vpop.f32.mrf.mxu2  ;;  %2230 = vpow2.f32 %v1970_v17  ;;  %v1196_v38 = vsub.f32 1.0, %v1195_v46  ;;  %vm1200_vm14 = vweird.f32 %v3798_v11  ;;  %v2264_v17 = vld [vmem:[%s2510_s29 + $0x60] sm:$0xff] }
 0x210   : > { %v1760_v41 = vadd.f32 %v3685_v21, %v1759_v45  ;;  %2232 = vrcp.f32 %v3800_v50  ;;  %v1977_v18 = vmul.f32 -1.442695, %v933_v58  ;;  %v1205_v6 = vand.u32 2147483648, %v3751_v10  ;;  %vm3886_vm1 = vmor %vm1199_vm15, %vm1200_vm14 }
 0x211   : > { %v1790_v59 = vadd.f32 %v2261_v29, %v1774_v51  ;;  %2234 = vpow2.f32 %v1976_v20 }
 0x212   : > { %v1783_v48 = vmul.f32 %v1760_v41, %v1177_v1  ;;  %v917_v36 = vpop.f32.mrf.mxu0  ;;  %v1206_v41 = vor.u32 1.1754944e-38, %v1205_v6 }
 0x213   : > { %1806 = vst.msk [vmem:[%s3731_s22 + $0x10] sm:$0xff] %vm444_vm0, %v1790_v59  ;;  %v918_v42 = vadd.f32 %v3619_v52, %v917_v36  ;;  %v1197_v52 = vmul.f32 %v3798_v11, %v1196_v38  ;;  %v2265_v38 = vld [vmem:[%s2510_s29 + $0x68] sm:$0xff] }
 0x214   : > { %v1799_v25 = vadd.f32 %v2262_v2, %v1783_v48  ;;  %v1739_v0 = vpop.f32.mrf.mxu1  ;;  %v1753_v2 = vadd.f32 %v3685_v21, %v3663_v19 }
 0x215   : > { %v2231_v49 = vpop.eup %2230  ;;  %v1740_v35 = vadd.f32 %v3685_v21, %v1739_v0  ;;  %v1971_v63 = vmul.f32 -1.442695, %v918_v42  ;;  %v1198_v24 = vadd.f32 %v3798_v11, %v1197_v52 }
 0x216   : > { %1815 = vst.msk [vmem:[%s3731_s22 + $0x58] sm:$0xff] %vm444_vm0, %v1799_v25  ;;  %v3856_v61 = vadd.f32 1.0, %v2231_v49  ;;  %v3868_v3 = vpop.eup %2232 }
 0x217   : > { %v1775_v53 = vmul.f32 %v1740_v35, %v1057_v7  ;;  %v1762_v9 = vpop.f32.mrf.mxu2  ;;  %2236 = vpow2.f32 %v1971_v63  ;;  %v2235_v14 = vpop.eup %2234  ;;  %v1060_v45 = vmul.f32 %v3868_v3, %v3800_v50  ;;  %v1202_v10 = vsel %vm3886_vm1, %v3798_v11, %v1198_v24 }
 0x218   : > { %2238 = vrcp.f32 %v3856_v61  ;;  %v1763_v47 = vadd.f32 %v3685_v21, %v1762_v9  ;;  %v3899_v54 = vadd.f32 1.0, %v2235_v14  ;;  %v1130_v23 = vand.u32 2147483648, %v3856_v61 }
 0x219   : > { %2240 = vpow2.f32 %v1968_v26  ;;  %v1791_v62 = vadd.f32 %v2263_v34, %v1775_v53  ;;  %v1207_v40 = vsel %vm1204_vm2, %v1206_v41, %v1202_v10  ;;  %v1061_v20 = vsub.f32 1.0, %v1060_v45  ;;  %v2267_v45 = vld [vmem:[%s2510_s29 + $0x48] sm:$0xff] }
 0x21a   : > { %v1784_v22 = vmul.f32 %v1763_v47, %v1192_v27  ;;  %2242 = vrcp.f32 %v3870_v43  ;;  %v1128_v31 = vand.u32 2147483647, %v3856_v61  ;;  %vm1124_vm4 = vweird.f32 %v3856_v61 }
 0x21b   : > { %1807 = vst.msk [vmem:[%s3731_s22 + $0x18] sm:$0xff] %vm444_vm0, %v1791_v62  ;;  %2244 = vpow2.f32 %v1969_v15  ;;  %v1131_v25 = vor.u32 1.1754944e-38, %v1130_v23  ;;  %v1062_v7 = vmul.f32 %v3868_v3, %v1061_v20  ;;  %vm1065_vm7 = vweird.f32 %v3868_v3 }
 0x21c   : > { %v1800_v37 = vadd.f32 %v2264_v17, %v1784_v22  ;;  %2246 = vpow2.f32 %v1977_v18  ;;  %vm1129_vm6 = vcmp.eq.f32.partialorder %v1128_v31, 8.507059e+37  ;;  %v1070_v34 = vand.u32 2147483648, %v3800_v50  ;;  %vm3941_vm11 = vmor %vm1064_vm9, %vm1065_vm7 }
 0x21d   : > { %v2237_v56 = vpop.eup %2236  ;;  %v1068_v27 = vand.u32 2147483647, %v3800_v50  ;;  %v1755_v18 = vadd.f32 %v3685_v21, %v3706_v55  ;;  %vm1079_vm1 = vweird.f32 %v3870_v43 }
 0x21e   : > { %v2239_v8 = vpop.eup %2238  ;;  %v3884_v4 = vadd.f32 1.0, %v2237_v56  ;;  %1816 = vst.msk [vmem:[%s3731_s22 + $0x60] sm:$0xff] %vm444_vm0, %v1800_v37  ;;  %v1071_v17 = vor.u32 1.1754944e-38, %v1070_v34 }
 0x21f   : > { %v2241_v13 = vpop.eup %2240  ;;  %v1120_v46 = vmul.f32 %v2239_v8, %v3856_v61  ;;  %v1764_v16 = vpop.f32.mrf.mxu2  ;;  %vm1125_vm3 = vweird.f32 %v2239_v8  ;;  %v1063_v61 = vadd.f32 %v3868_v3, %v1062_v7  ;;  %vm1069_vm14 = vcmp.eq.f32.partialorder %v1068_v27, 8.507059e+37 }
 0x220   : > { %2248 = vrcp.f32 %v3884_v4  ;;  %v1765_v59 = vadd.f32 %v3685_v21, %v1764_v16  ;;  %v3902_v1 = vadd.f32 1.0, %v2241_v13  ;;  %v3905_v48 = vpop.eup %2242  ;;  %vm1126_vm5 = vmor %vm1124_vm4, %vm1125_vm3  ;;  %v1145_v58 = vand.u32 2147483648, %v3884_v4 }
 0x221   : > { %v1121_v29 = vsub.f32 1.0, %v1120_v46  ;;  %v2245_v30 = vpop.eup %2244  ;;  %2250 = vrcp.f32 %v3899_v54  ;;  %v1075_v0 = vmul.f32 %v3905_v48, %v3870_v43  ;;  %v1143_v60 = vand.u32 2147483647, %v3884_v4 }
 0x222   : > { %v1785_v36 = vmul.f32 %v1765_v59, %v1207_v40  ;;  %v2247_v28 = vpop.eup %2246  ;;  %2252 = vrcp.f32 %v3902_v1  ;;  %v3923_v12 = vadd.f32 1.0, %v2245_v30  ;;  %vm1139_vm10 = vweird.f32 %v3884_v4  ;;  %v2268_v59 = vld [vmem:[%s2510_s29 + $0x20] sm:$0xff] }
 0x223   : > { %v1122_v11 = vmul.f32 %v2239_v8, %v1121_v29  ;;  %v3920_v32 = vadd.f32 1.0, %v2247_v28  ;;  %v1076_v44 = vsub.f32 1.0, %v1075_v0  ;;  %v1146_v22 = vor.u32 1.1754944e-38, %v1145_v58 }
 0x224   : > { %v1801_v33 = vadd.f32 %v2265_v38, %v1785_v36  ;;  %v1067_v24 = vsel %vm3941_vm11, %v3868_v3, %v1063_v61  ;;  %vm1144_vm13 = vcmp.eq.f32.partialorder %v1143_v60, 8.507059e+37  ;;  %vm1080_vm15 = vweird.f32 %v3905_v48 }
 0x225   : > { %v1123_v42 = vadd.f32 %v2239_v8, %v1122_v11  ;;  %2254 = vrcp.f32 %v3920_v32  ;;  %v1077_v56 = vmul.f32 %v3905_v48, %v1076_v44  ;;  %v1085_v16 = vand.u32 2147483648, %v3870_v43  ;;  %vm1081_vm2 = vmor %vm1079_vm1, %vm1080_vm15 }
 0x226   : > { %v2249_v26 = vpop.eup %2248  ;;  %1817 = vst.msk [vmem:[%s3731_s22 + $0x68] sm:$0xff] %vm444_vm0, %v1801_v33  ;;  %2256 = vrcp.f32 %v3923_v12  ;;  %v1083_v40 = vand.u32 2147483647, %v3870_v43  ;;  %vm1109_vm1 = vweird.f32 %v3923_v12 }
 0x227   : > { %v1127_v57 = vsel %vm1126_vm5, %v2239_v8, %v1123_v42  ;;  %v1135_v49 = vmul.f32 %v2249_v26, %v3884_v4  ;;  %v3927_v53 = vpop.eup %2250  ;;  %vm1140_vm8 = vweird.f32 %v2249_v26  ;;  %v1072_v8 = vsel %vm1069_vm14, %v1071_v17, %v1067_v24 }
 0x228   : > { %v1132_v35 = vsel %vm1129_vm6, %v1131_v25, %v1127_v57  ;;  %v3933_v62 = vpop.eup %2252  ;;  %vm1141_vm12 = vmor %vm1139_vm10, %vm1140_vm8  ;;  %v1210_v14 = vmul.f32 %v3927_v53, %v3899_v54  ;;  %v1078_v10 = vadd.f32 %v3905_v48, %v1077_v56  ;;  %v1086_v36 = vor.u32 1.1754944e-38, %v1085_v16  ;;  %v2269_v57 = vld [vmem:[%s2510_s29 + $0x28] sm:$0xff] }
 0x229   : > { %v1780_v19 = vmul.f32 %v1753_v2, %v1132_v35  ;;  %v1136_v63 = vsub.f32 1.0, %v1135_v49  ;;  %v1090_v55 = vmul.f32 %v3933_v62, %v3902_v1  ;;  %vm1084_vm3 = vcmp.eq.f32.partialorder %v1083_v40, 8.507059e+37 }
 0x22a   : > { %v1211_v4 = vsub.f32 1.0, %v1210_v14  ;;  %v1082_v31 = vsel %vm1081_vm2, %v3905_v48, %v1078_v10  ;;  %vm1215_vm4 = vweird.f32 %v3927_v53  ;;  %v1220_v48 = vand.u32 2147483648, %v3899_v54 }
 0x22b   : > { %v1796_v9 = vadd.f32 %v2266_v39, %v1780_v19  ;;  %v1137_v52 = vmul.f32 %v2249_v26, %v1136_v63  ;;  %v3958_v51 = vpop.eup %2254  ;;  %v1091_v41 = vsub.f32 1.0, %v1090_v55  ;;  %v1087_v38 = vsel %vm1084_vm3, %v1086_v36, %v1082_v31 }
 0x22c   : > { %v3964_v29 = vpop.eup %2256  ;;  %v1212_v20 = vmul.f32 %v3927_v53, %v1211_v4  ;;  %v1225_v11 = vmul.f32 %v3958_v51, %v3920_v32  ;;  %vm1095_vm5 = vweird.f32 %v3933_v62  ;;  %vm1214_vm6 = vweird.f32 %v3899_v54 }
 0x22d   : > { %1812 = vst.msk [vmem:[%s3731_s22 + $0x40] sm:$0xff] %vm444_vm0, %v1796_v9  ;;  %v1138_v47 = vadd.f32 %v2249_v26, %v1137_v52  ;;  %v1092_v28 = vmul.f32 %v3933_v62, %v1091_v41  ;;  %v1105_v42 = vmul.f32 %v3964_v29, %v3923_v12  ;;  %v1218_v25 = vand.u32 2147483647, %v3899_v54  ;;  %vm3990_vm7 = vmor %vm1214_vm6, %vm1215_vm4  ;;  %v2272_v41 = vld [vmem:[%s2510_s29 + $0x78] sm:$0xff] }
 0x22e   : > { %v1213_v33 = vadd.f32 %v3927_v53, %v1212_v20  ;;  %v1098_v19 = vand.u32 2147483647, %v3902_v1  ;;  %v1100_v63 = vand.u32 2147483648, %v3902_v1  ;;  %vm1094_vm8 = vweird.f32 %v3902_v1 }
 0x22f   : > { %v1142_v6 = vsel %vm1141_vm12, %v2249_v26, %v1138_v47  ;;  %v1226_v26 = vsub.f32 1.0, %v1225_v11  ;;  %v1093_v7 = vadd.f32 %v3933_v62, %v1092_v28  ;;  %v1106_v0 = vsub.f32 1.0, %v1105_v42  ;;  %vm4005_vm9 = vmor %vm1094_vm8, %vm1095_vm5 }
 0x230   : > { %v1147_v50 = vsel %vm1144_vm13, %v1146_v22, %v1142_v6  ;;  %v1217_v58 = vsel %vm3990_vm7, %v3927_v53, %v1213_v33  ;;  %v1221_v61 = vor.u32 1.1754944e-38, %v1220_v48  ;;  %vm1219_vm10 = vcmp.eq.f32.partialorder %v1218_v25, 8.507059e+37  ;;  %v2270_v22 = vld [vmem:[%s2510_s29 + $0x70] sm:$0xff] }
 0x231   : > { %v1781_v5 = vmul.f32 %v1755_v18, %v1147_v50  ;;  %v1227_v54 = vmul.f32 %v3958_v51, %v1226_v26  ;;  %v1097_v1 = vsel %vm4005_vm9, %v3933_v62, %v1093_v7  ;;  %v1107_v53 = vmul.f32 %v3964_v29, %v1106_v0 }
 0x232   : > { %v1742_v37 = vpop.f32.mrf.mxu1  ;;  %v1222_v52 = vsel %vm1219_vm10, %v1221_v61, %v1217_v58  ;;  %vm1099_vm11 = vcmp.eq.f32.partialorder %v1098_v19, 8.507059e+37  ;;  %v1101_v60 = vor.u32 1.1754944e-38, %v1100_v63  ;;  %vm1230_vm12 = vweird.f32 %v3958_v51 }
 0x233   : > { %v1743_v3 = vadd.f32 %v3685_v21, %v1742_v37  ;;  %v1797_v13 = vadd.f32 %v2267_v45, %v1781_v5  ;;  %v1228_v27 = vadd.f32 %v3958_v51, %v1227_v54  ;;  %vm1229_vm13 = vweird.f32 %v3920_v32  ;;  %v2271_v37 = vld [vmem:[%s2510_s29 + $0x30] sm:$0xff] }
 0x234   : > { %v1102_v18 = vsel %vm1099_vm11, %v1101_v60, %v1097_v1  ;;  %v1235_v62 = vand.u32 2147483648, %v3920_v32  ;;  %vm1110_vm14 = vweird.f32 %v3964_v29  ;;  %v1233_v6 = vand.u32 2147483647, %v3920_v32  ;;  %vm4024_vm15 = vmor %vm1229_vm13, %vm1230_vm12 }
 0x235   : > { %v1776_v46 = vmul.f32 %v1743_v3, %v1072_v8  ;;  %1813 = vst.msk [vmem:[%s3731_s22 + $0x48] sm:$0xff] %vm444_vm0, %v1797_v13  ;;  %v1108_v56 = vadd.f32 %v3964_v29, %v1107_v53  ;;  %v1115_v17 = vand.u32 2147483648, %v3923_v12  ;;  %v1232_v32 = vsel %vm4024_vm15, %v3958_v51, %v1228_v27  ;;  %vm1111_vm2 = vmor %vm1109_vm1, %vm1110_vm14 }
 0x236   : > { %v1113_v5 = vand.u32 2147483647, %v3923_v12  ;;  %v1236_v3 = vor.u32 1.1754944e-38, %v1235_v62  ;;  %vm1234_vm3 = vcmp.eq.f32.partialorder %v1233_v6, 8.507059e+37 }
 0x237   : > { %v1792_v23 = vadd.f32 %v2268_v59, %v1776_v46  ;;  %v1112_v51 = vsel %vm1111_vm2, %v3964_v29, %v1108_v56  ;;  %v1116_v12 = vor.u32 1.1754944e-38, %v1115_v17  ;;  %v2273_v29 = vld [vmem:[%s2510_s29 + $0x38] sm:$0xff] }
 0x238   : > { %v1237_v45 = vsel %vm1234_vm3, %v1236_v3, %v1232_v32  ;;  %vm1114_vm4 = vcmp.eq.f32.partialorder %v1113_v5, 8.507059e+37 }
 0x239   : > { %1808 = vst.msk [vmem:[%s3731_s22 + $0x20] sm:$0xff] %vm444_vm0, %v1792_v23  ;;  %v1117_v16 = vsel %vm1114_vm4, %v1116_v12, %v1112_v51 }
 0x23a   : > { %v1744_v30 = vpop.f32.mrf.mxu1 }
 0x23b   : > { %v1745_v43 = vadd.f32 %v3685_v21, %v1744_v30 }
 0x23d   : > { %v1777_v2 = vmul.f32 %v1745_v43, %v1087_v38 }
 0x23f   : > { %v1793_v49 = vadd.f32 %v2269_v57, %v1777_v2 }
 0x241   : > { %1809 = vst.msk [vmem:[%s3731_s22 + $0x28] sm:$0xff] %vm444_vm0, %v1793_v49  ;;  %v1767_v44 = vpop.f32.mrf.mxu2 }
 0x242   : > { %v1768_v9 = vadd.f32 %v3685_v21, %v1767_v44 }
 0x243   : > { %v1747_v34 = vpop.f32.mrf.mxu1 }
 0x244   : > { %v1786_v47 = vmul.f32 %v1768_v9, %v1222_v52  ;;  %v1748_v15 = vadd.f32 %v3685_v21, %v1747_v34 }
 0x246   : > { %v1802_v24 = vadd.f32 %v2270_v22, %v1786_v47  ;;  %v1778_v14 = vmul.f32 %v1748_v15, %v1102_v18 }
 0x248   : > { %1818 = vst.msk [vmem:[%s3731_s22 + $0x70] sm:$0xff] %vm444_vm0, %v1802_v24  ;;  %v1794_v55 = vadd.f32 %v2271_v37, %v1778_v14 }
 0x249   : > { %v1769_v8 = vpop.f32.mrf.mxu2 }
 0x24a   : > { %1810 = vst.msk [vmem:[%s3731_s22 + $0x30] sm:$0xff] %vm444_vm0, %v1794_v55  ;;  %v1770_v4 = vadd.f32 %v3685_v21, %v1769_v8 }
 0x24b   : > { %v1749_v13 = vpop.f32.mrf.mxu1 }
 0x24c   : > { %v1787_v46 = vmul.f32 %v1770_v4, %v1237_v45  ;;  %v1750_v10 = vadd.f32 %v3685_v21, %v1749_v13 }
 0x24e   : > { %v1803_v59 = vadd.f32 %v2272_v41, %v1787_v46  ;;  %v1779_v23 = vmul.f32 %v1750_v10, %v1117_v16 }
 0x250   : > { %1819 = vst.msk [vmem:[%s3731_s22 + $0x78] sm:$0xff] %vm444_vm0, %v1803_v59  ;;  %v1795_v40 = vadd.f32 %v2273_v29, %v1779_v23 }
 0x252   : > { %1811 = vst.msk [vmem:[%s3731_s22 + $0x38] sm:$0xff] %vm444_vm0, %v1795_v40 }
 0x253   : > { %2301 = shalt.err (!%p2298_p7)
}
 0x254   : > { %s2372_s29 = smov 128   ;;  %s2373_s23 = smov 8  }
 0x255   : > { %2045 = dma.vmem_to_hbm [thread:$0]  (%p2480_p3), %s1836_s24, 2048, %s1838_s30, %s1821_s21, %s2372_s29, %s2372_s29, %s2373_s23  }
 0x256 PF: > { %p2051_p9 = scmp.ge.s32.totalorder %s2368_s20, 2  ;;  %s1852_s22 = sand.u32 1, %s2340_s13  }
 0x257   : > { %s1853_s0 = scalar_lea.sflag [#allocation3], %s1852_s22 }
 0x258   : > { %p2048_p10 = pnand %p2051_p9, %p2489_p8 }
 0x25a   : > { %p2049_p11 = pneg %p2048_p10 }
 0x25c   : > { %2335 = dma.done.wait (%p2049_p11), %s1853_s0, 2048  }
 0x25d   : > { %2337 = vsyncadd (%p2049_p11), %s1853_s0, 4294965248  ;;  %s23_s20 = sadd.s32 1, %s2368_s20   ;;  %s4194_s17 = sld [smem:[#allocation5_spill]] }
 0x25e   : > { %p20_p12 = scmp.ge.s32.totalorder %s23_s20, 6   ;;  %s4195_s26 = sld [smem:[#allocation6_spill]] }
 0x25f   : > { %s4196_s19 = sld [smem:[#allocation7_spill]]  ;;  %s4197_s13 = smov %s2344_s14 }
 0x260   : > { %s4198_s14 = smov %s2348_s15  ;;  %s4199_s15 = smov %s2498_s11 }
 0x261   : > { %s4200_s16 = smov %s2360_s18  ;;  %22 = sbr.rel (!%p20_p12) target bundleno = 7 (0x7), region = 98 }
 0x264   : > { %s4201_s18 = smov %s4195_s26 }
 0x266   :  { %1859 = vsyncpa [#allocation3], 1 }
 0x267   :  { %1861 = vsyncpa [#allocation3 + $0x1], 1 }

</bundles_post_ra>
